<compile_context>
chip_gen: v7x
topology: tpu7x:2x2x1
jax: 0.10.0
libtpu: 0.0.40
codegen_flags: <defaults>
</compile_context>

<pallas_src>
import numpy as np
import jax
import jax.numpy as jnp
from jax.experimental import pallas as pl
from jax.experimental.pallas import tpu as pltpu

C_IN = 384
LANES = 128          # packed raw-slab width inside the kernel (lane-dense)
OUT_LANES = 16       # lanes 0:14 = packed box channels, 14:16 = cls logits
XY_LANES = 8         # per-pixel anchor-center carrier (lane 0 = xa, lane 1 = ya)
DIR_OFFSET = 0.78539
PI = float(np.pi)

# Packed lane layout of the in-kernel 128-wide raw slab:
#   lanes  0: 6  -> box1 head (x,y,z channel pairs)
#   lanes  6:14  -> box2 head (dx,dy,dz,rz channel pairs)
#   lanes 14:16  -> cls logits
#   lanes 16:20  -> dir logits (anchor0: 16,17  anchor1: 18,19)
#   lanes 20:128 -> zero padding
# Reinterpreted as (NA, 7): lanes 0..6 = anchor0 code, lanes 7..13 = anchor1 code,
# exactly matching the PyTorch channel-concatenate + .view(B, NA, 7).


# ----------------------------- Pallas kernel ---------------------------------

def det_head_kernel(x_ref, wall_ref, ball_ref, w1b_ref,
                    scale_ref, offc_ref, xy_ref, out_ref):
    """Fused heads + anchor decode.  x tile: (tm, 384) bf16; output tile: (tm, 16) f32."""
    x = x_ref[...]                                                     # (tm, 384) bf16

    # One wide MXU matmul (bf16 operands, f32 accumulation) + fused f32 bias add.
    y = jnp.dot(x, wall_ref[...], preferred_element_type=jnp.float32) + ball_ref[...]
    h = jnp.maximum(y[:, :C_IN], 0.0)                                  # conv1+BN+ReLU (folded)
    tail = y[:, C_IN:]                                                 # (tm,128): b1b | box2 | cls | dir

    # Second matmul (w1b zero-padded to 128 lanes) lands box1 in lanes 0:6.
    raw = jnp.dot(h.astype(jnp.bfloat16), w1b_ref[...],
                  preferred_element_type=jnp.float32) + tail           # (tm, 128) f32

    # ---- fused anchor decode (whole-tile elementwise; f32) ----
    lane = jax.lax.broadcasted_iota(jnp.int32, (1, LANES), 1)
    is_exp = ((lane == 3) | (lane == 4) | (lane == 5) |
              (lane == 10) | (lane == 11) | (lane == 12))              # dx,dy,dz lanes
    is_rot = (lane == 6) | (lane == 13)                                # rz lanes
    rot0 = (lane == 6).astype(jnp.float32)
    rot1 = (lane == 13).astype(jnp.float32)
    mask_x = ((lane == 0) | (lane == 7)).astype(jnp.float32)           # anchor-center x lanes
    mask_y = ((lane == 1) | (lane == 8)).astype(jnp.float32)           # anchor-center y lanes

    sc = scale_ref[...]                                                # (1, 128)
    of = (offc_ref[...]                                                # constant offsets
          + xy_ref[:, 0:1] * mask_x                                    # + per-pixel xa
          + xy_ref[:, 1:2] * mask_y)                                   # + per-pixel ya

    # linear lanes: raw*scale + offset ; size lanes: exp(raw)*anchor_size
    dec = jnp.where(is_exp, jnp.exp(raw) * sc, raw * sc + of)

    # direction correction on the two rotation lanes
    val = dec - DIR_OFFSET
    per = val - jnp.floor(val / PI) * PI                               # limit_period(val, 0, pi)
    lab0 = (raw[:, 17:18] > raw[:, 16:17]).astype(jnp.float32)         # argmax (first wins on ties)
    lab1 = (raw[:, 19:20] > raw[:, 18:19]).astype(jnp.float32)
    rot_new = per + DIR_OFFSET + PI * (lab0 * rot0 + lab1 * rot1)

    final = jnp.where(is_rot, rot_new, dec)
    out_ref[...] = final[:, :OUT_LANES]                                # (tm, 16) f32


# ------------------------------- wrappers -------------------------------------

def fuse_params(p):
    """Pack the five heads into [W_all (384,512) bf16, b_all (1,512) f32, w1b (384,128) bf16]."""
    C = C_IN
    wall = jnp.zeros((C, C + LANES), jnp.float32)
    wall = wall.at[:, :C].set(p['w1a_f'])
    wall = wall.at[:, C + 6:C + 14].set(p['w2'])
    wall = wall.at[:, C + 14:C + 16].set(p['wcls'])
    wall = wall.at[:, C + 16:C + 20].set(p['wdir'])

    ball = jnp.zeros((1, C + LANES), jnp.float32)
    ball = ball.at[:, :C].set(p['b1a_f'])
    ball = ball.at[:, C:C + 6].set(p['b1b'])
    ball = ball.at[:, C + 6:C + 14].set(p['b2'])
    ball = ball.at[:, C + 14:C + 16].set(p['bcls'])
    ball = ball.at[:, C + 16:C + 20].set(p['bdir'])

    w1b_pad = jnp.zeros((C, LANES), jnp.float32).at[:, :6].set(p['w1b'])
    return wall.astype(jnp.bfloat16), ball, w1b_pad.astype(jnp.bfloat16)


def build_decode_consts(anchors, H, W):
    """Per-lane decode constants + per-pixel anchor centers.

    For this module's AnchorGenerator (one size, constant bottom height, per-slot
    rotations), the lane scale vector and the z/rot offsets are pixel-invariant; only
    the anchor centers (xa, ya) vary per pixel.
    """
    HW = H * W
    a = anchors.reshape(HW, 2, 7)
    xa, ya, za = a[..., 0], a[..., 1], a[..., 2]
    dxa, dya, dza, ra = a[..., 3], a[..., 4], a[..., 5], a[..., 6]
    diag = jnp.sqrt(dxa * dxa + dya * dya)
    ones = jnp.ones_like(xa)
    zeros = jnp.zeros_like(xa)

    scale14 = jnp.stack([diag, diag, dza, dxa, dya, dza, ones], -1).reshape(HW, 14)
    offc14 = jnp.stack([zeros, zeros, za, zeros, zeros, zeros, ra], -1).reshape(HW, 14)

    scale_c = jnp.zeros((1, LANES), jnp.float32).at[0, :14].set(scale14[0])
    scale_c = scale_c.at[0, 14:16].set(1.0)          # cls lanes pass through unchanged
    off_c = jnp.zeros((1, LANES), jnp.float32).at[0, :14].set(offc14[0])

    # per-pixel anchor centers (shared by both rotations at a pixel)
    xy = jnp.zeros((HW, XY_LANES), jnp.float32)
    xy = xy.at[:, 0].set(xa[:, 0]).at[:, 1].set(ya[:, 0])
    return scale_c, off_c, xy


def _pick_tm(M, HW):
    """Largest row tile that divides HW (so blocks never straddle a batch image) while
    keeping >= 2 grid steps (both v7x TensorCores busy)."""
    for tm in (512, 256, 128, 64, 32, 16, 8):
        if HW % tm == 0 and M // tm >= 2:
            return tm
    return HW   # degenerate tiny shapes: one image per grid step


def run_det_head(x_flat, wall, ball, w1b_pad, scale_c, off_c, xy, tm, HW):
    M = x_flat.shape[0]
    assert M % tm == 0 and HW % tm == 0
    nblk_hw = HW // tm
    grid = (M // tm,)

    cost = pl.CostEstimate(
        flops=2 * M * C_IN * (C_IN + 2 * LANES),
        transcendentals=M * LANES,
        bytes_accessed=(M * (2 * C_IN + 4 * XY_LANES + 4 * OUT_LANES)
                        + 2 * C_IN * (C_IN + 2 * LANES)
                        + 4 * (C_IN + LANES) + 8 * LANES),
    )

    # NOTE: weights are small (<~0.6 MiB bf16); default double-buffering is negligible
    # here, so no pipeline_mode override is needed.
    return pl.pallas_call(
        det_head_kernel,
        out_shape=jax.ShapeDtypeStruct((M, OUT_LANES), jnp.float32),
        grid=grid,
        in_specs=[
            pl.BlockSpec((tm, C_IN), lambda i: (i, 0)),                  # x (bf16)
            pl.BlockSpec((C_IN, C_IN + LANES), lambda i: (0, 0)),        # W_all (bf16)
            pl.BlockSpec((1, C_IN + LANES), lambda i: (0, 0)),           # b_all (f32)
            pl.BlockSpec((C_IN, LANES), lambda i: (0, 0)),               # w1b (bf16)
            pl.BlockSpec((1, LANES), lambda i: (0, 0)),                  # scale const
            pl.BlockSpec((1, LANES), lambda i: (0, 0)),                  # offset const
            pl.BlockSpec((tm, XY_LANES), lambda i: (i % nblk_hw, 0)),    # per-pixel xa,ya
        ],
        out_specs=pl.BlockSpec((tm, OUT_LANES), lambda i: (i, 0)),
        compiler_params=pltpu.CompilerParams(
            dimension_semantics=("parallel",),
            vmem_limit_bytes=32 * 1024 * 1024,
        ),
        cost_estimate=cost,
    )(x_flat, wall, ball, w1b_pad, scale_c, off_c, xy)


def det_head_forward(x_nchw, params, anchors):
    """Equivalent of DetHead.forward; returns (batch_cls_preds, batch_box_preds)."""
    B, C, H, W = x_nchw.shape
    M = B * H * W
    HW = H * W
    NA = HW * 2

    # NCHW -> channels-last rows, fused with the bf16 cast into one XLA pass.
    # TODO(synk): ideally the producer emits channels-last/bf16 so this is a free reshape.
    x_flat = jnp.transpose(x_nchw, (0, 2, 3, 1)).reshape(M, C).astype(jnp.bfloat16)

    wall, ball, w1b_pad = fuse_params(params)
    scale_c, off_c, xy = build_decode_consts(anchors, H, W)

    slab = run_det_head(x_flat, wall, ball, w1b_pad, scale_c, off_c, xy,
                        _pick_tm(M, HW), HW)

    batch_cls_preds = slab[:, 14:16].reshape(B, NA, 1)
    batch_box_preds = slab[:, :14].reshape(B, NA, 7)
    return batch_cls_preds, batch_box_preds


# ----------------------- deterministic params / anchors ----------------------

def init_params(key):
    ks = jax.random.split(key, 14)

    def rnd(k, shape, s=0.05):
        return jax.random.normal(k, shape, jnp.float32) * s

    p = {}
    p['wcls'] = rnd(ks[0], (C_IN, 2))
    p['bcls'] = rnd(ks[1], (1, 2))

    w1a = rnd(ks[2], (C_IN, C_IN))
    b1a = rnd(ks[3], (C_IN,))
    gamma = 1.0 + 0.1 * jax.random.normal(ks[4], (C_IN,), jnp.float32)
    beta = 0.1 * jax.random.normal(ks[5], (C_IN,), jnp.float32)
    rmean = 0.1 * jax.random.normal(ks[6], (C_IN,), jnp.float32)
    rvar = 0.5 + 0.1 * jnp.abs(jax.random.normal(ks[7], (C_IN,), jnp.float32))
    scale = gamma / jnp.sqrt(rvar + 1e-3)            # BatchNorm2d eps=0.001 (eval mode)
    p['w1a_f'] = w1a * scale[None, :]
    p['b1a_f'] = ((b1a - rmean) * scale + beta)[None, :]

    p['w1b'] = rnd(ks[8], (C_IN, 6))
    p['b1b'] = rnd(ks[9], (1, 6))
    p['w2'] = rnd(ks[10], (C_IN, 8))
    p['b2'] = rnd(ks[11], (1, 8))
    p['wdir'] = rnd(ks[12], (C_IN, 4))
    p['bdir'] = rnd(ks[13], (1, 4))
    return p


def make_anchors(point_range, grid_size):
    """AnchorGenerator equivalent (align_center=False, 1 size, 2 rotations)."""
    nx, ny = int(grid_size[0] // 2), int(grid_size[1] // 2)
    x_stride = (point_range[3] - point_range[0]) / (nx - 1)
    y_stride = (point_range[4] - point_range[1]) / (ny - 1)
    x_shifts = point_range[0] + np.arange(nx, dtype=np.float32) * x_stride
    y_shifts = point_range[1] + np.arange(ny, dtype=np.float32) * y_stride
    size = np.array([3.9, 1.6, 1.56], np.float32)
    rots = np.array([0.0, 1.57], np.float32)
    bottom = -1.78
    anch = np.zeros((ny, nx, 2, 7), np.float32)      # [y, x, rot, 7]
    anch[..., 0] = x_shifts[None, :, None]
    anch[..., 1] = y_shifts[:, None, None]
    anch[..., 2] = bottom + size[2] / 2.0            # z bottom + dz/2
    anch[..., 3] = size[0]
    anch[..., 4] = size[1]
    anch[..., 5] = size[2]
    anch[..., 6] = rots[None, None, :]
    return anch.reshape(-1, 7)                       # (NA = ny*nx*2, 7)


# ------------------------------ pure-JAX reference ---------------------------

def reference_forward(x_nchw, p, anchors):
    B, C, H, W = x_nchw.shape
    xf = jnp.transpose(x_nchw, (0, 2, 3, 1)).reshape(-1, C)
    dot = lambda a, b: jnp.dot(a, b, precision=jax.lax.Precision.HIGHEST)
    cls_f = dot(xf, p['wcls']) + p['bcls']
    h = jnp.maximum(dot(xf, p['w1a_f']) + p['b1a_f'], 0.0)
    box1 = dot(h, p['w1b']) + p['b1b']
    box2 = dot(xf, p['w2']) + p['b2']
    dirf = dot(xf, p['wdir']) + p['bdir']
    NA = H * W * 2
    bcls = cls_f.reshape(B, NA, 1)
    bp = jnp.concatenate([box1, box2], -1).reshape(B, NA, 7)
    dp = dirf.reshape(B, NA, 2)
    a = anchors[None]
    xa, ya, za, dxa, dya, dza, ra = [a[..., i] for i in range(7)]
    xt, yt, zt, dxt, dyt, dzt, rt = [bp[..., i] for i in range(7)]
    diag = jnp.sqrt(dxa ** 2 + dya ** 2)
    xg = xt * diag + xa
    yg = yt * diag + ya
    zg = zt * dza + za
    dxg = jnp.exp(dxt) * dxa
    dyg = jnp.exp(dyt) * dya
    dzg = jnp.exp(dzt) * dza
    rg = rt + ra
    label = jnp.argmax(dp, -1).astype(jnp.float32)
    val = rg - DIR_OFFSET
    rot = val - jnp.floor(val / PI) * PI
    rgn = rot + DIR_OFFSET + PI * label
    bbox = jnp.stack([xg, yg, zg, dxg, dyg, dzg, rgn], -1)
    return bcls, bbox


# ----------------------------------- main ------------------------------------

if __name__ == "__main__":
    key = jax.random.PRNGKey(0)
    kx, kp = jax.random.split(key)

    B, H, W = 2, 16, 16                                # small spatial size
    point_range = np.array([0.0, -20.0, -3.0, 40.0, 20.0, 1.0], np.float32)
    grid_size = np.array([2 * W, 2 * H, 1])            # feature map = grid_size[:2]//2

    params = init_params(kp)
    anchors = jnp.asarray(make_anchors(point_range, grid_size))   # (H*W*2, 7)
    x = jax.random.normal(kx, (B, C_IN, H, W), jnp.float32)       # NCHW input

    fwd = jax.jit(det_head_forward)
    cls_preds, box_preds = fwd(x, params, anchors)
    jax.block_until_ready((cls_preds, box_preds))

    ref_cls, ref_box = reference_forward(x, params, anchors)
    cls_np, box_np = np.asarray(cls_preds), np.asarray(box_preds)
    rcls, rbox = np.asarray(ref_cls), np.asarray(ref_box)

    # bf16 MXU operands (f32 accumulation) vs a pure-f32 reference: tolerances sized for
    # ~2^-9 relative operand rounding through two 384-deep matmuls and exp().
    np.testing.assert_allclose(cls_np, rcls, rtol=1e-2, atol=1e-2)
    np.testing.assert_allclose(box_np[..., :6], rbox[..., :6], rtol=2e-2, atol=8e-2)

    # Rotation column: limit_period and the dir argmax are pi-periodic discontinuities,
    # so compare modulo pi (a knife-edge branch flip must not register as a pi error) and
    # separately check that such flips are rare.
    d = box_np[..., 6] - rbox[..., 6]
    d_wrapped = d - PI * np.round(d / PI)
    np.testing.assert_allclose(d_wrapped, 0.0, atol=2e-2)
    assert np.mean(np.abs(d) > 0.1) < 0.02

    assert cls_preds.shape == (B, H * W * 2, 1)
    assert box_preds.shape == (B, H * W * 2, 7)
    print("KERNEL_OK")
</pallas_src>

<mosaic_0001>
module attributes {stable_mosaic.version = 11 : i64} {
  func.func @det_head_kernel(%arg0: i32, %arg1: memref<256x384xbf16, #tpu.memory_space<vmem>>, %arg2: memref<384x512xbf16, #tpu.memory_space<vmem>>, %arg3: memref<1x512xf32, #tpu.memory_space<vmem>>, %arg4: memref<384x128xbf16, #tpu.memory_space<vmem>>, %arg5: memref<1x128xf32, #tpu.memory_space<vmem>>, %arg6: memref<1x128xf32, #tpu.memory_space<vmem>>, %arg7: memref<256x8xf32, #tpu.memory_space<vmem>>, %arg8: memref<256x16xf32, #tpu.memory_space<vmem>>) attributes {dimension_semantics = [#tpu.dimension_semantics<parallel>], iteration_bounds = array<i64: 2>, scalar_prefetch = 0 : i64, scratch_operands = 0 : i64, tpu.core_type = #tpu.core_type<tc>, window_params = [{transform_indices = @transform_0, window_bounds = array<i64: 256, 384>}, {pipeline_mode = #tpu.pipeline_mode<synchronous>, transform_indices = @transform_1, window_bounds = array<i64: 384, 512>}, {pipeline_mode = #tpu.pipeline_mode<synchronous>, transform_indices = @transform_2, window_bounds = array<i64: 1, 512>}, {pipeline_mode = #tpu.pipeline_mode<synchronous>, transform_indices = @transform_3, window_bounds = array<i64: 384, 128>}, {pipeline_mode = #tpu.pipeline_mode<synchronous>, transform_indices = @transform_4, window_bounds = array<i64: 1, 128>}, {pipeline_mode = #tpu.pipeline_mode<synchronous>, transform_indices = @transform_5, window_bounds = array<i64: 1, 128>}, {transform_indices = @transform_6, window_bounds = array<i64: 256, 8>}, {transform_indices = @transform_7, window_bounds = array<i64: 256, 16>}]} {
    %c0 = arith.constant 0 : index
    %c0_0 = arith.constant 0 : index
    %0 = vector.load %arg1[%c0, %c0_0] : memref<256x384xbf16, #tpu.memory_space<vmem>>, vector<256x384xbf16>
    %c0_1 = arith.constant 0 : index
    %c0_2 = arith.constant 0 : index
    %1 = vector.load %arg2[%c0_1, %c0_2] : memref<384x512xbf16, #tpu.memory_space<vmem>>, vector<384x512xbf16>
    %cst = arith.constant dense<0.000000e+00> : vector<256x512xf32>
    %2 = tpu.matmul %0, %1, %cst {dimension_numbers = #tpu.dot_dimension_numbers<[1], [0], [0], [1], [0, 0, 1, 1], [], []>} : vector<256x384xbf16>, vector<384x512xbf16>, vector<256x512xf32> -> vector<256x512xf32>
    %c0_3 = arith.constant 0 : index
    %c0_4 = arith.constant 0 : index
    %3 = vector.load %arg3[%c0_3, %c0_4] : memref<1x512xf32, #tpu.memory_space<vmem>>, vector<1x512xf32>
    %4 = vector.broadcast %3 : vector<1x512xf32> to vector<256x512xf32>
    %5 = arith.addf %2, %4 : vector<256x512xf32>
    %6 = vector.extract_strided_slice %5 {offsets = [0, 0], sizes = [256, 384], strides = [1, 1]} : vector<256x512xf32> to vector<256x384xf32>
    %cst_5 = arith.constant 0.000000e+00 : f32
    %7 = vector.broadcast %cst_5 : f32 to vector<256x384xf32>
    %8 = arith.maximumf %6, %7 : vector<256x384xf32>
    %9 = vector.extract_strided_slice %5 {offsets = [0, 384], sizes = [256, 128], strides = [1, 1]} : vector<256x512xf32> to vector<256x128xf32>
    %10 = arith.truncf %8 : vector<256x384xf32> to vector<256x384xbf16>
    %c0_6 = arith.constant 0 : index
    %c0_7 = arith.constant 0 : index
    %11 = vector.load %arg4[%c0_6, %c0_7] : memref<384x128xbf16, #tpu.memory_space<vmem>>, vector<384x128xbf16>
    %cst_8 = arith.constant dense<0.000000e+00> : vector<256x128xf32>
    %12 = tpu.matmul %10, %11, %cst_8 {dimension_numbers = #tpu.dot_dimension_numbers<[1], [0], [0], [1], [0, 0, 1, 1], [], []>} : vector<256x384xbf16>, vector<384x128xbf16>, vector<256x128xf32> -> vector<256x128xf32>
    %13 = arith.addf %12, %9 : vector<256x128xf32>
    %14 = tpu.iota {dimensions = array<i32: 1>} : vector<1x128xi32>
    %c3_i32 = arith.constant 3 : i32
    %15 = vector.broadcast %c3_i32 : i32 to vector<1x128xi32>
    %16 = arith.cmpi eq, %14, %15 : vector<1x128xi32>
    %c4_i32 = arith.constant 4 : i32
    %17 = vector.broadcast %c4_i32 : i32 to vector<1x128xi32>
    %18 = arith.cmpi eq, %14, %17 : vector<1x128xi32>
    %19 = arith.ori %16, %18 : vector<1x128xi1>
    %c5_i32 = arith.constant 5 : i32
    %20 = vector.broadcast %c5_i32 : i32 to vector<1x128xi32>
    %21 = arith.cmpi eq, %14, %20 : vector<1x128xi32>
    %22 = arith.ori %19, %21 : vector<1x128xi1>
    %c10_i32 = arith.constant 10 : i32
    %23 = vector.broadcast %c10_i32 : i32 to vector<1x128xi32>
    %24 = arith.cmpi eq, %14, %23 : vector<1x128xi32>
    %25 = arith.ori %22, %24 : vector<1x128xi1>
    %c11_i32 = arith.constant 11 : i32
    %26 = vector.broadcast %c11_i32 : i32 to vector<1x128xi32>
    %27 = arith.cmpi eq, %14, %26 : vector<1x128xi32>
    %28 = arith.ori %25, %27 : vector<1x128xi1>
    %c12_i32 = arith.constant 12 : i32
    %29 = vector.broadcast %c12_i32 : i32 to vector<1x128xi32>
    %30 = arith.cmpi eq, %14, %29 : vector<1x128xi32>
    %31 = arith.ori %28, %30 : vector<1x128xi1>
    %c6_i32 = arith.constant 6 : i32
    %32 = vector.broadcast %c6_i32 : i32 to vector<1x128xi32>
    %33 = arith.cmpi eq, %14, %32 : vector<1x128xi32>
    %c13_i32 = arith.constant 13 : i32
    %34 = vector.broadcast %c13_i32 : i32 to vector<1x128xi32>
    %35 = arith.cmpi eq, %14, %34 : vector<1x128xi32>
    %36 = arith.ori %33, %35 : vector<1x128xi1>
    %c6_i32_9 = arith.constant 6 : i32
    %37 = vector.broadcast %c6_i32_9 : i32 to vector<1x128xi32>
    %38 = arith.cmpi eq, %14, %37 : vector<1x128xi32>
    %39 = arith.extui %38 : vector<1x128xi1> to vector<1x128xi32>
    %40 = arith.sitofp %39 : vector<1x128xi32> to vector<1x128xf32>
    %c13_i32_10 = arith.constant 13 : i32
    %41 = vector.broadcast %c13_i32_10 : i32 to vector<1x128xi32>
    %42 = arith.cmpi eq, %14, %41 : vector<1x128xi32>
    %43 = arith.extui %42 : vector<1x128xi1> to vector<1x128xi32>
    %44 = arith.sitofp %43 : vector<1x128xi32> to vector<1x128xf32>
    %c0_i32 = arith.constant 0 : i32
    %45 = vector.broadcast %c0_i32 : i32 to vector<1x128xi32>
    %46 = arith.cmpi eq, %14, %45 : vector<1x128xi32>
    %c7_i32 = arith.constant 7 : i32
    %47 = vector.broadcast %c7_i32 : i32 to vector<1x128xi32>
    %48 = arith.cmpi eq, %14, %47 : vector<1x128xi32>
    %49 = arith.ori %46, %48 : vector<1x128xi1>
    %50 = arith.extui %49 : vector<1x128xi1> to vector<1x128xi32>
    %51 = arith.sitofp %50 : vector<1x128xi32> to vector<1x128xf32>
    %c1_i32 = arith.constant 1 : i32
    %52 = vector.broadcast %c1_i32 : i32 to vector<1x128xi32>
    %53 = arith.cmpi eq, %14, %52 : vector<1x128xi32>
    %c8_i32 = arith.constant 8 : i32
    %54 = vector.broadcast %c8_i32 : i32 to vector<1x128xi32>
    %55 = arith.cmpi eq, %14, %54 : vector<1x128xi32>
    %56 = arith.ori %53, %55 : vector<1x128xi1>
    %57 = arith.extui %56 : vector<1x128xi1> to vector<1x128xi32>
    %58 = arith.sitofp %57 : vector<1x128xi32> to vector<1x128xf32>
    %c0_11 = arith.constant 0 : index
    %c0_12 = arith.constant 0 : index
    %59 = vector.load %arg5[%c0_11, %c0_12] : memref<1x128xf32, #tpu.memory_space<vmem>>, vector<1x128xf32>
    %c0_13 = arith.constant 0 : index
    %c0_14 = arith.constant 0 : index
    %60 = vector.load %arg6[%c0_13, %c0_14] : memref<1x128xf32, #tpu.memory_space<vmem>>, vector<1x128xf32>
    %c0_15 = arith.constant 0 : index
    %c0_16 = arith.constant 0 : index
    %61 = vector.load %arg7[%c0_15, %c0_16] : memref<256x8xf32, #tpu.memory_space<vmem>>, vector<256x1xf32>
    %62 = vector.broadcast %61 : vector<256x1xf32> to vector<256x128xf32>
    %63 = vector.broadcast %51 : vector<1x128xf32> to vector<256x128xf32>
    %64 = arith.mulf %62, %63 : vector<256x128xf32>
    %65 = vector.broadcast %60 : vector<1x128xf32> to vector<256x128xf32>
    %66 = arith.addf %65, %64 : vector<256x128xf32>
    %c0_17 = arith.constant 0 : index
    %c1 = arith.constant 1 : index
    %67 = vector.load %arg7[%c0_17, %c1] : memref<256x8xf32, #tpu.memory_space<vmem>>, vector<256x1xf32>
    %68 = vector.broadcast %67 : vector<256x1xf32> to vector<256x128xf32>
    %69 = vector.broadcast %58 : vector<1x128xf32> to vector<256x128xf32>
    %70 = arith.mulf %68, %69 : vector<256x128xf32>
    %71 = arith.addf %66, %70 : vector<256x128xf32>
    %72 = math.exp %13 : vector<256x128xf32>
    %73 = vector.broadcast %59 : vector<1x128xf32> to vector<256x128xf32>
    %74 = arith.mulf %72, %73 : vector<256x128xf32>
    %75 = vector.broadcast %59 : vector<1x128xf32> to vector<256x128xf32>
    %76 = arith.mulf %13, %75 : vector<256x128xf32>
    %77 = arith.addf %76, %71 : vector<256x128xf32>
    %78 = vector.shape_cast %31 : vector<1x128xi1> to vector<1x128xi1>
    %79 = vector.broadcast %78 : vector<1x128xi1> to vector<256x128xi1>
    %80 = arith.select %79, %74, %77 : vector<256x128xi1>, vector<256x128xf32>
    %cst_18 = arith.constant 7.853900e-01 : f32
    %81 = vector.broadcast %cst_18 : f32 to vector<256x128xf32>
    %82 = arith.subf %80, %81 : vector<256x128xf32>
    %cst_19 = arith.constant 3.14159274 : f32
    %83 = vector.broadcast %cst_19 : f32 to vector<256x128xf32>
    %84 = arith.divf %82, %83 : vector<256x128xf32>
    %85 = math.floor %84 : vector<256x128xf32>
    %cst_20 = arith.constant 3.14159274 : f32
    %86 = vector.broadcast %cst_20 : f32 to vector<256x128xf32>
    %87 = arith.mulf %85, %86 : vector<256x128xf32>
    %88 = arith.subf %82, %87 : vector<256x128xf32>
    %89 = vector.extract_strided_slice %13 {offsets = [0, 17], sizes = [256, 1], strides = [1, 1]} : vector<256x128xf32> to vector<256x1xf32>
    %90 = vector.extract_strided_slice %13 {offsets = [0, 16], sizes = [256, 1], strides = [1, 1]} : vector<256x128xf32> to vector<256x1xf32>
    %91 = arith.cmpf ogt, %89, %90 : vector<256x1xf32>
    %92 = arith.extui %91 : vector<256x1xi1> to vector<256x1xi32>
    %93 = arith.sitofp %92 : vector<256x1xi32> to vector<256x1xf32>
    %94 = vector.extract_strided_slice %13 {offsets = [0, 19], sizes = [256, 1], strides = [1, 1]} : vector<256x128xf32> to vector<256x1xf32>
    %95 = vector.extract_strided_slice %13 {offsets = [0, 18], sizes = [256, 1], strides = [1, 1]} : vector<256x128xf32> to vector<256x1xf32>
    %96 = arith.cmpf ogt, %94, %95 : vector<256x1xf32>
    %97 = arith.extui %96 : vector<256x1xi1> to vector<256x1xi32>
    %98 = arith.sitofp %97 : vector<256x1xi32> to vector<256x1xf32>
    %cst_21 = arith.constant 7.853900e-01 : f32
    %99 = vector.broadcast %cst_21 : f32 to vector<256x128xf32>
    %100 = arith.addf %88, %99 : vector<256x128xf32>
    %101 = vector.broadcast %93 : vector<256x1xf32> to vector<256x128xf32>
    %102 = vector.broadcast %40 : vector<1x128xf32> to vector<256x128xf32>
    %103 = arith.mulf %101, %102 : vector<256x128xf32>
    %104 = vector.broadcast %98 : vector<256x1xf32> to vector<256x128xf32>
    %105 = vector.broadcast %44 : vector<1x128xf32> to vector<256x128xf32>
    %106 = arith.mulf %104, %105 : vector<256x128xf32>
    %107 = arith.addf %103, %106 : vector<256x128xf32>
    %cst_22 = arith.constant 3.14159274 : f32
    %108 = vector.broadcast %cst_22 : f32 to vector<256x128xf32>
    %109 = arith.mulf %108, %107 : vector<256x128xf32>
    %110 = arith.addf %100, %109 : vector<256x128xf32>
    %111 = vector.shape_cast %36 : vector<1x128xi1> to vector<1x128xi1>
    %112 = vector.broadcast %111 : vector<1x128xi1> to vector<256x128xi1>
    %113 = arith.select %112, %110, %80 : vector<256x128xi1>, vector<256x128xf32>
    %114 = vector.extract_strided_slice %113 {offsets = [0, 0], sizes = [256, 16], strides = [1, 1]} : vector<256x128xf32> to vector<256x16xf32>
    %c0_23 = arith.constant 0 : index
    %c0_24 = arith.constant 0 : index
    %115 = vector.load %arg8[%c0_23, %c0_24] : memref<256x16xf32, #tpu.memory_space<vmem>>, vector<256x16xf32>
    tpu.vector_store %arg8[%c0_23, %c0_24], %114 {strides = array<i32>} : memref<256x16xf32, #tpu.memory_space<vmem>>, vector<256x16xf32>,
    return
  }
  func.func @transform_0(%arg0: i32) -> (i32, i32) {
    %c0_i32 = arith.constant 0 : i32
    %c0_i32_0 = arith.constant 0 : i32
    return %arg0, %c0_i32 : i32, i32
  }
  func.func @transform_1(%arg0: i32) -> (i32, i32) {
    %c0_i32 = arith.constant 0 : i32
    %c0_i32_0 = arith.constant 0 : i32
    %c0_i32_1 = arith.constant 0 : i32
    return %c0_i32, %c0_i32_0 : i32, i32
  }
  func.func @transform_2(%arg0: i32) -> (i32, i32) {
    %c0_i32 = arith.constant 0 : i32
    %c0_i32_0 = arith.constant 0 : i32
    %c0_i32_1 = arith.constant 0 : i32
    return %c0_i32, %c0_i32_0 : i32, i32
  }
  func.func @transform_3(%arg0: i32) -> (i32, i32) {
    %c0_i32 = arith.constant 0 : i32
    %c0_i32_0 = arith.constant 0 : i32
    %c0_i32_1 = arith.constant 0 : i32
    return %c0_i32, %c0_i32_0 : i32, i32
  }
  func.func @transform_4(%arg0: i32) -> (i32, i32) {
    %c0_i32 = arith.constant 0 : i32
    %c0_i32_0 = arith.constant 0 : i32
    %c0_i32_1 = arith.constant 0 : i32
    return %c0_i32, %c0_i32_0 : i32, i32
  }
  func.func @transform_5(%arg0: i32) -> (i32, i32) {
    %c0_i32 = arith.constant 0 : i32
    %c0_i32_0 = arith.constant 0 : i32
    %c0_i32_1 = arith.constant 0 : i32
    return %c0_i32, %c0_i32_0 : i32, i32
  }
  func.func @transform_6(%arg0: i32) -> (i32, i32) {
    %c1_i32 = arith.constant 1 : i32
    %c0_i32 = arith.constant 0 : i32
    %0 = arith.cmpi eq, %c1_i32, %c0_i32 : i32
    %c1_i32_0 = arith.constant 1 : i32
    %1 = arith.select %0, %c1_i32_0, %c1_i32 : i32
    %2 = arith.remsi %arg0, %1 : i32
    %c0_i32_1 = arith.constant 0 : i32
    %3 = arith.cmpi ne, %2, %c0_i32_1 : i32
    %c0_i32_2 = arith.constant 0 : i32
    %4 = arith.cmpi slt, %2, %c0_i32_2 : i32
    %c0_i32_3 = arith.constant 0 : i32
    %5 = arith.cmpi slt, %1, %c0_i32_3 : i32
    %6 = arith.xori %4, %5 : i1
    %7 = arith.andi %6, %3 : i1
    %8 = arith.addi %2, %1 : i32
    %9 = arith.select %7, %8, %2 : i32
    %c0_i32_4 = arith.constant 0 : i32
    %c0_i32_5 = arith.constant 0 : i32
    return %9, %c0_i32_4 : i32, i32
  }
  func.func @transform_7(%arg0: i32) -> (i32, i32) {
    %c0_i32 = arith.constant 0 : i32
    %c0_i32_0 = arith.constant 0 : i32
    return %arg0, %c0_i32 : i32, i32
  }
}

</mosaic_0001>

<bundles_post_ra>
// kernel: det_head_forward.1
= control target key start
LH: loop header
LB: loop body
LE: loop exit
PB: predicated region body
PF: predicated region fallthrough
CT: control target
= control target key end

     0   :  { %s5571_s24 = smov 0   ;;  %s8398_s0 = inlined_call_operand.vmem [shape: bf16[512,384], index: 0, kind: input, shape index: {}]   ;;  %s8399_s1 = inlined_call_operand.vmem [shape: bf16[384,512], index: 1, kind: input, shape index: {}]   ;;  %s8400_s2 = inlined_call_operand.vmem [shape: f32[1,512], index: 2, kind: input, shape index: {}]   ;;  %s8401_s3 = inlined_call_operand.vmem [shape: bf16[384,128], index: 3, kind: input, shape index: {}]   ;;  %s8402_s4 = inlined_call_operand.vmem [shape: f32[1,128], index: 4, kind: input, shape index: {}]   ;;  %s8403_s5 = inlined_call_operand.vmem [shape: f32[1,128], index: 5, kind: input, shape index: {}]   ;;  %s8404_s6 = inlined_call_operand.vmem [shape: f32[256,8], index: 6, kind: input, shape index: {}]   ;;  %s8405_s7 = inlined_call_operand.vmem [shape: f32[512,16], index: 7, kind: output, shape index: {}]  }
   0x1 LB: > { %s4308_s25 = sadd.s32 4294967295, %s5523_s24   ;;  %p4312_p0 = scmp.ge.s32.totalorder %s5523_s24, 1  ;;  %s5523_s24 = sphi %s5571_s24, %s17_s24  }
   0x2   : > { %p239_p1 = scmp.lt.s32.totalorder %s5523_s24, 3 }
   0x4   : > { %p240_p2 = pnand %p4312_p0, %p239_p1 }
   0x6   : > { %243 = sbr.rel (%p240_p2) target bundleno = 1109 (0x455), region = 48 }
   0xd   : > { %v5219_v0 = vld [vmem:[%s8399_s1 + $0x4] ss:$16 sps:$4 sm:$0xff]   ;;  %v5221_v1 = vld [vmem:[%s8399_s1 + $0xc] ss:$16 sps:$4 sm:$0xff]   ;;  %v5223_v2 = vld [vmem:[%s8399_s1] ss:$16 sps:$4 sm:$0xff]  }
   0xe   : > { %1204 = vmatprep.subr.bf16.mxu0 %v5219_v0  ;;  %v5224_v3 = vld [vmem:[%s8399_s1 + $0x8] ss:$16 sps:$4 sm:$0xff]   ;;  %1590 = vmatprep.subr.bf16.mxu1 %v5221_v1  ;;  %v5225_v4 = vld [vmem:[%s8399_s1 + $0x24] ss:$16 sps:$4 sm:$0xff]   ;;  %v5227_v5 = vld [vmem:[%s8399_s1 + $0x2c] ss:$16 sps:$4 sm:$0xff]  }
   0xf   : > { %1205 = vmatpush1.bf16.msra.mxu0 %v5223_v2  ;;  %1591 = vmatpush1.bf16.msra.mxu1 %v5224_v3  ;;  %v5229_v6 = vld [vmem:[%s8399_s1 + $0x20] ss:$16 sps:$4 sm:$0xff]   ;;  %v5230_v7 = vld [vmem:[%s8399_s1 + $0x28] ss:$16 sps:$4 sm:$0xff]   ;;  %v5231_v8 = vld [vmem:[%s8399_s1 + $0x44] ss:$16 sps:$4 sm:$0xff]  }
  0x10   : > { %1206 = vmatprep.subr.bf16.mxu0 %v5225_v4  ;;  %1592 = vmatprep.subr.bf16.mxu1 %v5227_v5  ;;  %v5233_v9 = vld [vmem:[%s8399_s1 + $0x4c] ss:$16 sps:$4 sm:$0xff]   ;;  %v5235_v10 = vld [vmem:[%s8399_s1 + $0x40] ss:$16 sps:$4 sm:$0xff]   ;;  %v5236_v11 = vld [vmem:[%s8399_s1 + $0x48] ss:$16 sps:$4 sm:$0xff]  }
  0x11   : > { %v5237_v12 = vld [vmem:[%s8399_s1 + $0x64] ss:$16 sps:$4 sm:$0xff]   ;;  %v5239_v13 = vld [vmem:[%s8399_s1 + $0x6c] ss:$16 sps:$4 sm:$0xff]   ;;  %v5241_v14 = vld [vmem:[%s8399_s1 + $0x60] ss:$16 sps:$4 sm:$0xff]  }
  0x12   : > { %v5242_v15 = vld [vmem:[%s8399_s1 + $0x68] ss:$16 sps:$4 sm:$0xff]   ;;  %v5243_v16 = vld [vmem:[%s8399_s1 + $0x84] ss:$16 sps:$4 sm:$0xff]   ;;  %v5245_v17 = vld [vmem:[%s8399_s1 + $0x8c] ss:$16 sps:$4 sm:$0xff]  }
  0x13   : > { %1207 = vmatpush1.bf16.msra.mxu0 %v5229_v6  ;;  %1593 = vmatpush1.bf16.msra.mxu1 %v5230_v7  ;;  %v5247_v18 = vld [vmem:[%s8399_s1 + $0x80] ss:$16 sps:$4 sm:$0xff]   ;;  %v5248_v19 = vld [vmem:[%s8399_s1 + $0x88] ss:$16 sps:$4 sm:$0xff]   ;;  %v5249_v20 = vld [vmem:[%s8399_s1 + $0xa4] ss:$16 sps:$4 sm:$0xff]  }
  0x14   : > { %1208 = vmatprep.subr.bf16.mxu0 %v5231_v8  ;;  %1594 = vmatprep.subr.bf16.mxu1 %v5233_v9  ;;  %v5251_v21 = vld [vmem:[%s8399_s1 + $0xac] ss:$16 sps:$4 sm:$0xff]   ;;  %v5253_v22 = vld [vmem:[%s8399_s1 + $0xa0] ss:$16 sps:$4 sm:$0xff]   ;;  %v5254_v23 = vld [vmem:[%s8399_s1 + $0xa8] ss:$16 sps:$4 sm:$0xff]  }
  0x15   : > { %v5255_v24 = vld [vmem:[%s8399_s1 + $0xc4] ss:$16 sps:$4 sm:$0xff]   ;;  %v5257_v25 = vld [vmem:[%s8399_s1 + $0xcc] ss:$16 sps:$4 sm:$0xff]   ;;  %v5259_v26 = vld [vmem:[%s8399_s1 + $0xc0] ss:$16 sps:$4 sm:$0xff]  }
  0x16   : > { %v5260_v27 = vld [vmem:[%s8399_s1 + $0xc8] ss:$16 sps:$4 sm:$0xff]   ;;  %v5261_v28 = vld [vmem:[%s8399_s1 + $0xe4] ss:$16 sps:$4 sm:$0xff]   ;;  %v5263_v29 = vld [vmem:[%s8399_s1 + $0xec] ss:$16 sps:$4 sm:$0xff]  }
  0x17   : > { %1209 = vmatpush1.bf16.msra.mxu0 %v5235_v10  ;;  %1595 = vmatpush1.bf16.msra.mxu1 %v5236_v11  ;;  %s4313_s21 = sshll.u32 %s4308_s25, 5  ;;  %v5265_v30 = vld [vmem:[%s8399_s1 + $0xe0] ss:$16 sps:$4 sm:$0xff]   ;;  %v5266_v31 = vld [vmem:[%s8399_s1 + $0xe8] ss:$16 sps:$4 sm:$0xff]   ;;  %v8406_v3 = vmov 0  }
  0x18   : > { %1210 = vmatprep.subr.bf16.mxu0 %v5237_v12  ;;  %1596 = vmatprep.subr.bf16.mxu1 %v5239_v13  ;;  %v5267_v32 = vld [vmem:[%s8399_s1 + $0x104] ss:$16 sps:$4 sm:$0xff]   ;;  %p273_p3 = scmp.lt.s32.totalorder %s4313_s21, 63  ;;  %v5269_v33 = vld [vmem:[%s8399_s1 + $0x10c] ss:$16 sps:$4 sm:$0xff]   ;;  %s5530_s25 = smov 1  }
  0x19   : > { %v5271_v34 = vld [vmem:[%s8399_s1 + $0x100] ss:$16 sps:$4 sm:$0xff]   ;;  %v5272_v35 = vld [vmem:[%s8399_s1 + $0x108] ss:$16 sps:$4 sm:$0xff]   ;;  %v5273_v36 = vld [vmem:[%s8399_s1 + $0x124] ss:$16 sps:$4 sm:$0xff]   ;;  %5029 = vset.pattern.permute.xlu1 %v8406_v3  ;;  %5028 = vset.pattern.permute.xlu0 %v8406_v3 }
  0x1a   : > { %s8746_s21 = smov (!%p273_p3, %s4313_s21), 63  ;;  %v5275_v37 = vld [vmem:[%s8399_s1 + $0x12c] ss:$16 sps:$4 sm:$0xff]   ;;  %v5277_v38 = vld [vmem:[%s8399_s1 + $0x120] ss:$16 sps:$4 sm:$0xff]  }
  0x1b   : > { %1211 = vmatpush1.bf16.msra.mxu0 %v5241_v14  ;;  %1597 = vmatpush1.bf16.msra.mxu1 %v5242_v15  ;;  %v5278_v39 = vld [vmem:[%s8399_s1 + $0x128] ss:$16 sps:$4 sm:$0xff]   ;;  %v5279_v40 = vld [vmem:[%s8399_s1 + $0x144] ss:$16 sps:$4 sm:$0xff]   ;;  %s5013_s23 = smul.u32 12, %s8746_s21  ;;  %s4316_s11 = sshll.u32 %s8746_s21, 3 }
  0x1c   : > { %1212 = vmatprep.subr.bf16.mxu0 %v5243_v16  ;;  %1598 = vmatprep.subr.bf16.mxu1 %v5245_v17  ;;  %v5281_v41 = vld [vmem:[%s8399_s1 + $0x14c] ss:$16 sps:$4 sm:$0xff]   ;;  %v5283_v42 = vld [vmem:[%s8399_s1 + $0x140] ss:$16 sps:$4 sm:$0xff]   ;;  %v5284_v43 = vld [vmem:[%s8399_s1 + $0x148] ss:$16 sps:$4 sm:$0xff]   ;;  %s8010_s13 = scalar_lea.vmem %s8405_s7, %s4316_s11 }
  0x1d   : > { %v5285_v44 = vld [vmem:[%s8399_s1 + $0x164] ss:$16 sps:$4 sm:$0xff]   ;;  %s5722_s12 = scalar_lea.vmem %s8398_s0, %s5013_s23  ;;  %v5287_v45 = vld [vmem:[%s8399_s1 + $0x16c] ss:$16 sps:$4 sm:$0xff]   ;;  %v5289_v46 = vld [vmem:[%s8399_s1 + $0x160] ss:$16 sps:$4 sm:$0xff]  }
  0x1e   : > { %v5290_v47 = vld [vmem:[%s8399_s1 + $0x168] ss:$16 sps:$4 sm:$0xff]   ;;  %v5317_v48 = vld [vmem:[%s5722_s12 + $0x4] ss:$12 sps:$4 sm:$0xff]   ;;  %v5293_v50 = vld [vmem:[%s8399_s1 + $0x18c] ss:$16 sps:$4 sm:$0xff]  }
  0x1f   : > { %1213 = vmatpush1.bf16.msra.mxu0 %v5247_v18  ;;  %1599 = vmatpush1.bf16.msra.mxu1 %v5248_v19  ;;  %v5291_v49 = vld [vmem:[%s8399_s1 + $0x184] ss:$16 sps:$4 sm:$0xff]   ;;  %v5295_v51 = vld [vmem:[%s8399_s1 + $0x180] ss:$16 sps:$4 sm:$0xff]   ;;  %v5296_v52 = vld [vmem:[%s8399_s1 + $0x188] ss:$16 sps:$4 sm:$0xff]  }
  0x20   : > { %1214 = vmatprep.subr.bf16.mxu0 %v5249_v20  ;;  %1600 = vmatprep.subr.bf16.mxu1 %v5251_v21  ;;  %v5297_v53 = vld [vmem:[%s8399_s1 + $0x1a4] ss:$16 sps:$4 sm:$0xff]   ;;  %v5299_v54 = vld [vmem:[%s8399_s1 + $0x1ac] ss:$16 sps:$4 sm:$0xff]   ;;  %v5301_v55 = vld [vmem:[%s8399_s1 + $0x1a0] ss:$16 sps:$4 sm:$0xff]  }
  0x21   : > { %1236 = vmatprep.mubr.bf16.mxu0 %v5317_v48  ;;  %1622 = vmatprep.mubr.bf16.mxu1 %v5317_v48  ;;  %v5302_v56 = vld [vmem:[%s8399_s1 + $0x1a8] ss:$16 sps:$4 sm:$0xff]   ;;  %v5303_v57 = vld [vmem:[%s8399_s1 + $0x1c4] ss:$16 sps:$4 sm:$0xff]   ;;  %v5305_v58 = vld [vmem:[%s8399_s1 + $0x1cc] ss:$16 sps:$4 sm:$0xff]  }
  0x22   : > { %v5307_v59 = vld [vmem:[%s8399_s1 + $0x1c0] ss:$16 sps:$4 sm:$0xff]   ;;  %v5308_v60 = vld [vmem:[%s8399_s1 + $0x1c8] ss:$16 sps:$4 sm:$0xff]   ;;  %v5309_v61 = vld [vmem:[%s8399_s1 + $0x1e4] ss:$16 sps:$4 sm:$0xff]  }
  0x23   : > { %1215 = vmatpush1.bf16.msra.mxu0 %v5253_v22  ;;  %1601 = vmatpush1.bf16.msra.mxu1 %v5254_v23  ;;  %v5311_v62 = vld [vmem:[%s8399_s1 + $0x1ec] ss:$16 sps:$4 sm:$0xff]   ;;  %v5313_v63 = vld [vmem:[%s8399_s1 + $0x1e0] ss:$16 sps:$4 sm:$0xff]   ;;  %v5314_v0 = vld [vmem:[%s8399_s1 + $0x1e8] ss:$16 sps:$4 sm:$0xff]  }
  0x24   : > { %1216 = vmatprep.subr.bf16.mxu0 %v5255_v24  ;;  %1602 = vmatprep.subr.bf16.mxu1 %v5257_v25  ;;  %v5320_v1 = vld [vmem:[%s8399_s1 + $0x204] ss:$16 sps:$4 sm:$0xff]   ;;  %v5315_v2 = vld [vmem:[%s5722_s12] ss:$12 sps:$4 sm:$0xff]   ;;  %v5321_v5 = vld [vmem:[%s5722_s12 + $0x1c] ss:$12 sps:$4 sm:$0xff]  }
  0x25   : > { %v5318_v4 = vld [vmem:[%s8399_s1 + $0x200] ss:$16 sps:$4 sm:$0xff]   ;;  %v5364_v6 = vld [vmem:[%s8399_s1 + $0x20c] ss:$16 sps:$4 sm:$0xff]   ;;  %v5329_v7 = vld [vmem:[%s8399_s1 + $0x224] ss:$16 sps:$4 sm:$0xff]  }
  0x26   : > { %v5362_v8 = vld [vmem:[%s8399_s1 + $0x208] ss:$16 sps:$4 sm:$0xff]   ;;  %v5327_v9 = vld [vmem:[%s8399_s1 + $0x220] ss:$16 sps:$4 sm:$0xff]   ;;  %v5338_v10 = vld [vmem:[%s8399_s1 + $0x244] ss:$16 sps:$4 sm:$0xff]  }
  0x27   : > { %1217 = vmatpush1.bf16.msra.mxu0 %v5259_v26  ;;  %1603 = vmatpush1.bf16.msra.mxu1 %v5260_v27  ;;  %v5374_v11 = vld [vmem:[%s8399_s1 + $0x228] ss:$16 sps:$4 sm:$0xff]   ;;  %v5376_v12 = vld [vmem:[%s8399_s1 + $0x22c] ss:$16 sps:$4 sm:$0xff]   ;;  %v5324_v14 = vld [vmem:[%s5722_s12 + $0x34] ss:$12 sps:$4 sm:$0xff]  }
  0x28   : > { %1218 = vmatprep.subr.bf16.mxu0 %v5261_v28  ;;  %1604 = vmatprep.subr.bf16.mxu1 %v5263_v29  ;;  %v5323_v13 = vld [vmem:[%s5722_s12 + $0x18] ss:$12 sps:$4 sm:$0xff]   ;;  %v5336_v15 = vld [vmem:[%s8399_s1 + $0x240] ss:$16 sps:$4 sm:$0xff]   ;;  %v5386_v18 = vld [vmem:[%s8399_s1 + $0x24c] ss:$16 sps:$4 sm:$0xff]  }
  0x29   : > { %v5347_v16 = vld [vmem:[%s8399_s1 + $0x264] ss:$16 sps:$4 sm:$0xff]   ;;  %v5384_v17 = vld [vmem:[%s8399_s1 + $0x248] ss:$16 sps:$4 sm:$0xff]   ;;  %v5389_v19 = vld [vmem:[%s8399_s1 + $0x26c] ss:$16 sps:$4 sm:$0xff]  }
  0x2a   : > { %v5345_v20 = vld [vmem:[%s8399_s1 + $0x260] ss:$16 sps:$4 sm:$0xff]   ;;  %v5356_v21 = vld [vmem:[%s8399_s1 + $0x284] ss:$16 sps:$4 sm:$0xff]   ;;  %v5387_v22 = vld [vmem:[%s8399_s1 + $0x268] ss:$16 sps:$4 sm:$0xff]  }
  0x2b   : > { %1219 = vmatpush1.bf16.msra.mxu0 %v5265_v30  ;;  %1605 = vmatpush1.bf16.msra.mxu1 %v5266_v31  ;;  %v5326_v23 = vld [vmem:[%s5722_s12 + $0x30] ss:$12 sps:$4 sm:$0xff]   ;;  %v5330_v24 = vld [vmem:[%s5722_s12 + $0x4c] ss:$12 sps:$4 sm:$0xff]   ;;  %v5368_v27 = vld [vmem:[%s8399_s1 + $0x2a4] ss:$16 sps:$4 sm:$0xff]  }
  0x2c   : > { %1220 = vmatprep.subr.bf16.mxu0 %v5267_v32  ;;  %1606 = vmatprep.subr.bf16.mxu1 %v5269_v33  ;;  %v5354_v25 = vld [vmem:[%s8399_s1 + $0x280] ss:$16 sps:$4 sm:$0xff]   ;;  %v5398_v26 = vld [vmem:[%s8399_s1 + $0x28c] ss:$16 sps:$4 sm:$0xff]   ;;  %v5396_v28 = vld [vmem:[%s8399_s1 + $0x288] ss:$16 sps:$4 sm:$0xff]  }
  0x2d   : > { %v5401_v29 = vld [vmem:[%s8399_s1 + $0x2ac] ss:$16 sps:$4 sm:$0xff]   ;;  %v5366_v30 = vld [vmem:[%s8399_s1 + $0x2a0] ss:$16 sps:$4 sm:$0xff]   ;;  %v5332_v31 = vld [vmem:[%s5722_s12 + $0x48] ss:$12 sps:$4 sm:$0xff]  }
  0x2e   : > { %v5380_v32 = vld [vmem:[%s8399_s1 + $0x2c4] ss:$16 sps:$4 sm:$0xff]  }
  0x2f   : > { %1221 = vmatpush1.bf16.msra.mxu0 %v5271_v34  ;;  %1607 = vmatpush1.bf16.msra.mxu1 %v5272_v35  ;;  %v5333_v33 = vld [vmem:[%s5722_s12 + $0x64] ss:$12 sps:$4 sm:$0xff]   ;;  %v5399_v34 = vld [vmem:[%s8399_s1 + $0x2a8] ss:$16 sps:$4 sm:$0xff]  }
  0x30   : > { %1222 = vmatprep.subr.bf16.mxu0 %v5273_v36  ;;  %1608 = vmatprep.subr.bf16.mxu1 %v5275_v37  ;;  %v5378_v35 = vld [vmem:[%s8399_s1 + $0x2c0] ss:$16 sps:$4 sm:$0xff]   ;;  %v5395_v36 = vld [vmem:[%s8399_s1 + $0x2e4] ss:$16 sps:$4 sm:$0xff]   ;;  %v5405_v37 = vld [vmem:[%s8399_s1 + $0x2c8] ss:$16 sps:$4 sm:$0xff]  }
  0x31   : > { %v5350_v48 = vld [vmem:[%s5722_s12 + $0xa8] ss:$12 sps:$4 sm:$0xff]  }
  0x33   : > { %1223 = vmatpush1.bf16.msra.mxu0 %v5277_v38  ;;  %1609 = vmatpush1.bf16.msra.mxu1 %v5278_v39  ;;  %v5407_v38 = vld [vmem:[%s8399_s1 + $0x2cc] ss:$16 sps:$4 sm:$0xff]  }
  0x34   : > { %1224 = vmatprep.subr.bf16.mxu0 %v5279_v40  ;;  %1610 = vmatprep.subr.bf16.mxu1 %v5281_v41  ;;  %v5410_v39 = vld [vmem:[%s8399_s1 + $0x2ec] ss:$16 sps:$4 sm:$0xff]   ;;  %v5393_v40 = vld [vmem:[%s8399_s1 + $0x2e0] ss:$16 sps:$4 sm:$0xff]   ;;  %v5408_v41 = vld [vmem:[%s8399_s1 + $0x2e8] ss:$16 sps:$4 sm:$0xff]  }
  0x37   : > { %1225 = vmatpush1.bf16.msra.mxu0 %v5283_v42  ;;  %1611 = vmatpush1.bf16.msra.mxu1 %v5284_v43  ;;  %v5335_v42 = vld [vmem:[%s5722_s12 + $0x60] ss:$12 sps:$4 sm:$0xff]   ;;  %v5339_v43 = vld [vmem:[%s5722_s12 + $0x7c] ss:$12 sps:$4 sm:$0xff]  }
  0x38   : > { %1226 = vmatprep.subr.bf16.mxu0 %v5285_v44  ;;  %1612 = vmatprep.subr.bf16.mxu1 %v5287_v45  ;;  %v5341_v44 = vld [vmem:[%s5722_s12 + $0x78] ss:$12 sps:$4 sm:$0xff]   ;;  %v5342_v45 = vld [vmem:[%s5722_s12 + $0x94] ss:$12 sps:$4 sm:$0xff]  }
  0x3b   : > { %1227 = vmatpush1.bf16.msra.mxu0 %v5289_v46  ;;  %1613 = vmatpush1.bf16.msra.mxu1 %v5290_v47  ;;  %v5344_v46 = vld [vmem:[%s5722_s12 + $0x90] ss:$12 sps:$4 sm:$0xff]   ;;  %v5348_v47 = vld [vmem:[%s5722_s12 + $0xac] ss:$12 sps:$4 sm:$0xff]  }
  0x3c   : > { %1228 = vmatprep.subr.bf16.mxu0 %v5291_v49  ;;  %1614 = vmatprep.subr.bf16.mxu1 %v5293_v50  ;;  %v5351_v49 = vld [vmem:[%s5722_s12 + $0xc4] ss:$12 sps:$4 sm:$0xff]   ;;  %v5353_v50 = vld [vmem:[%s5722_s12 + $0xc0] ss:$12 sps:$4 sm:$0xff]  }
  0x3f   : > { %1229 = vmatpush1.bf16.msra.mxu0 %v5295_v51  ;;  %1615 = vmatpush1.bf16.msra.mxu1 %v5296_v52  ;;  %v5357_v51 = vld [vmem:[%s5722_s12 + $0xdc] ss:$12 sps:$4 sm:$0xff]   ;;  %v5359_v52 = vld [vmem:[%s5722_s12 + $0xd8] ss:$12 sps:$4 sm:$0xff]  }
  0x40   : > { %1230 = vmatprep.subr.bf16.mxu0 %v5297_v53  ;;  %1616 = vmatprep.subr.bf16.mxu1 %v5299_v54  ;;  %v5360_v53 = vld [vmem:[%s5722_s12 + $0xf4] ss:$12 sps:$4 sm:$0xff]   ;;  %v5365_v54 = vld [vmem:[%s5722_s12 + $0xf0] ss:$12 sps:$4 sm:$0xff]  }
  0x43   : > { %1231 = vmatpush1.bf16.msra.mxu0 %v5301_v55  ;;  %1617 = vmatpush1.bf16.msra.mxu1 %v5302_v56  ;;  %v5369_v55 = vld [vmem:[%s5722_s12 + $0x10c] ss:$12 sps:$4 sm:$0xff]   ;;  %v5371_v56 = vld [vmem:[%s5722_s12 + $0x108] ss:$12 sps:$4 sm:$0xff]  }
  0x44   : > { %1232 = vmatprep.subr.bf16.mxu0 %v5303_v57  ;;  %1618 = vmatprep.subr.bf16.mxu1 %v5305_v58  ;;  %v5372_v57 = vld [vmem:[%s5722_s12 + $0x124] ss:$12 sps:$4 sm:$0xff]   ;;  %v5377_v58 = vld [vmem:[%s5722_s12 + $0x120] ss:$12 sps:$4 sm:$0xff]  }
  0x47   : > { %1233 = vmatpush1.bf16.msra.mxu0 %v5307_v59  ;;  %1619 = vmatpush1.bf16.msra.mxu1 %v5308_v60  ;;  %v5381_v59 = vld [vmem:[%s5722_s12 + $0x13c] ss:$12 sps:$4 sm:$0xff]   ;;  %v5383_v60 = vld [vmem:[%s5722_s12 + $0x138] ss:$12 sps:$4 sm:$0xff]  }
  0x48   : > { %1234 = vmatprep.subr.bf16.mxu0 %v5309_v61  ;;  %1620 = vmatprep.subr.bf16.mxu1 %v5311_v62  ;;  %v5390_v61 = vld [vmem:[%s5722_s12 + $0x154] ss:$12 sps:$4 sm:$0xff]   ;;  %v5392_v62 = vld [vmem:[%s5722_s12 + $0x150] ss:$12 sps:$4 sm:$0xff]  }
  0x4b   : > { %1235 = vmatpush1.bf16.msra.mxu0 %v5313_v63  ;;  %1621 = vmatpush1.bf16.msra.mxu1 %v5314_v0  ;;  %v5402_v63 = vld [vmem:[%s5722_s12 + $0x16c] ss:$12 sps:$4 sm:$0xff]   ;;  %v5404_v0 = vld [vmem:[%s5722_s12 + $0x168] ss:$12 sps:$4 sm:$0xff]  }
  0x4c   : > { %1397 = vmatprep.subr.bf16.mxu0 %v5320_v1  ;;  %1783 = vmatprep.subr.bf16.mxu1 %v5364_v6  ;;  %v5427_v1 = vld [vmem:[%s8401_s3 + $0x40] sm:$0xff]   ;;  %v5430_v6 = vld [vmem:[%s8401_s3 + $0x8] sm:$0xff]  }
  0x4e   : > { %1237 = vmatmul.mubr.bf16.vlgmr.msra.gmra.mrb[0].mxu0 %v5315_v2  ;;  %1623 = vmatmul.mubr.bf16.vlgmr.msra.gmra.mrb[0].mxu1 %v5315_v2  ;;  %v5411_v2 = vld [vmem:[%s5722_s12 + $0x8] ss:$12 sps:$4 sm:$0xff]  }
  0x4f   : > { %1398 = vmatpush1.bf16.msra.mxu0 %v5318_v4  ;;  %1246 = vmatprep.mubr.bf16.mxu0 %v5321_v5  ;;  %v5428_v4 = vld [vmem:[%s8401_s3] sm:$0xff]  }
  0x50   : > { %1632 = vmatprep.mubr.bf16.mxu1 %v5321_v5  ;;  %1399 = vmatprep.subr.bf16.mxu0 %v5329_v7  ;;  %v5429_v5 = vld [vmem:[%s8401_s3 + $0x48] sm:$0xff]   ;;  %v5431_v7 = vld [vmem:[%s8401_s3 + $0x50] sm:$0xff]  }
  0x51   : > { %1784 = vmatpush1.bf16.msra.mxu1 %v5362_v8  ;;  %v5412_v8 = vld [vmem:[%s5722_s12 + $0x20] ss:$12 sps:$4 sm:$0xff]  }
  0x52   : > { %1785 = vmatprep.subr.bf16.mxu1 %v5376_v12  ;;  %v5435_v12 = vld [vmem:[%s8401_s3 + $0x60] sm:$0xff]  }
  0x53   : > { %1400 = vmatpush1.bf16.msra.mxu0 %v5327_v9  ;;  %v5432_v9 = vld [vmem:[%s8401_s3 + $0x10] sm:$0xff]  }
  0x54   : > { %1401 = vmatprep.subr.bf16.mxu0 %v5338_v10  ;;  %v5433_v10 = vld [vmem:[%s8401_s3 + $0x58] sm:$0xff]  }
  0x55   : > { %1786 = vmatpush1.bf16.msra.mxu1 %v5374_v11  ;;  %v5434_v11 = vld [vmem:[%s8401_s3 + $0x18] sm:$0xff]  }
  0x56   : > { %1247 = vmatmul.mubr.bf16.gmra.mrb[4].mxu0 %v5323_v13  ;;  %1633 = vmatmul.mubr.bf16.gmra.mrb[4].mxu1 %v5323_v13  ;;  %v5413_v13 = vld [vmem:[%s5722_s12 + $0x38] ss:$12 sps:$4 sm:$0xff]  }
  0x57   : > { %1256 = vmatprep.mubr.bf16.mxu0 %v5324_v14  ;;  %1642 = vmatprep.mubr.bf16.mxu1 %v5324_v14  ;;  %v5436_v14 = vld [vmem:[%s8401_s3 + $0x20] sm:$0xff]  }
  0x58   : > { %1402 = vmatpush1.bf16.msra.mxu0 %v5336_v15  ;;  %1787 = vmatprep.subr.bf16.mxu1 %v5386_v18  ;;  %v5437_v15 = vld [vmem:[%s8401_s3 + $0x68] sm:$0xff]  }
  0x59   : > { %1403 = vmatprep.subr.bf16.mxu0 %v5347_v16  ;;  %1788 = vmatpush1.bf16.msra.mxu1 %v5384_v17  ;;  %v5414_v16 = vld [vmem:[%s5722_s12 + $0x50] ss:$12 sps:$4 sm:$0xff]   ;;  %v5415_v17 = vld [vmem:[%s5722_s12 + $0x68] ss:$12 sps:$4 sm:$0xff]   ;;  %v5416_v18 = vld [vmem:[%s5722_s12 + $0x80] ss:$12 sps:$4 sm:$0xff]  }
  0x5a   : > { %1789 = vmatprep.subr.bf16.mxu1 %v5389_v19  ;;  %v5417_v19 = vld [vmem:[%s5722_s12 + $0x98] ss:$12 sps:$4 sm:$0xff]  }
  0x5c   : > { %1404 = vmatpush1.bf16.msra.mxu0 %v5345_v20  ;;  %v5418_v20 = vld [vmem:[%s5722_s12 + $0xb0] ss:$12 sps:$4 sm:$0xff]  }
  0x5d   : > { %1405 = vmatprep.subr.bf16.mxu0 %v5356_v21  ;;  %1790 = vmatpush1.bf16.msra.mxu1 %v5387_v22  ;;  %v5419_v21 = vld [vmem:[%s5722_s12 + $0xc8] ss:$12 sps:$4 sm:$0xff]   ;;  %v5420_v22 = vld [vmem:[%s5722_s12 + $0xe0] ss:$12 sps:$4 sm:$0xff]  }
  0x5e   : > { %1257 = vmatmul.mubr.bf16.gmra.mrb[8].mxu0 %v5326_v23  ;;  %1643 = vmatmul.mubr.bf16.gmra.mrb[8].mxu1 %v5326_v23  ;;  %v5421_v23 = vld [vmem:[%s5722_s12 + $0xf8] ss:$12 sps:$4 sm:$0xff]  }
  0x5f   : > { %1266 = vmatprep.mubr.bf16.mxu0 %v5330_v24  ;;  %1652 = vmatprep.mubr.bf16.mxu1 %v5330_v24  ;;  %v5438_v24 = vld [vmem:[%s8401_s3 + $0x28] sm:$0xff]  }
  0x60   : > { %1406 = vmatpush1.bf16.msra.mxu0 %v5354_v25  ;;  %1791 = vmatprep.subr.bf16.mxu1 %v5398_v26  ;;  %v5422_v25 = vld [vmem:[%s5722_s12 + $0x110] ss:$12 sps:$4 sm:$0xff]  }
  0x61   : > { %1407 = vmatprep.subr.bf16.mxu0 %v5368_v27  ;;  %1792 = vmatpush1.bf16.msra.mxu1 %v5396_v28  ;;  %v5439_v26 = vld [vmem:[%s8401_s3 + $0x70] sm:$0xff]   ;;  %v5441_v28 = vld [vmem:[%s8401_s3 + $0x78] sm:$0xff]  }
  0x62   : > { %1793 = vmatprep.subr.bf16.mxu1 %v5401_v29  ;;  %v5440_v27 = vld [vmem:[%s8401_s3 + $0x30] sm:$0xff]   ;;  %v5442_v29 = vld [vmem:[%s8401_s3 + $0x38] sm:$0xff]  }
  0x64   : > { %1408 = vmatpush1.bf16.msra.mxu0 %v5366_v30  ;;  %v5423_v30 = vld [vmem:[%s5722_s12 + $0x128] ss:$12 sps:$4 sm:$0xff]  }
  0x65   : > { %1409 = vmatprep.subr.bf16.mxu0 %v5380_v32  ;;  %1794 = vmatpush1.bf16.msra.mxu1 %v5399_v34  ;;  %v5425_v32 = vld [vmem:[%s5722_s12 + $0x158] ss:$12 sps:$4 sm:$0xff]   ;;  %v6010_v34 = vld [vmem:[%s8404_s6 + $0x10] sm:$0xff] }
  0x66   : > { %1267 = vmatmul.mubr.bf16.gmra.mrb[12].mxu0 %v5332_v31  ;;  %1653 = vmatmul.mubr.bf16.gmra.mrb[12].mxu1 %v5332_v31  ;;  %v5424_v31 = vld [vmem:[%s5722_s12 + $0x140] ss:$12 sps:$4 sm:$0xff]  }
  0x67   : > { %1276 = vmatprep.mubr.bf16.mxu0 %v5333_v33  ;;  %1662 = vmatprep.mubr.bf16.mxu1 %v5333_v33  ;;  %v5426_v33 = vld [vmem:[%s5722_s12 + $0x170] ss:$12 sps:$4 sm:$0xff]  }
  0x68   : > { %1410 = vmatpush1.bf16.msra.mxu0 %v5378_v35  ;;  %1795 = vmatprep.subr.bf16.mxu1 %v5407_v38  ;;  %v6015_v35 = vld [vmem:[%s8404_s6] sm:$0xff]  ;;  %v6034_v38 = vld [vmem:[%s8404_s6 + $0x28] sm:$0xff] }
  0x69   : > { %1411 = vmatprep.subr.bf16.mxu0 %v5395_v36  ;;  %1796 = vmatpush1.bf16.msra.mxu1 %v5405_v37  ;;  %v6022_v36 = vld [vmem:[%s8404_s6 + $0x18] sm:$0xff]  ;;  %v6027_v37 = vld [vmem:[%s8404_s6 + $0x8] sm:$0xff] }
  0x6a   : > { %1797 = vmatprep.subr.bf16.mxu1 %v5410_v39  ;;  %2710 = vperm.xlu1 %5029, %v6010_v34   ;;  %v6039_v39 = vld [vmem:[%s8404_s6 + $0x20] sm:$0xff] }
  0x6b   : > { %2700 = vperm.xlu0 %5028, %v6015_v35  }
  0x6c   : > { %1412 = vmatpush1.bf16.msra.mxu0 %v5393_v40  ;;  %v6046_v40 = vld [vmem:[%s8404_s6 + $0x38] sm:$0xff] }
  0x6d   : > { %1798 = vmatpush1.bf16.msra.mxu1 %v5408_v41  ;;  %4557 = vmatprep.subr.bf16.mxu0 %v5427_v1  ;;  %v6051_v41 = vld [vmem:[%s8404_s6 + $0x30] sm:$0xff] }
  0x6e   : > { %1277 = vmatmul.mubr.bf16.gmra.mrb[16].mxu0 %v5335_v42  ;;  %1663 = vmatmul.mubr.bf16.gmra.mrb[16].mxu1 %v5335_v42  ;;  %v6058_v42 = vld [vmem:[%s8404_s6 + $0x48] sm:$0xff] }
  0x6f   : > { %1286 = vmatprep.mubr.bf16.mxu0 %v5339_v43  ;;  %1672 = vmatprep.mubr.bf16.mxu1 %v5339_v43  ;;  %v6063_v43 = vld [vmem:[%s8404_s6 + $0x40] sm:$0xff] }
  0x70   : > { %4741 = vmatprep.subr.bf16.mxu1 %v5427_v1  ;;  %2715 = vperm.xlu1 %5029, %v6022_v36  }
  0x71   : > { %2705 = vperm.xlu0 %5028, %v6027_v37  }
  0x74   : > { %2725 = vperm.xlu1 %5029, %v6034_v38  }
  0x75   : > { %2720 = vperm.xlu0 %5028, %v6039_v39  }
  0x76   : > { %1287 = vmatmul.mubr.bf16.gmra.mrb[20].mxu0 %v5341_v44  ;;  %1673 = vmatmul.mubr.bf16.gmra.mrb[20].mxu1 %v5341_v44  ;;  %v6068_v44 = vld [vmem:[%s8401_s3 + $0x80] sm:$0xff]  }
  0x77   : > { %1296 = vmatprep.mubr.bf16.mxu0 %v5342_v45  ;;  %1682 = vmatprep.mubr.bf16.mxu1 %v5342_v45  ;;  %v6076_v45 = vld [vmem:[%s8404_s6 + $0x58] sm:$0xff] }
  0x78   : > { %2735 = vperm.xlu1 %5029, %v6046_v40  }
  0x79   : > { %2730 = vperm.xlu0 %5028, %v6051_v41  }
  0x7c   : > { %2745 = vperm.xlu1 %5029, %v6058_v42  }
  0x7d   : > { %2740 = vperm.xlu0 %5028, %v6063_v43  }
  0x7e   : > { %1297 = vmatmul.mubr.bf16.gmra.mrb[24].mxu0 %v5344_v46  ;;  %1683 = vmatmul.mubr.bf16.gmra.mrb[24].mxu1 %v5344_v46  ;;  %v6081_v46 = vld [vmem:[%s8404_s6 + $0x50] sm:$0xff] }
  0x7f   : > { %1306 = vmatprep.mubr.bf16.mxu0 %v5348_v47  ;;  %1692 = vmatprep.mubr.bf16.mxu1 %v5348_v47  ;;  %v8407_v47 = vlaneseq }
  0x80   : > { %2755 = vperm.xlu1 %5029, %v6076_v45  }
  0x81   : > { %2750 = vperm.xlu0 %5028, %v6081_v46  }
  0x86   : > { %1307 = vmatmul.mubr.bf16.gmra.mrb[28].mxu0 %v5350_v48  ;;  %1693 = vmatmul.mubr.bf16.gmra.mrb[28].mxu1 %v5350_v48  ;;  %v6088_v48 = vld [vmem:[%s8404_s6 + $0x68] sm:$0xff] }
  0x87   : > { %1316 = vmatprep.mubr.bf16.mxu0 %v5351_v49  ;;  %1702 = vmatprep.mubr.bf16.mxu1 %v5351_v49  ;;  %v6093_v49 = vld [vmem:[%s8404_s6 + $0x60] sm:$0xff] }
  0x88   : > { %2765 = vperm.xlu1 %5029, %v6088_v48   ;;  %2760 = vperm.xlu0 %5028, %v6093_v49  }
  0x8e   : > { %1317 = vmatmul.mubr.bf16.gmra.mrb[32].mxu0 %v5353_v50  ;;  %1703 = vmatmul.mubr.bf16.gmra.mrb[32].mxu1 %v5353_v50  ;;  %v6098_v50 = vshrl.u32 %v8407_v47, 7 }
  0x8f   : > { %1326 = vmatprep.mubr.bf16.mxu0 %v5357_v51  ;;  %1712 = vmatprep.mubr.bf16.mxu1 %v5357_v51  ;;  %v6103_v51 = vld [vmem:[%s8404_s6 + $0x78] sm:$0xff] }
  0x90   : > { %2775 = vperm.xlu1 %5029, %v6103_v51  }
  0x96   : > { %1327 = vmatmul.mubr.bf16.gmra.mrb[36].mxu0 %v5359_v52  ;;  %1713 = vmatmul.mubr.bf16.gmra.mrb[36].mxu1 %v5359_v52  ;;  %v6108_v52 = vld [vmem:[%s8404_s6 + $0x70] sm:$0xff] }
  0x97   : > { %1336 = vmatprep.mubr.bf16.mxu0 %v5360_v53  ;;  %1722 = vmatprep.mubr.bf16.mxu1 %v5360_v53  ;;  %v450_v53 = vsub.s32 0, %v6098_v50 }
  0x98   : > { %2770 = vperm.xlu0 %5028, %v6108_v52  }
  0x9e   : > { %1337 = vmatmul.mubr.bf16.gmra.mrb[40].mxu0 %v5365_v54  ;;  %1723 = vmatmul.mubr.bf16.gmra.mrb[40].mxu1 %v5365_v54  ;;  %v458_v54 = vsub.s32 2, %v6098_v50 }
  0x9f   : > { %1346 = vmatprep.mubr.bf16.mxu0 %v5369_v55  ;;  %1732 = vmatprep.mubr.bf16.mxu1 %v5369_v55  ;;  %v6117_v55 = vld [vmem:[%s8404_s6 + $0x88] sm:$0xff] }
  0xa0   : > { %2785 = vperm.xlu1 %5029, %v6117_v55  }
  0xa6   : > { %1347 = vmatmul.mubr.bf16.gmra.mrb[44].mxu0 %v5371_v56  ;;  %1733 = vmatmul.mubr.bf16.gmra.mrb[44].mxu1 %v5371_v56  ;;  %v6122_v56 = vld [vmem:[%s8404_s6 + $0x80] sm:$0xff] }
  0xa7   : > { %1356 = vmatprep.mubr.bf16.mxu0 %v5372_v57  ;;  %1742 = vmatprep.mubr.bf16.mxu1 %v5372_v57  ;;  %v446_v57 = vld [vmem:[%s8400_s2] sm:$0xf] }
  0xa8   : > { %2780 = vperm.xlu0 %5028, %v6122_v56  }
  0xae   : > { %1357 = vmatmul.mubr.bf16.gmra.mrb[48].mxu0 %v5377_v58  ;;  %1743 = vmatmul.mubr.bf16.gmra.mrb[48].mxu1 %v5377_v58  ;;  %v454_v58 = vsub.s32 1, %v6098_v50 }
  0xaf   : > { %1366 = vmatprep.mubr.bf16.mxu0 %v5381_v59  ;;  %1752 = vmatprep.mubr.bf16.mxu1 %v5381_v59  ;;  %v6130_v59 = vrot.slane %v446_v57, %v450_v53 }
  0xb6   : > { %1367 = vmatmul.mubr.bf16.gmra.mrb[52].mxu0 %v5383_v60  ;;  %1753 = vmatmul.mubr.bf16.gmra.mrb[52].mxu1 %v5383_v60  ;;  %v6132_v60 = vrot.slane %v446_v57, %v458_v54 }
  0xb7   : > { %1376 = vmatprep.mubr.bf16.mxu0 %v5390_v61  ;;  %1762 = vmatprep.mubr.bf16.mxu1 %v5390_v61  ;;  %v6137_v61 = vld [vmem:[%s8404_s6 + $0x98] sm:$0xff] }
  0xb8   : > { %2795 = vperm.xlu1 %5029, %v6137_v61  }
  0xbe   : > { %1377 = vmatmul.mubr.bf16.gmra.mrb[56].mxu0 %v5392_v62  ;;  %1763 = vmatmul.mubr.bf16.gmra.mrb[56].mxu1 %v5392_v62  ;;  %v6142_v62 = vld [vmem:[%s8404_s6 + $0x90] sm:$0xff] }
  0xbf   : > { %1386 = vmatprep.mubr.bf16.mxu0 %v5402_v63  ;;  %1772 = vmatprep.mubr.bf16.mxu1 %v5402_v63  ;;  %v6144_v63 = vrot.slane %v446_v57, %v454_v58 }
  0xc0   : > { %2790 = vperm.xlu0 %5028, %v6142_v62  }
  0xc6   : > { %1387 = vmatmul.mubr.bf16.gmra.mrb[60].mxu0 %v5404_v0  ;;  %1773 = vmatmul.mubr.bf16.gmra.mrb[60].mxu1 %v5404_v0 }
  0xc7   : > { %1429 = vmatprep.mubr.bf16.mxu0 %v8406_v3  ;;  %1815 = vmatprep.mubr.bf16.mxu1 %v8406_v3 }
  0xce   : > { %1430 = vmatmul.mubr.bf16.vlgmr.msra.gmra.mrb[0].mxu0 %v5411_v2  ;;  %1816 = vmatmul.mubr.bf16.vlgmr.msra.gmra.mrb[0].mxu1 %v5411_v2 }
  0xcf   : > { %1439 = vmatprep.mubr.bf16.mxu0 %v8406_v3  ;;  %1825 = vmatprep.mubr.bf16.mxu1 %v8406_v3 }
  0xd0   : > { %4558 = vmatpush3.bf16.msra.mxu0 %v5428_v4  ;;  %4749 = vmatpush3.bf16.msra.mxu1 %v5428_v4 }
  0xd1   : > { %4559 = vmatprep.subr.bf16.mxu0 %v5429_v5  ;;  %4742 = vmatprep.subr.bf16.mxu1 %v5429_v5 }
  0xd4   : > { %4560 = vmatpush3.bf16.msra.mxu0 %v5430_v6  ;;  %4750 = vmatpush3.bf16.msra.mxu1 %v5430_v6 }
  0xd5   : > { %4561 = vmatprep.subr.bf16.mxu0 %v5431_v7  ;;  %4743 = vmatprep.subr.bf16.mxu1 %v5431_v7  ;;  %v6155_v7 = vld [vmem:[%s8404_s6 + $0xa8] sm:$0xff] }
  0xd6   : > { %1440 = vmatmul.mubr.bf16.gmra.mrb[4].mxu0 %v5412_v8  ;;  %1826 = vmatmul.mubr.bf16.gmra.mrb[4].mxu1 %v5412_v8  ;;  %v6160_v8 = vld [vmem:[%s8404_s6 + $0xa0] sm:$0xff] }
  0xd7   : > { %1449 = vmatprep.mubr.bf16.mxu0 %v8406_v3  ;;  %1835 = vmatprep.mubr.bf16.mxu1 %v8406_v3 }
  0xd8   : > { %4562 = vmatpush3.bf16.msra.mxu0 %v5432_v9  ;;  %4751 = vmatpush3.bf16.msra.mxu1 %v5432_v9 }
  0xd9   : > { %4563 = vmatprep.subr.bf16.mxu0 %v5433_v10  ;;  %4744 = vmatprep.subr.bf16.mxu1 %v5433_v10 }
  0xda   : > { %2805 = vperm.xlu1 %5029, %v6155_v7   ;;  %2800 = vperm.xlu0 %5028, %v6160_v8  }
  0xdc   : > { %4564 = vmatpush3.bf16.msra.mxu0 %v5434_v11  ;;  %4752 = vmatpush3.bf16.msra.mxu1 %v5434_v11 }
  0xdd   : > { %4565 = vmatprep.subr.bf16.mxu0 %v5435_v12  ;;  %4745 = vmatprep.subr.bf16.mxu1 %v5435_v12 }
  0xde   : > { %1450 = vmatmul.mubr.bf16.gmra.mrb[8].mxu0 %v5413_v13  ;;  %1836 = vmatmul.mubr.bf16.gmra.mrb[8].mxu1 %v5413_v13 }
  0xdf   : > { %1459 = vmatprep.mubr.bf16.mxu0 %v8406_v3  ;;  %1845 = vmatprep.mubr.bf16.mxu1 %v8406_v3 }
  0xe0   : > { %4566 = vmatpush3.bf16.msra.mxu0 %v5436_v14  ;;  %4753 = vmatpush3.bf16.msra.mxu1 %v5436_v14 }
  0xe1   : > { %4567 = vmatprep.subr.bf16.mxu0 %v5437_v15  ;;  %4746 = vmatprep.subr.bf16.mxu1 %v5437_v15 }
  0xe4   : > { %4568 = vmatpush3.bf16.msra.mxu0 %v5438_v24  ;;  %4754 = vmatpush3.bf16.msra.mxu1 %v5438_v24 }
  0xe5   : > { %4569 = vmatprep.subr.bf16.mxu0 %v5439_v26  ;;  %4747 = vmatprep.subr.bf16.mxu1 %v5439_v26 }
  0xe6   : > { %1460 = vmatmul.mubr.bf16.gmra.mrb[12].mxu0 %v5414_v16  ;;  %1846 = vmatmul.mubr.bf16.gmra.mrb[12].mxu1 %v5414_v16 }
  0xe7   : > { %1469 = vmatprep.mubr.bf16.mxu0 %v8406_v3  ;;  %1855 = vmatprep.mubr.bf16.mxu1 %v8406_v3 }
  0xe8   : > { %4570 = vmatpush3.bf16.msra.mxu0 %v5440_v27  ;;  %4755 = vmatpush3.bf16.msra.mxu1 %v5440_v27 }
  0xe9   : > { %4571 = vmatprep.subr.bf16.mxu0 %v5441_v28  ;;  %4748 = vmatprep.subr.bf16.mxu1 %v5441_v28 }
  0xec   : > { %4572 = vmatpush3.bf16.msra.mxu0 %v5442_v29  ;;  %4756 = vmatpush3.bf16.msra.mxu1 %v5442_v29 }
  0xed   : > { %4693 = vmatprep.subr.bf16.mxu1 %v6068_v44 }
  0xee   : > { %1470 = vmatmul.mubr.bf16.gmra.mrb[16].mxu0 %v5415_v17  ;;  %1856 = vmatmul.mubr.bf16.gmra.mrb[16].mxu1 %v5415_v17  ;;  %v6173_v17 = vld [vmem:[%s8404_s6 + $0xb8] sm:$0xff] }
  0xef   : > { %1479 = vmatprep.mubr.bf16.mxu0 %v8406_v3  ;;  %1865 = vmatprep.mubr.bf16.mxu1 %v8406_v3 }
  0xf0   : > { %2815 = vperm.xlu1 %5029, %v6173_v17  }
  0xf6   : > { %1480 = vmatmul.mubr.bf16.gmra.mrb[20].mxu0 %v5416_v18  ;;  %1866 = vmatmul.mubr.bf16.gmra.mrb[20].mxu1 %v5416_v18  ;;  %v6178_v18 = vld [vmem:[%s8404_s6 + $0xb0] sm:$0xff] }
  0xf7   : > { %1489 = vmatprep.mubr.bf16.mxu0 %v8406_v3  ;;  %1875 = vmatprep.mubr.bf16.mxu1 %v8406_v3 }
  0xf8   : > { %2810 = vperm.xlu0 %5028, %v6178_v18  }
  0xfe   : > { %1490 = vmatmul.mubr.bf16.gmra.mrb[24].mxu0 %v5417_v19  ;;  %1876 = vmatmul.mubr.bf16.gmra.mrb[24].mxu1 %v5417_v19 }
  0xff   : > { %1499 = vmatprep.mubr.bf16.mxu0 %v8406_v3  ;;  %1885 = vmatprep.mubr.bf16.mxu1 %v8406_v3 }
 0x106   : > { %1500 = vmatmul.mubr.bf16.gmra.mrb[28].mxu0 %v5418_v20  ;;  %1886 = vmatmul.mubr.bf16.gmra.mrb[28].mxu1 %v5418_v20 }
 0x107   : > { %1509 = vmatprep.mubr.bf16.mxu0 %v8406_v3  ;;  %1895 = vmatprep.mubr.bf16.mxu1 %v8406_v3 }
 0x10e   : > { %1510 = vmatmul.mubr.bf16.gmra.mrb[32].mxu0 %v5419_v21  ;;  %1896 = vmatmul.mubr.bf16.gmra.mrb[32].mxu1 %v5419_v21 }
 0x10f   : > { %1519 = vmatprep.mubr.bf16.mxu0 %v8406_v3  ;;  %1905 = vmatprep.mubr.bf16.mxu1 %v8406_v3 }
 0x116   : > { %1520 = vmatmul.mubr.bf16.gmra.mrb[36].mxu0 %v5420_v22  ;;  %1906 = vmatmul.mubr.bf16.gmra.mrb[36].mxu1 %v5420_v22 }
 0x117   : > { %1529 = vmatprep.mubr.bf16.mxu0 %v8406_v3  ;;  %1915 = vmatprep.mubr.bf16.mxu1 %v8406_v3 }
 0x11e   : > { %1530 = vmatmul.mubr.bf16.gmra.mrb[40].mxu0 %v5421_v23  ;;  %1916 = vmatmul.mubr.bf16.gmra.mrb[40].mxu1 %v5421_v23 }
 0x11f   : > { %1539 = vmatprep.mubr.bf16.mxu0 %v8406_v3  ;;  %1925 = vmatprep.mubr.bf16.mxu1 %v8406_v3 }
 0x126   : > { %1540 = vmatmul.mubr.bf16.gmra.mrb[44].mxu0 %v5422_v25  ;;  %1926 = vmatmul.mubr.bf16.gmra.mrb[44].mxu1 %v5422_v25 }
 0x127   : > { %1549 = vmatprep.mubr.bf16.mxu0 %v8406_v3  ;;  %1935 = vmatprep.mubr.bf16.mxu1 %v8406_v3 }
 0x12e   : > { %1550 = vmatmul.mubr.bf16.gmra.mrb[48].mxu0 %v5423_v30  ;;  %1936 = vmatmul.mubr.bf16.gmra.mrb[48].mxu1 %v5423_v30  ;;  %v6187_v30 = vld [vmem:[%s8404_s6 + $0xc8] sm:$0xff] }
 0x12f   : > { %1559 = vmatprep.mubr.bf16.mxu0 %v8406_v3  ;;  %1945 = vmatprep.mubr.bf16.mxu1 %v8406_v3 }
 0x130   : > { %2825 = vperm.xlu1 %5029, %v6187_v30  }
 0x136   : > { %1560 = vmatmul.mubr.bf16.gmra.mrb[52].mxu0 %v5424_v31  ;;  %1946 = vmatmul.mubr.bf16.gmra.mrb[52].mxu1 %v5424_v31  ;;  %v6192_v31 = vld [vmem:[%s8404_s6 + $0xc0] sm:$0xff] }
 0x137   : > { %1569 = vmatprep.mubr.bf16.mxu0 %v8406_v3  ;;  %1955 = vmatprep.mubr.bf16.mxu1 %v8406_v3 }
 0x138   : > { %2820 = vperm.xlu0 %5028, %v6192_v31  }
 0x13e   : > { %1570 = vmatmul.mubr.bf16.gmra.mrb[56].mxu0 %v5425_v32  ;;  %1956 = vmatmul.mubr.bf16.gmra.mrb[56].mxu1 %v5425_v32 }
 0x13f   : > { %1579 = vmatprep.mubr.bf16.mxu0 %v8406_v3  ;;  %1965 = vmatprep.mubr.bf16.mxu1 %v8406_v3 }
 0x146   : > { %1580 = vmatmul.mubr.bf16.gmra.mrb[60].mxu0 %v5426_v33  ;;  %1966 = vmatmul.mubr.bf16.gmra.mrb[60].mxu1 %v5426_v33 }
 0x1a1   : > { %v1431_v0 = vpop.f32.mrb[0].mxu0  ;;  %v1817_v1 = vpop.f32.mrb[0].mxu1 }
 0x1a2   : > { %v4757_v2 = vadd.f32 %v1431_v0, %v6130_v59  ;;  %v4821_v4 = vadd.f32 %v1817_v1, %v6132_v60  ;;  %v1433_v5 = vpop.f32.mrb[1].mxu0  ;;  %v6150_v6 = vpop.f32.mrb[1].mxu1 }
 0x1a3   : > { %v4758_v9 = vadd.f32 %v1433_v5, %v6144_v63  ;;  %v1435_v10 = vpop.f32.mrb[2].mxu0  ;;  %v1821_v11 = vpop.f32.mrb[2].mxu1 }
 0x1a4   : > { %v4759_v12 = vadd.f32 %v1435_v10, %v6130_v59  ;;  %v4823_v13 = vadd.f32 %v1821_v11, %v6132_v60  ;;  %v1437_v14 = vpop.f32.mrb[3].mxu0  ;;  %v6167_v15 = vpop.f32.mrb[3].mxu1  ;;  %v1976_v19 = vmax.f32 %v4757_v2, 0.0  ;;  %v1978_v20 = vmax.f32 %v4821_v4, 0.0  ;;  %v6209_v10 = vld [vmem:[%s8404_s6 + $0xd8] sm:$0xff]  ;;  %v6214_v11 = vld [vmem:[%s8404_s6 + $0xd0] sm:$0xff] }
 0x1a5   : > { %v4760_v16 = vadd.f32 %v1437_v14, %v6144_v63  ;;  %v1977_v23 = vmax.f32 %v4758_v9, 0.0  ;;  %2835 = vperm.xlu1 %5029, %v6209_v10   ;;  %2830 = vperm.xlu0 %5028, %v6214_v11  }
 0x1a6   : > { %v1979_v21 = vmax.f32 %v4759_v12, 0.0  ;;  %v1981_v22 = vmax.f32 %v4823_v13, 0.0 }
 0x1a7   : > { %v1980_v24 = vmax.f32 %v4760_v16, 0.0 }
 0x1a8   : > { %v2072_v25 = vpack.c.bf16 %v1979_v21, %v1976_v19  ;;  %v6182_v26 = vpack.c.bf16 %v1981_v22, %v1978_v20 }
 0x1a9   : > { %v2073_v27 = vpack.c.bf16 %v1980_v24, %v1977_v23  ;;  %v1441_v28 = vpop.f32.mrb[4].mxu0  ;;  %v1827_v29 = vpop.f32.mrb[4].mxu1  ;;  %v6223_v23 = vld [vmem:[%s8404_s6 + $0xe8] sm:$0xff] }
 0x1aa   : > { %v4761_v32 = vadd.f32 %v1441_v28, %v6130_v59  ;;  %v4825_v33 = vadd.f32 %v1827_v29, %v6132_v60  ;;  %v1443_v53 = vpop.f32.mrb[5].mxu0  ;;  %v6196_v54 = vpop.f32.mrb[5].mxu1  ;;  %v6228_v28 = vld [vmem:[%s8404_s6 + $0xe0] sm:$0xff]  ;;  %2845 = vperm.xlu1 %5029, %v6223_v23  }
 0x1ab   : > { %v4762_v57 = vadd.f32 %v1443_v53, %v6144_v63  ;;  %v1445_v58 = vpop.f32.mrb[6].mxu0  ;;  %v1831_v0 = vpop.f32.mrb[6].mxu1  ;;  %2344 = vmatprep.mubr.bf16.mxu0 %v2073_v27  ;;  %2840 = vperm.xlu0 %5028, %v6228_v28  }
 0x1ac   : > { %v4763_v1 = vadd.f32 %v1445_v58, %v6130_v59  ;;  %v4827_v2 = vadd.f32 %v1831_v0, %v6132_v60  ;;  %v1447_v4 = vpop.f32.mrb[7].mxu0  ;;  %v6202_v5 = vpop.f32.mrb[7].mxu1  ;;  %2345 = vmatmul.mubr.bf16.vlgmr.msra.gmra.mrb[64].mxu0 %v2072_v25  ;;  %v1982_v12 = vmax.f32 %v4761_v32, 0.0  ;;  %v1984_v13 = vmax.f32 %v4825_v33, 0.0 }
 0x1ad   : > { %v4764_v9 = vadd.f32 %v1447_v4, %v6144_v63  ;;  %v1983_v19 = vmax.f32 %v4762_v57, 0.0 }
 0x1ae   : > { %v1985_v14 = vmax.f32 %v4763_v1, 0.0  ;;  %v1987_v16 = vmax.f32 %v4827_v2, 0.0 }
 0x1af   : > { %v1986_v20 = vmax.f32 %v4764_v9, 0.0 }
 0x1b0   : > { %v2075_v21 = vpack.c.bf16 %v1985_v14, %v1982_v12  ;;  %v6217_v22 = vpack.c.bf16 %v1987_v16, %v1984_v13  ;;  %v6245_v13 = vld [vmem:[%s8404_s6 + $0xf8] sm:$0xff]  ;;  %v6250_v14 = vld [vmem:[%s8404_s6 + $0xf0] sm:$0xff] }
 0x1b1   : > { %v2076_v24 = vpack.c.bf16 %v1986_v20, %v1983_v19  ;;  %v1451_v25 = vpop.f32.mrb[8].mxu0  ;;  %v1837_v27 = vpop.f32.mrb[8].mxu1  ;;  %2855 = vperm.xlu1 %5029, %v6245_v13   ;;  %2850 = vperm.xlu0 %5028, %v6250_v14  }
 0x1b2   : > { %v4765_v29 = vadd.f32 %v1451_v25, %v6130_v59  ;;  %v4829_v32 = vadd.f32 %v1837_v27, %v6132_v60  ;;  %v1453_v33 = vpop.f32.mrb[9].mxu0  ;;  %v6232_v53 = vpop.f32.mrb[9].mxu1 }
 0x1b3   : > { %8489 = vst [vmem:[#allocation2_spill] sm:$0xff] %v6232_v53  ;;  %v4766_v57 = vadd.f32 %v1453_v33, %v6144_v63  ;;  %v1455_v58 = vpop.f32.mrb[10].mxu0  ;;  %v1841_v0 = vpop.f32.mrb[10].mxu1  ;;  %2352 = vmatprep.mubr.bf16.mxu0 %v2076_v24 }
 0x1b4   : > { %v4767_v1 = vadd.f32 %v1455_v58, %v6130_v59  ;;  %v4831_v2 = vadd.f32 %v1841_v0, %v6132_v60  ;;  %v1457_v4 = vpop.f32.mrb[11].mxu0  ;;  %v6238_v9 = vpop.f32.mrb[11].mxu1  ;;  %2353 = vmatmul.mubr.bf16.gmra.mrb[68].mxu0 %v2075_v21  ;;  %v1988_v16 = vmax.f32 %v4765_v29, 0.0  ;;  %v1990_v19 = vmax.f32 %v4829_v32, 0.0 }
 0x1b5   : > { %8490 = vst [vmem:[#allocation3_spill] sm:$0xff] %v6238_v9  ;;  %v4768_v12 = vadd.f32 %v1457_v4, %v6144_v63  ;;  %v1989_v25 = vmax.f32 %v4766_v57, 0.0 }
 0x1b6   : > { %v1991_v20 = vmax.f32 %v4767_v1, 0.0  ;;  %v1993_v24 = vmax.f32 %v4831_v2, 0.0 }
 0x1b7   : > { %v1992_v21 = vmax.f32 %v4768_v12, 0.0  ;;  %v5526_v12 = vmov 1  }
 0x1b8   : > { %v2078_v27 = vpack.c.bf16 %v1991_v20, %v1988_v16  ;;  %v6253_v33 = vpack.c.bf16 %v1993_v24, %v1990_v19  ;;  %5031 = vset.pattern.permute.xlu1 %v5526_v12  ;;  %5030 = vset.pattern.permute.xlu0 %v5526_v12 }
 0x1b9   : > { %v2079_v58 = vpack.c.bf16 %v1992_v21, %v1989_v25  ;;  %v1461_v0 = vpop.f32.mrb[12].mxu0  ;;  %v1847_v4 = vpop.f32.mrb[12].mxu1  ;;  %2933 = vperm.xlu1 %5031, %v6027_v37   ;;  %2929 = vperm.xlu0 %5030, %v6015_v35  }
 0x1ba   : > { %v4769_v3 = vadd.f32 %v1461_v0, %v6130_v59  ;;  %v4833_v47 = vadd.f32 %v1847_v4, %v6132_v60  ;;  %v1463_v29 = vpop.f32.mrb[13].mxu0  ;;  %v6258_v32 = vpop.f32.mrb[13].mxu1 }
 0x1bb   : > { %8491 = vst [vmem:[#allocation4_spill] sm:$0xff] %v6258_v32  ;;  %v4770_v57 = vadd.f32 %v1463_v29, %v6144_v63  ;;  %v1465_v1 = vpop.f32.mrb[14].mxu0  ;;  %v1851_v2 = vpop.f32.mrb[14].mxu1  ;;  %2360 = vmatprep.mubr.bf16.mxu0 %v2079_v58 }
 0x1bc   : > { %v4771_v16 = vadd.f32 %v1465_v1, %v6130_v59  ;;  %v4835_v19 = vadd.f32 %v1851_v2, %v6132_v60  ;;  %v1467_v20 = vpop.f32.mrb[15].mxu0  ;;  %v6263_v24 = vpop.f32.mrb[15].mxu1  ;;  %2361 = vmatmul.mubr.bf16.gmra.mrb[72].mxu0 %v2078_v27  ;;  %v1994_v21 = vmax.f32 %v4769_v3, 0.0  ;;  %v1996_v0 = vmax.f32 %v4833_v47, 0.0 }
 0x1bd   : > { %8492 = vst [vmem:[#allocation5_spill] sm:$0xff] %v6263_v24  ;;  %v4772_v25 = vadd.f32 %v1467_v20, %v6144_v63  ;;  %v1995_v29 = vmax.f32 %v4770_v57, 0.0  ;;  %2937 = vperm.xlu1 %5031, %v6010_v34   ;;  %2941 = vperm.xlu0 %5030, %v6022_v36  }
 0x1be   : > { %v1997_v58 = vmax.f32 %v4771_v16, 0.0  ;;  %v1999_v4 = vmax.f32 %v4835_v19, 0.0 }
 0x1bf   : > { %v1998_v32 = vmax.f32 %v4772_v25, 0.0 }
 0x1c0   : > { %v2081_v1 = vpack.c.bf16 %v1997_v58, %v1994_v21  ;;  %v6268_v9 = vpack.c.bf16 %v1999_v4, %v1996_v0 }
 0x1c1   : > { %v2082_v2 = vpack.c.bf16 %v1998_v32, %v1995_v29  ;;  %v1471_v53 = vpop.f32.mrb[16].mxu0  ;;  %v1857_v24 = vpop.f32.mrb[16].mxu1  ;;  %2945 = vperm.xlu1 %5031, %v6039_v39   ;;  %2949 = vperm.xlu0 %5030, %v6034_v38  }
 0x1c2   : > { %v4773_v37 = vadd.f32 %v1471_v53, %v6130_v59  ;;  %v4837_v35 = vadd.f32 %v1857_v24, %v6132_v60  ;;  %v1473_v3 = vpop.f32.mrb[17].mxu0  ;;  %v6274_v47 = vpop.f32.mrb[17].mxu1 }
 0x1c3   : > { %v4774_v27 = vadd.f32 %v1473_v3, %v6144_v63  ;;  %v1475_v57 = vpop.f32.mrb[18].mxu0  ;;  %v1861_v12 = vpop.f32.mrb[18].mxu1  ;;  %2368 = vmatprep.mubr.bf16.mxu0 %v2082_v2 }
 0x1c4   : > { %v4775_v32 = vadd.f32 %v1475_v57, %v6130_v59  ;;  %v4839_v16 = vadd.f32 %v1861_v12, %v6132_v60  ;;  %v1477_v19 = vpop.f32.mrb[19].mxu0  ;;  %v6279_v34 = vpop.f32.mrb[19].mxu1  ;;  %2369 = vmatmul.mubr.bf16.gmra.mrb[76].mxu0 %v2081_v1  ;;  %v2000_v53 = vmax.f32 %v4773_v37, 0.0  ;;  %v2002_v20 = vmax.f32 %v4837_v35, 0.0 }
 0x1c5   : > { %v4776_v36 = vadd.f32 %v1477_v19, %v6144_v63  ;;  %v2001_v21 = vmax.f32 %v4774_v27, 0.0  ;;  %2953 = vperm.xlu1 %5031, %v6051_v41   ;;  %2957 = vperm.xlu0 %5030, %v6046_v40  }
 0x1c6   : > { %v2003_v24 = vmax.f32 %v4775_v32, 0.0  ;;  %v2005_v25 = vmax.f32 %v4839_v16, 0.0 }
 0x1c7   : > { %v2004_v0 = vmax.f32 %v4776_v36, 0.0 }
 0x1c8   : > { %v2084_v58 = vpack.c.bf16 %v2003_v24, %v2000_v53  ;;  %v6284_v4 = vpack.c.bf16 %v2005_v25, %v2002_v20 }
 0x1c9   : > { %v2085_v29 = vpack.c.bf16 %v2004_v0, %v2001_v21  ;;  %v1481_v2 = vpop.f32.mrb[20].mxu0  ;;  %v1867_v3 = vpop.f32.mrb[20].mxu1  ;;  %2961 = vperm.xlu1 %5031, %v6063_v43   ;;  %2965 = vperm.xlu0 %5030, %v6058_v42  }
 0x1ca   : > { %v4777_v39 = vadd.f32 %v1481_v2, %v6130_v59  ;;  %v4841_v38 = vadd.f32 %v1867_v3, %v6132_v60  ;;  %v1483_v1 = vpop.f32.mrb[21].mxu0  ;;  %v6290_v37 = vpop.f32.mrb[21].mxu1 }
 0x1cb   : > { %v4778_v35 = vadd.f32 %v1483_v1, %v6144_v63  ;;  %v1485_v27 = vpop.f32.mrb[22].mxu0  ;;  %v1871_v57 = vpop.f32.mrb[22].mxu1  ;;  %2376 = vmatprep.mubr.bf16.mxu0 %v2085_v29 }
 0x1cc   : > { %v4779_v12 = vadd.f32 %v1485_v27, %v6130_v59  ;;  %v4843_v32 = vadd.f32 %v1871_v57, %v6132_v60  ;;  %v1487_v16 = vpop.f32.mrb[23].mxu0  ;;  %v6295_v41 = vpop.f32.mrb[23].mxu1  ;;  %2377 = vmatmul.mubr.bf16.gmra.mrb[80].mxu0 %v2084_v58  ;;  %v2006_v19 = vmax.f32 %v4777_v39, 0.0  ;;  %v2008_v36 = vmax.f32 %v4841_v38, 0.0 }
 0x1cd   : > { %v4780_v40 = vadd.f32 %v1487_v16, %v6144_v63  ;;  %v2007_v24 = vmax.f32 %v4778_v35, 0.0  ;;  %2969 = vperm.xlu1 %5031, %v6081_v46   ;;  %2973 = vperm.xlu0 %5030, %v6076_v45  }
 0x1ce   : > { %v2009_v53 = vmax.f32 %v4779_v12, 0.0  ;;  %v2011_v20 = vmax.f32 %v4843_v32, 0.0 }
 0x1cf   : > { %v2010_v25 = vmax.f32 %v4780_v40, 0.0 }
 0x1d0   : > { %v2087_v21 = vpack.c.bf16 %v2009_v53, %v2006_v19  ;;  %v6300_v0 = vpack.c.bf16 %v2011_v20, %v2008_v36 }
 0x1d1   : > { %v2088_v29 = vpack.c.bf16 %v2010_v25, %v2007_v24  ;;  %v1491_v2 = vpop.f32.mrb[24].mxu0  ;;  %v1877_v3 = vpop.f32.mrb[24].mxu1  ;;  %2977 = vperm.xlu1 %5031, %v6093_v49   ;;  %2981 = vperm.xlu0 %5030, %v6088_v48  }
 0x1d2   : > { %v4781_v43 = vadd.f32 %v1491_v2, %v6130_v59  ;;  %v4845_v42 = vadd.f32 %v1877_v3, %v6132_v60  ;;  %v1493_v58 = vpop.f32.mrb[25].mxu0  ;;  %v6306_v39 = vpop.f32.mrb[25].mxu1 }
 0x1d3   : > { %v4782_v38 = vadd.f32 %v1493_v58, %v6144_v63  ;;  %v1495_v1 = vpop.f32.mrb[26].mxu0  ;;  %v1881_v35 = vpop.f32.mrb[26].mxu1  ;;  %2384 = vmatprep.mubr.bf16.mxu0 %v2088_v29 }
 0x1d4   : > { %v4783_v27 = vadd.f32 %v1495_v1, %v6130_v59  ;;  %v4847_v57 = vadd.f32 %v1881_v35, %v6132_v60  ;;  %v1497_v12 = vpop.f32.mrb[27].mxu0  ;;  %v6311_v46 = vpop.f32.mrb[27].mxu1  ;;  %2385 = vmatmul.mubr.bf16.gmra.mrb[84].mxu0 %v2087_v21  ;;  %v2012_v32 = vmax.f32 %v4781_v43, 0.0  ;;  %v2014_v16 = vmax.f32 %v4845_v42, 0.0 }
 0x1d5   : > { %v4784_v45 = vadd.f32 %v1497_v12, %v6144_v63  ;;  %v2013_v36 = vmax.f32 %v4782_v38, 0.0  ;;  %2985 = vperm.xlu1 %5031, %v6108_v52   ;;  %2989 = vperm.xlu0 %5030, %v6103_v51  }
 0x1d6   : > { %v2015_v40 = vmax.f32 %v4783_v27, 0.0  ;;  %v2017_v19 = vmax.f32 %v4847_v57, 0.0 }
 0x1d7   : > { %v2016_v53 = vmax.f32 %v4784_v45, 0.0 }
 0x1d8   : > { %v2090_v20 = vpack.c.bf16 %v2015_v40, %v2012_v32  ;;  %v6316_v24 = vpack.c.bf16 %v2017_v19, %v2014_v16 }
 0x1d9   : > { %v2091_v25 = vpack.c.bf16 %v2016_v53, %v2013_v36  ;;  %v1501_v29 = vpop.f32.mrb[28].mxu0  ;;  %v1887_v2 = vpop.f32.mrb[28].mxu1  ;;  %2993 = vperm.xlu1 %5031, %v6122_v56   ;;  %2997 = vperm.xlu0 %5030, %v6117_v55  }
 0x1da   : > { %v4785_v49 = vadd.f32 %v1501_v29, %v6130_v59  ;;  %v4849_v48 = vadd.f32 %v1887_v2, %v6132_v60  ;;  %v1503_v21 = vpop.f32.mrb[29].mxu0  ;;  %v6322_v3 = vpop.f32.mrb[29].mxu1 }
 0x1db   : > { %v4786_v43 = vadd.f32 %v1503_v21, %v6144_v63  ;;  %v1505_v42 = vpop.f32.mrb[30].mxu0  ;;  %v1891_v58 = vpop.f32.mrb[30].mxu1  ;;  %2392 = vmatprep.mubr.bf16.mxu0 %v2091_v25 }
 0x1dc   : > { %v4787_v38 = vadd.f32 %v1505_v42, %v6130_v59  ;;  %v4851_v1 = vadd.f32 %v1891_v58, %v6132_v60  ;;  %v1507_v35 = vpop.f32.mrb[31].mxu0  ;;  %v6327_v52 = vpop.f32.mrb[31].mxu1  ;;  %2393 = vmatmul.mubr.bf16.gmra.mrb[88].mxu0 %v2090_v20  ;;  %v2018_v27 = vmax.f32 %v4785_v49, 0.0  ;;  %v2020_v57 = vmax.f32 %v4849_v48, 0.0 }
 0x1dd   : > { %v4788_v51 = vadd.f32 %v1507_v35, %v6144_v63  ;;  %v2019_v32 = vmax.f32 %v4786_v43, 0.0  ;;  %3001 = vperm.xlu1 %5031, %v6142_v62   ;;  %3005 = vperm.xlu0 %5030, %v6137_v61  }
 0x1de   : > { %v2021_v12 = vmax.f32 %v4787_v38, 0.0  ;;  %v2023_v45 = vmax.f32 %v4851_v1, 0.0 }
 0x1df   : > { %v2022_v16 = vmax.f32 %v4788_v51, 0.0 }
 0x1e0   : > { %v2093_v40 = vpack.c.bf16 %v2021_v12, %v2018_v27  ;;  %v6332_v19 = vpack.c.bf16 %v2023_v45, %v2020_v57 }
 0x1e1   : > { %v2094_v36 = vpack.c.bf16 %v2022_v16, %v2019_v32  ;;  %v1511_v53 = vpop.f32.mrb[32].mxu0  ;;  %v1897_v25 = vpop.f32.mrb[32].mxu1  ;;  %3009 = vperm.xlu1 %5031, %v6160_v8   ;;  %3013 = vperm.xlu0 %5030, %v6155_v7  }
 0x1e2   : > { %v4789_v56 = vadd.f32 %v1511_v53, %v6130_v59  ;;  %v4853_v55 = vadd.f32 %v1897_v25, %v6132_v60  ;;  %v1513_v20 = vpop.f32.mrb[33].mxu0  ;;  %v6338_v29 = vpop.f32.mrb[33].mxu1 }
 0x1e3   : > { %v4790_v2 = vadd.f32 %v1513_v20, %v6144_v63  ;;  %v1515_v49 = vpop.f32.mrb[34].mxu0  ;;  %v1901_v48 = vpop.f32.mrb[34].mxu1  ;;  %2400 = vmatprep.mubr.bf16.mxu0 %v2094_v36 }
 0x1e4   : > { %v4791_v21 = vadd.f32 %v1515_v49, %v6130_v59  ;;  %v4855_v43 = vadd.f32 %v1901_v48, %v6132_v60  ;;  %v1517_v42 = vpop.f32.mrb[35].mxu0  ;;  %v6343_v62 = vpop.f32.mrb[35].mxu1  ;;  %2401 = vmatmul.mubr.bf16.gmra.mrb[92].mxu0 %v2093_v40  ;;  %v2024_v58 = vmax.f32 %v4789_v56, 0.0  ;;  %v2026_v38 = vmax.f32 %v4853_v55, 0.0 }
 0x1e5   : > { %v4792_v61 = vadd.f32 %v1517_v42, %v6144_v63  ;;  %v2025_v51 = vmax.f32 %v4790_v2, 0.0  ;;  %3017 = vperm.xlu1 %5031, %v6178_v18   ;;  %3021 = vperm.xlu0 %5030, %v6173_v17  }
 0x1e6   : > { %v2027_v1 = vmax.f32 %v4791_v21, 0.0  ;;  %v2029_v35 = vmax.f32 %v4855_v43, 0.0 }
 0x1e7   : > { %v2028_v27 = vmax.f32 %v4792_v61, 0.0 }
 0x1e8   : > { %v2096_v57 = vpack.c.bf16 %v2027_v1, %v2024_v58  ;;  %v6348_v12 = vpack.c.bf16 %v2029_v35, %v2026_v38 }
 0x1e9   : > { %v2097_v45 = vpack.c.bf16 %v2028_v27, %v2025_v51  ;;  %v1521_v32 = vpop.f32.mrb[36].mxu0  ;;  %v1907_v16 = vpop.f32.mrb[36].mxu1  ;;  %3025 = vperm.xlu1 %5031, %v6192_v31   ;;  %3029 = vperm.xlu0 %5030, %v6187_v30  }
 0x1ea   : > { %v4793_v8 = vadd.f32 %v1521_v32, %v6130_v59  ;;  %v4857_v7 = vadd.f32 %v1907_v16, %v6132_v60  ;;  %v1523_v40 = vpop.f32.mrb[37].mxu0  ;;  %v6354_v36 = vpop.f32.mrb[37].mxu1 }
 0x1eb   : > { %v4794_v53 = vadd.f32 %v1523_v40, %v6144_v63  ;;  %v1525_v25 = vpop.f32.mrb[38].mxu0  ;;  %v1911_v56 = vpop.f32.mrb[38].mxu1  ;;  %2408 = vmatprep.mubr.bf16.mxu0 %v2097_v45 }
 0x1ec   : > { %v4795_v55 = vadd.f32 %v1525_v25, %v6130_v59  ;;  %v4859_v20 = vadd.f32 %v1911_v56, %v6132_v60  ;;  %v1527_v2 = vpop.f32.mrb[39].mxu0  ;;  %v6359_v18 = vpop.f32.mrb[39].mxu1  ;;  %2409 = vmatmul.mubr.bf16.gmra.mrb[96].mxu0 %v2096_v57  ;;  %v2030_v49 = vmax.f32 %v4793_v8, 0.0  ;;  %v2032_v48 = vmax.f32 %v4857_v7, 0.0 }
 0x1ed   : > { %v4796_v17 = vadd.f32 %v1527_v2, %v6144_v63  ;;  %v2031_v42 = vmax.f32 %v4794_v53, 0.0  ;;  %3033 = vperm.xlu1 %5031, %v6214_v11   ;;  %3037 = vperm.xlu0 %5030, %v6209_v10  }
 0x1ee   : > { %v2033_v21 = vmax.f32 %v4795_v55, 0.0  ;;  %v2035_v43 = vmax.f32 %v4859_v20, 0.0 }
 0x1ef   : > { %v2034_v61 = vmax.f32 %v4796_v17, 0.0 }
 0x1f0   : > { %v2099_v58 = vpack.c.bf16 %v2033_v21, %v2030_v49  ;;  %v6364_v38 = vpack.c.bf16 %v2035_v43, %v2032_v48 }
 0x1f1   : > { %v2100_v1 = vpack.c.bf16 %v2034_v61, %v2031_v42  ;;  %v1531_v35 = vpop.f32.mrb[40].mxu0  ;;  %v1917_v51 = vpop.f32.mrb[40].mxu1  ;;  %3041 = vperm.xlu1 %5031, %v6228_v28   ;;  %3045 = vperm.xlu0 %5030, %v6223_v23  }
 0x1f2   : > { %v4797_v31 = vadd.f32 %v1531_v35, %v6130_v59  ;;  %v4861_v30 = vadd.f32 %v1917_v51, %v6132_v60  ;;  %v1533_v27 = vpop.f32.mrb[41].mxu0  ;;  %v6370_v57 = vpop.f32.mrb[41].mxu1 }
 0x1f3   : > { %v4798_v45 = vadd.f32 %v1533_v27, %v6144_v63  ;;  %v1535_v32 = vpop.f32.mrb[42].mxu0  ;;  %v1921_v16 = vpop.f32.mrb[42].mxu1  ;;  %2416 = vmatprep.mubr.bf16.mxu0 %v2100_v1 }
 0x1f4   : > { %v4799_v8 = vadd.f32 %v1535_v32, %v6130_v59  ;;  %v4863_v7 = vadd.f32 %v1921_v16, %v6132_v60  ;;  %v1537_v40 = vpop.f32.mrb[43].mxu0  ;;  %v6375_v11 = vpop.f32.mrb[43].mxu1  ;;  %2417 = vmatmul.mubr.bf16.gmra.mrb[100].mxu0 %v2099_v58  ;;  %v2036_v53 = vmax.f32 %v4797_v31, 0.0  ;;  %v2038_v25 = vmax.f32 %v4861_v30, 0.0 }
 0x1f5   : > { %v4800_v10 = vadd.f32 %v1537_v40, %v6144_v63  ;;  %v2037_v20 = vmax.f32 %v4798_v45, 0.0  ;;  %3049 = vperm.xlu1 %5031, %v6250_v14   ;;  %3053 = vperm.xlu0 %5030, %v6245_v13  }
 0x1f6   : > { %v2039_v56 = vmax.f32 %v4799_v8, 0.0  ;;  %v2041_v55 = vmax.f32 %v4863_v7, 0.0 }
 0x1f7   : > { %v2040_v2 = vmax.f32 %v4800_v10, 0.0 }
 0x1f8   : > { %v2102_v17 = vpack.c.bf16 %v2039_v56, %v2036_v53  ;;  %v6380_v49 = vpack.c.bf16 %v2041_v55, %v2038_v25  ;;  %v6396_v53 = vpop.permute.xlu1 %2710  ;;  %v6398_v25 = vpop.permute.xlu0 %2700 }
 0x1f9   : > { %v2103_v48 = vpack.c.bf16 %v2040_v2, %v2037_v20  ;;  %v1541_v21 = vpop.f32.mrb[44].mxu0  ;;  %v1927_v43 = vpop.f32.mrb[44].mxu1  ;;  %8493 = vst [vmem:[#allocation6_spill] sm:$0xff] %v6396_v53  ;;  %8494 = vst [vmem:[#allocation7_spill] sm:$0xff] %v6398_v25 }
 0x1fa   : > { %v4801_v28 = vadd.f32 %v1541_v21, %v6130_v59  ;;  %v4865_v23 = vadd.f32 %v1927_v43, %v6132_v60  ;;  %v1543_v42 = vpop.f32.mrb[45].mxu0  ;;  %v6386_v61 = vpop.f32.mrb[45].mxu1 }
 0x1fb   : > { %v4802_v58 = vadd.f32 %v1543_v42, %v6144_v63  ;;  %v1545_v1 = vpop.f32.mrb[46].mxu0  ;;  %v1931_v35 = vpop.f32.mrb[46].mxu1  ;;  %2424 = vmatprep.mubr.bf16.mxu0 %v2103_v48 }
 0x1fc   : > { %v4803_v51 = vadd.f32 %v1545_v1, %v6130_v59  ;;  %v4867_v31 = vadd.f32 %v1931_v35, %v6132_v60  ;;  %v1547_v30 = vpop.f32.mrb[47].mxu0  ;;  %v6391_v14 = vpop.f32.mrb[47].mxu1  ;;  %2425 = vmatmul.mubr.bf16.gmra.mrb[104].mxu0 %v2102_v17  ;;  %v2042_v27 = vmax.f32 %v4801_v28, 0.0  ;;  %v2044_v45 = vmax.f32 %v4865_v23, 0.0 }
 0x1fd   : > { %v4804_v13 = vadd.f32 %v1547_v30, %v6144_v63  ;;  %v2043_v8 = vmax.f32 %v4802_v58, 0.0 }
 0x1fe   : > { %v2045_v32 = vmax.f32 %v4803_v51, 0.0  ;;  %v2047_v16 = vmax.f32 %v4867_v31, 0.0 }
 0x1ff   : > { %v2046_v7 = vmax.f32 %v4804_v13, 0.0 }
 0x200   : > { %v2105_v40 = vpack.c.bf16 %v2045_v32, %v2042_v27  ;;  %v6394_v10 = vpack.c.bf16 %v2047_v16, %v2044_v45 }
 0x201   : > { %v2106_v56 = vpack.c.bf16 %v2046_v7, %v2043_v8  ;;  %v1551_v55 = vpop.f32.mrb[48].mxu0  ;;  %v1937_v20 = vpop.f32.mrb[48].mxu1 }
 0x202   : > { %v4805_v2 = vadd.f32 %v1551_v55, %v6130_v59  ;;  %v4869_v17 = vadd.f32 %v1937_v20, %v6132_v60  ;;  %v1553_v48 = vpop.f32.mrb[49].mxu0  ;;  %v6402_v21 = vpop.f32.mrb[49].mxu1 }
 0x203   : > { %v4806_v43 = vadd.f32 %v1553_v48, %v6144_v63  ;;  %v1555_v28 = vpop.f32.mrb[50].mxu0  ;;  %v1941_v23 = vpop.f32.mrb[50].mxu1  ;;  %2432 = vmatprep.mubr.bf16.mxu0 %v2106_v56 }
 0x204   : > { %v4807_v42 = vadd.f32 %v1555_v28, %v6130_v59  ;;  %v4871_v58 = vadd.f32 %v1941_v23, %v6132_v60  ;;  %v1557_v1 = vpop.f32.mrb[51].mxu0  ;;  %v6407_v35 = vpop.f32.mrb[51].mxu1  ;;  %2433 = vmatmul.mubr.bf16.gmra.mrb[108].mxu0 %v2105_v40  ;;  %v2048_v31 = vmax.f32 %v4805_v2, 0.0  ;;  %v2050_v30 = vmax.f32 %v4869_v17, 0.0 }
 0x205   : > { %v4808_v51 = vadd.f32 %v1557_v1, %v6144_v63  ;;  %v2049_v45 = vmax.f32 %v4806_v43, 0.0  ;;  %v6412_v7 = vpop.permute.xlu1 %2715  ;;  %v6414_v56 = vpop.permute.xlu0 %2705  ;;  %v5444_v43 = vld [vmem:[%s8401_s3 + $0x88] sm:$0xff]  }
 0x206   : > { %v2051_v13 = vmax.f32 %v4807_v42, 0.0  ;;  %v2053_v27 = vmax.f32 %v4871_v58, 0.0  ;;  %8495 = vst [vmem:[#allocation8_spill] sm:$0xff] %v6412_v7  ;;  %8496 = vst [vmem:[#allocation9_spill] sm:$0xff] %v6414_v56 }
 0x207   : > { %v2052_v32 = vmax.f32 %v4808_v51, 0.0 }
 0x208   : > { %v2108_v16 = vpack.c.bf16 %v2051_v13, %v2048_v31  ;;  %v6410_v8 = vpack.c.bf16 %v2053_v27, %v2050_v30 }
 0x209   : > { %v2109_v55 = vpack.c.bf16 %v2052_v32, %v2049_v45  ;;  %v1561_v20 = vpop.f32.mrb[52].mxu0  ;;  %v1947_v48 = vpop.f32.mrb[52].mxu1 }
 0x20a   : > { %v4809_v40 = vadd.f32 %v1561_v20, %v6130_v59  ;;  %v4873_v28 = vadd.f32 %v1947_v48, %v6132_v60  ;;  %v1563_v2 = vpop.f32.mrb[53].mxu0  ;;  %v6418_v17 = vpop.f32.mrb[53].mxu1 }
 0x20b   : > { %v4810_v23 = vadd.f32 %v1563_v2, %v6144_v63  ;;  %v1565_v42 = vpop.f32.mrb[54].mxu0  ;;  %v1951_v58 = vpop.f32.mrb[54].mxu1  ;;  %2440 = vmatprep.mubr.bf16.mxu1 %v2109_v55  ;;  %v5445_v55 = vld [vmem:[%s8401_s3 + $0x90] sm:$0xff]  }
 0x20c   : > { %v4811_v1 = vadd.f32 %v1565_v42, %v6130_v59  ;;  %v4875_v51 = vadd.f32 %v1951_v58, %v6132_v60  ;;  %v1567_v31 = vpop.f32.mrb[55].mxu0  ;;  %v6426_v30 = vpop.f32.mrb[55].mxu1  ;;  %2441 = vmatmul.mubr.bf16.vlgmr.msra.gmra.mrb[64].mxu1 %v2108_v16  ;;  %v2054_v27 = vmax.f32 %v4809_v40, 0.0  ;;  %v2056_v45 = vmax.f32 %v4873_v28, 0.0 }
 0x20d   : > { %v4812_v13 = vadd.f32 %v1567_v31, %v6144_v63  ;;  %4694 = vmatpush3.bf16.msra.mxu1 %v6068_v44  ;;  %v2055_v48 = vmax.f32 %v4810_v23, 0.0  ;;  %v6435_v56 = vpop.permute.xlu1 %2725  ;;  %v6437_v16 = vpop.permute.xlu0 %2720  ;;  %v5446_v23 = vld [vmem:[%s8401_s3 + $0x98] sm:$0xff]  }
 0x20e   : > { %v2057_v32 = vmax.f32 %v4811_v1, 0.0  ;;  %v2059_v20 = vmax.f32 %v4875_v51, 0.0  ;;  %4695 = vmatprep.subr.bf16.mxu1 %v5444_v43  ;;  %8497 = vst [vmem:[#allocation10_spill] sm:$0xff] %v6435_v56  ;;  %8498 = vst [vmem:[#allocation11_spill] sm:$0xff] %v6437_v16 }
 0x20f   : > { %v2058_v2 = vmax.f32 %v4812_v13, 0.0 }
 0x210   : > { %v2111_v42 = vpack.c.bf16 %v2057_v32, %v2054_v27  ;;  %v6433_v58 = vpack.c.bf16 %v2059_v20, %v2056_v45 }
 0x211   : > { %v2112_v31 = vpack.c.bf16 %v2058_v2, %v2055_v48  ;;  %v1571_v44 = vpop.f32.mrb[56].mxu0  ;;  %v1957_v40 = vpop.f32.mrb[56].mxu1  ;;  %4696 = vmatpush3.bf16.msra.mxu1 %v5444_v43 }
 0x212   : > { %v4813_v28 = vadd.f32 %v1571_v44, %v6130_v59  ;;  %v4877_v1 = vadd.f32 %v1957_v40, %v6132_v60  ;;  %v1573_v51 = vpop.f32.mrb[57].mxu0  ;;  %v6441_v7 = vpop.f32.mrb[57].mxu1  ;;  %4697 = vmatprep.subr.bf16.mxu1 %v5445_v55 }
 0x213   : > { %v4814_v13 = vadd.f32 %v1573_v51, %v6144_v63  ;;  %v1575_v27 = vpop.f32.mrb[58].mxu0  ;;  %v1961_v45 = vpop.f32.mrb[58].mxu1  ;;  %2448 = vmatprep.mubr.bf16.mxu1 %v2112_v31  ;;  %v5447_v31 = vld [vmem:[%s8401_s3 + $0xa0] sm:$0xff]  }
 0x214   : > { %v4815_v32 = vadd.f32 %v1575_v27, %v6130_v59  ;;  %v4879_v43 = vadd.f32 %v1961_v45, %v6132_v60  ;;  %v1577_v20 = vpop.f32.mrb[59].mxu0  ;;  %v6449_v48 = vpop.f32.mrb[59].mxu1  ;;  %2449 = vmatmul.mubr.bf16.gmra.mrb[68].mxu1 %v2111_v42  ;;  %v2060_v44 = vmax.f32 %v4813_v28, 0.0  ;;  %v2062_v40 = vmax.f32 %v4877_v1, 0.0 }
 0x215   : > { %8499 = vst [vmem:[#allocation12_spill] sm:$0xff] %v6449_v48  ;;  %v4816_v2 = vadd.f32 %v1577_v20, %v6144_v63  ;;  %4698 = vmatpush3.bf16.msra.mxu1 %v5445_v55  ;;  %v2061_v51 = vmax.f32 %v4814_v13, 0.0  ;;  %v6455_v25 = vpop.permute.xlu1 %2735  ;;  %v6457_v45 = vpop.permute.xlu0 %2730  ;;  %v5448_v13 = vld [vmem:[%s8401_s3 + $0xa8] sm:$0xff]  }
 0x216   : > { %v2063_v16 = vmax.f32 %v4815_v32, 0.0  ;;  %v2065_v56 = vmax.f32 %v4879_v43, 0.0  ;;  %4699 = vmatprep.subr.bf16.mxu1 %v5446_v23  ;;  %8500 = vst [vmem:[#allocation13_spill] sm:$0xff] %v6455_v25  ;;  %8501 = vst [vmem:[#allocation14_spill] sm:$0xff] %v6457_v45 }
 0x217   : > { %v2064_v27 = vmax.f32 %v4816_v2, 0.0 }
 0x218   : > { %v2114_v53 = vpack.c.bf16 %v2063_v16, %v2060_v44  ;;  %v6459_v42 = vpack.c.bf16 %v2065_v56, %v2062_v40 }
 0x219   : > { %v2115_v20 = vpack.c.bf16 %v2064_v27, %v2061_v51  ;;  %v1581_v55 = vpop.f32.mrb[60].mxu0  ;;  %v1967_v28 = vpop.f32.mrb[60].mxu1  ;;  %4700 = vmatpush3.bf16.msra.mxu1 %v5446_v23 }
 0x21a   : > { %v4817_v1 = vadd.f32 %v1581_v55, %v6130_v59  ;;  %v4881_v32 = vadd.f32 %v1967_v28, %v6132_v60  ;;  %v1583_v43 = vpop.f32.mrb[61].mxu0  ;;  %v6463_v48 = vpop.f32.mrb[61].mxu1  ;;  %4701 = vmatprep.subr.bf16.mxu1 %v5447_v31 }
 0x21b   : > { %8502 = vst [vmem:[#allocation15_spill] sm:$0xff] %v6463_v48  ;;  %v4818_v16 = vadd.f32 %v1583_v43, %v6144_v63  ;;  %v1585_v56 = vpop.f32.mrb[62].mxu0  ;;  %v1971_v2 = vpop.f32.mrb[62].mxu1  ;;  %2456 = vmatprep.mubr.bf16.mxu1 %v2115_v20 }
 0x21c   : > { %v4819_v44 = vadd.f32 %v1585_v56, %v6130_v59  ;;  %v4883_v23 = vadd.f32 %v1971_v2, %v6132_v60  ;;  %v1587_v40 = vpop.f32.mrb[63].mxu0  ;;  %v6471_v51 = vpop.f32.mrb[63].mxu1  ;;  %2457 = vmatmul.mubr.bf16.gmra.mrb[72].mxu1 %v2114_v53  ;;  %v2066_v45 = vmax.f32 %v4817_v1, 0.0  ;;  %v2068_v43 = vmax.f32 %v4881_v32, 0.0  ;;  %v5449_v59 = vld [vmem:[%s8401_s3 + $0xb0] sm:$0xff]   ;;  %v5450_v1 = vld [vmem:[%s8401_s3 + $0xb8] sm:$0xff]  }
 0x21d   : > { %v4820_v27 = vadd.f32 %v1587_v40, %v6144_v63  ;;  %4702 = vmatpush3.bf16.msra.mxu1 %v5447_v31  ;;  %v6474_v55 = vpop.permute.xlu1 %2745  ;;  %v6476_v28 = vpop.permute.xlu0 %2740  ;;  %v2067_v60 = vmax.f32 %v4818_v16, 0.0 }
 0x21e   : > { %v2069_v25 = vmax.f32 %v4819_v44, 0.0  ;;  %v2071_v48 = vmax.f32 %v4883_v23, 0.0  ;;  %4703 = vmatprep.subr.bf16.mxu1 %v5448_v13 }
 0x21f   : > { %v2070_v20 = vmax.f32 %v4820_v27, 0.0 }
 0x220   : > { %v2117_v56 = vpack.c.bf16 %v2069_v25, %v2066_v45  ;;  %v2119_v53 = vpack.c.bf16 %v2071_v48, %v2068_v43 }
 0x221   : > { %v2118_v2 = vpack.c.bf16 %v2070_v20, %v2067_v60  ;;  %4704 = vmatpush3.bf16.msra.mxu1 %v5448_v13  ;;  %v6481_v63 = vpop.permute.xlu1 %2755  ;;  %v6483_v31 = vpop.permute.xlu0 %2750 }
 0x222   : > { %4705 = vmatprep.subr.bf16.mxu1 %v5449_v59 }
 0x223   : > { %2464 = vmatprep.mubr.bf16.mxu1 %v2118_v2 }
 0x224   : > { %2465 = vmatmul.mubr.bf16.gmra.mrb[76].mxu1 %v2117_v56 }
 0x225   : > { %4706 = vmatpush3.bf16.msra.mxu1 %v5449_v59  ;;  %4709 = vmatprep.mubr.bf16.mxu1 %v6182_v26  ;;  %v6489_v32 = vpop.permute.xlu1 %2765  ;;  %v6491_v25 = vpop.permute.xlu0 %2760 }
 0x226   : > { %4707 = vmatprep.subr.bf16.mxu1 %v5450_v1 }
 0x229   : > { %4708 = vmatpush3.bf16.msra.mxu1 %v5450_v1  ;;  %v6493_v48 = vpop.permute.xlu1 %2775  ;;  %v6495_v45 = vpop.permute.xlu0 %2770 }
 0x22c   : > { %4710 = vmatmul.mubr.bf16.vlgmr.msra.gmra.mrb[80].mxu1 %v6217_v22 }
 0x22d   : > { %4713 = vmatprep.mubr.bf16.mxu1 %v6253_v33  ;;  %v6499_v13 = vpop.permute.xlu1 %2785  ;;  %v6501_v16 = vpop.permute.xlu0 %2780 }
 0x231   : > { %v6503_v44 = vpop.permute.xlu1 %2795  ;;  %v6505_v26 = vpop.permute.xlu0 %2790 }
 0x234   : > { %4714 = vmatmul.mubr.bf16.gmra.mrb[84].mxu1 %v6268_v9 }
 0x235   : > { %4717 = vmatprep.mubr.bf16.mxu1 %v6284_v4  ;;  %v6509_v23 = vpop.permute.xlu1 %2805  ;;  %v6511_v40 = vpop.permute.xlu0 %2800 }
 0x236   : > { %8503 = vst [vmem:[#allocation16_spill] sm:$0xff] %v6511_v40 }
 0x239   : > { %v6513_v27 = vpop.permute.xlu1 %2815  ;;  %v6515_v22 = vpop.permute.xlu0 %2810 }
 0x23a   : > { %8504 = vst [vmem:[#allocation17_spill] sm:$0xff] %v6513_v27  ;;  %8505 = vst [vmem:[#allocation18_spill] sm:$0xff] %v6515_v22 }
 0x23c   : > { %4718 = vmatmul.mubr.bf16.gmra.mrb[88].mxu1 %v6300_v0 }
 0x23d   : > { %4721 = vmatprep.mubr.bf16.mxu1 %v6316_v24  ;;  %v6519_v33 = vpop.permute.xlu1 %2825  ;;  %v6521_v43 = vpop.permute.xlu0 %2820 }
 0x23e   : > { %8506 = vst [vmem:[#allocation19_spill] sm:$0xff] %v6519_v33  ;;  %8507 = vst [vmem:[#allocation20_spill] sm:$0xff] %v6521_v43 }
 0x241   : > { %v6523_v59 = vpop.permute.xlu1 %2835  ;;  %v6525_v9 = vpop.permute.xlu0 %2830 }
 0x242   : > { %8508 = vst [vmem:[#allocation21_spill] sm:$0xff] %v6523_v59  ;;  %8509 = vst [vmem:[#allocation22_spill] sm:$0xff] %v6525_v9 }
 0x244   : > { %4722 = vmatmul.mubr.bf16.gmra.mrb[92].mxu1 %v6332_v19 }
 0x245   : > { %4725 = vmatprep.mubr.bf16.mxu1 %v6348_v12  ;;  %v6529_v4 = vpop.permute.xlu1 %2845  ;;  %v2841_v60 = vpop.permute.xlu0 %2840 }
 0x246   : > { %8510 = vst [vmem:[#allocation23_spill] sm:$0xff] %v6529_v4 }
 0x249   : > { %v6531_v20 = vpop.permute.xlu1 %2855  ;;  %v6533_v0 = vpop.permute.xlu0 %2850 }
 0x24a   : > { %8511 = vst [vmem:[#allocation24_spill] sm:$0xff] %v6531_v20 }
 0x24c   : > { %4726 = vmatmul.mubr.bf16.gmra.mrb[96].mxu1 %v6364_v38 }
 0x24d   : > { %4729 = vmatprep.mubr.bf16.mxu1 %v6380_v49  ;;  %v6537_v24 = vpop.permute.xlu1 %2933  ;;  %v6539_v56 = vpop.permute.xlu0 %2929 }
 0x24e   : > { %8512 = vst [vmem:[#allocation25_spill] sm:$0xff] %v6537_v24  ;;  %8513 = vst [vmem:[#allocation26_spill] sm:$0xff] %v6539_v56 }
 0x251   : > { %v6541_v2 = vpop.permute.xlu1 %2937  ;;  %v6543_v19 = vpop.permute.xlu0 %2941 }
 0x252   : > { %8514 = vst [vmem:[#allocation27_spill] sm:$0xff] %v6541_v2  ;;  %8515 = vst [vmem:[#allocation28_spill] sm:$0xff] %v6543_v19 }
 0x254   : > { %4730 = vmatmul.mubr.bf16.gmra.mrb[100].mxu1 %v6394_v10 }
 0x255   : > { %4733 = vmatprep.mubr.bf16.mxu1 %v6410_v8  ;;  %v6547_v12 = vpop.permute.xlu1 %2945  ;;  %v6549_v1 = vpop.permute.xlu0 %2949 }
 0x256   : > { %8516 = vst [vmem:[#allocation29_spill] sm:$0xff] %v6547_v12  ;;  %8517 = vst [vmem:[#allocation30_spill] sm:$0xff] %v6549_v1 }
 0x259   : > { %v6551_v20 = vpop.permute.xlu1 %2953  ;;  %v6553_v38 = vpop.permute.xlu0 %2957 }
 0x25a   : > { %8518 = vst [vmem:[#allocation31_spill] sm:$0xff] %v6551_v20  ;;  %8519 = vst [vmem:[#allocation32_spill] sm:$0xff] %v6553_v38 }
 0x25c   : > { %4734 = vmatmul.mubr.bf16.gmra.mrb[104].mxu1 %v6433_v58 }
 0x25d   : > { %4737 = vmatprep.mubr.bf16.mxu1 %v6459_v42  ;;  %v6557_v49 = vpop.permute.xlu1 %2961  ;;  %v6559_v2 = vpop.permute.xlu0 %2965 }
 0x25e   : > { %8520 = vst [vmem:[#allocation33_spill] sm:$0xff] %v6557_v49  ;;  %8521 = vst [vmem:[#allocation34_spill] sm:$0xff] %v6559_v2 }
 0x261   : > { %v6561_v19 = vpop.permute.xlu1 %2969  ;;  %v6563_v10 = vpop.permute.xlu0 %2973 }
 0x262   : > { %8522 = vst [vmem:[#allocation35_spill] sm:$0xff] %v6561_v19  ;;  %8523 = vst [vmem:[#allocation36_spill] sm:$0xff] %v6563_v10  ;;  %v8532_v19 = vlaneseq }
 0x264   : > { %4738 = vmatmul.mubr.bf16.gmra.mrb[108].mxu1 %v2119_v53  ;;  %v6582_v12 = vand.u32 127, %v8532_v19  ;;  %v8410_v19 = vmov 0.0  }
 0x265   : > { %v6565_v8 = vpop.permute.xlu1 %2977  ;;  %v6567_v1 = vpop.permute.xlu0 %2981 }
 0x266   : > { %8524 = vst [vmem:[#allocation37_spill] sm:$0xff] %v6565_v8  ;;  %8525 = vst [vmem:[#allocation38_spill] sm:$0xff] %v6567_v1  ;;  %vm2659_vm0 = vcmp.eq.s32.totalorder %v6582_v12, 1  ;;  %vm2660_vm1 = vcmp.eq.s32.totalorder %v6582_v12, 8  ;;  %vm2654_vm2 = vcmp.eq.s32.totalorder %v6582_v12, 0  ;;  %vm2655_vm3 = vcmp.eq.s32.totalorder %v6582_v12, 7 }
 0x267   : > { %8533 = vst [vmem:[#allocation45_spill] sm:$0xff] %v6582_v12  ;;  %vm2661_vm4 = vmor %vm2659_vm0, %vm2660_vm1 }
 0x268   : > { %vm2656_vm5 = vmor %vm2654_vm2, %vm2655_vm3 }
 0x269   : > { %v6569_v20 = vpop.permute.xlu1 %2985  ;;  %v6571_v38 = vpop.permute.xlu0 %2989 }
 0x26a   : > { %8526 = vst [vmem:[#allocation39_spill] sm:$0xff] %v6569_v20  ;;  %8527 = vst [vmem:[#allocation40_spill] sm:$0xff] %v6571_v38  ;;  %v6606_v38 = vsel %vm2656_vm5, 1.0, %v8410_v19 }
 0x26b   : > { %v2886_v12 = vmul.f32 %v6606_v38, %v2841_v60 }
 0x26d   : > { %v6573_v58 = vpop.permute.xlu1 %2993  ;;  %v6575_v42 = vpop.permute.xlu0 %2997 }
 0x26e   : > { %8528 = vst [vmem:[#allocation41_spill] sm:$0xff] %v6573_v58  ;;  %8529 = vst [vmem:[#allocation42_spill] sm:$0xff] %v6575_v42  ;;  %v6598_v58 = vsel %vm2661_vm4, 1.0, %v8410_v19 }
 0x26f   : > { %8538 = vst [vmem:[#allocation50_spill] sm:$0xff] %v6598_v58 }
 0x271   : > { %v6577_v49 = vpop.permute.xlu1 %3001  ;;  %v6579_v2 = vpop.permute.xlu0 %3005 }
 0x272   : > { %8530 = vst [vmem:[#allocation43_spill] sm:$0xff] %v6577_v49  ;;  %8531 = vst [vmem:[#allocation44_spill] sm:$0xff] %v6579_v2  ;;  %v462_v49 = vsub.s32 3, %v6098_v50 }
 0x275   : > { %v6586_v53 = vpop.permute.xlu1 %3009  ;;  %v6588_v20 = vpop.permute.xlu0 %3013 }
 0x276   : > { %8534 = vst [vmem:[#allocation46_spill] sm:$0xff] %v6586_v53  ;;  %8535 = vst [vmem:[#allocation47_spill] sm:$0xff] %v6588_v20  ;;  %v5515_v20 = vld [vmem:[%s8400_s2] sm:$0xf] }
 0x277   : > { %v6603_v53 = vrot.slane %v5515_v20, %v462_v49  ;;  %v6620_v20 = vld [vmem:[%s8403_s5] ss:$0 sm:$0xff] }
 0x278   : > { %v2924_v9 = vadd.f32 %v6620_v20, %v2886_v12 }
 0x279   : > { %v6593_v42 = vpop.permute.xlu1 %3017  ;;  %v6595_v2 = vpop.permute.xlu0 %3021  ;;  %v4822_v56 = vadd.f32 %v6150_v6, %v6603_v53  ;;  %v4826_v12 = vadd.f32 %v6196_v54, %v6603_v53  ;;  %v8546_v54 = vld [vmem:[#allocation2_spill] sm:$0xff] }
 0x27a   : > { %8536 = vst [vmem:[#allocation48_spill] sm:$0xff] %v6593_v42  ;;  %8537 = vst [vmem:[#allocation49_spill] sm:$0xff] %v6595_v2 }
 0x27d   : > { %v3026_v1 = vpop.permute.xlu1 %3025  ;;  %v3030_v50 = vpop.permute.xlu0 %3029 }
 0x27e   : > { %v6609_v42 = vmul.f32 %v6598_v58, %v3026_v1  ;;  %v6612_v2 = vmul.f32 %v6598_v58, %v3030_v50 }
 0x27f   : > { %v4573_v8 = vpop.f32.mrb[64].mxu0 }
 0x280   : > { %8539 = vst [vmem:[#allocation51_spill] sm:$0xff] %v6609_v42  ;;  %8540 = vst [vmem:[#allocation52_spill] sm:$0xff] %v6612_v2  ;;  %v4574_v10 = vpop.f32.mrb[65].mxu0  ;;  %v4824_v2 = vadd.f32 %v6167_v15, %v6603_v53 }
 0x281   : > { %v4575_v49 = vadd.f32 %v4574_v10, %v4573_v8  ;;  %v4576_v19 = vpop.f32.mrb[66].mxu0  ;;  %v3034_v24 = vpop.permute.xlu1 %3033  ;;  %v2888_v10 = vmul.f32 %v6606_v38, %v6533_v0 }
 0x282   : > { %v4577_v1 = vpop.f32.mrb[67].mxu0  ;;  %v6623_v42 = vmul.f32 %v6598_v58, %v3034_v24  ;;  %v3038_v50 = vpop.permute.xlu0 %3037 }
 0x283   : > { %v4578_v60 = vadd.f32 %v4577_v1, %v4576_v19  ;;  %v6628_v4 = vmul.f32 %v6598_v58, %v3038_v50  ;;  %v6630_v6 = vadd.f32 %v4822_v56, %v4575_v49  ;;  %v2926_v1 = vadd.f32 %v6620_v20, %v2888_v10 }
 0x284   : > { %8541 = vst [vmem:[#allocation53_spill] sm:$0xff] %v6623_v42 }
 0x285   : > { %8542 = vst [vmem:[#allocation54_spill] sm:$0xff] %v6628_v4  ;;  %v3042_v8 = vpop.permute.xlu1 %3041  ;;  %v6635_v59 = vadd.f32 %v4824_v2, %v4578_v60 }
 0x286   : > { %v3084_v24 = vmul.f32 %v6598_v58, %v3042_v8  ;;  %v3046_v42 = vpop.permute.xlu0 %3045  ;;  %v4828_v8 = vadd.f32 %v6202_v5, %v6603_v53 }
 0x287   : > { %v4579_v43 = vpop.f32.mrb[68].mxu0  ;;  %v6639_v15 = vmul.f32 %v6598_v58, %v3046_v42 }
 0x288   : > { %v4580_v19 = vpop.f32.mrb[69].mxu0  ;;  %v6642_v56 = vadd.f32 %v3084_v24, %v2924_v9 }
 0x289   : > { %8543 = vst [vmem:[#allocation55_spill] sm:$0xff] %v6639_v15  ;;  %v4581_v49 = vadd.f32 %v4580_v19, %v4579_v43  ;;  %v4582_v0 = vpop.f32.mrb[70].mxu0  ;;  %v3050_v50 = vpop.permute.xlu1 %3049  ;;  %v4830_v43 = vadd.f32 %v8546_v54, %v6603_v53 }
 0x28a   : > { %8544 = vst [vmem:[#allocation56_spill] sm:$0xff] %v6642_v56  ;;  %v4583_v2 = vpop.f32.mrb[71].mxu0  ;;  %v3086_v60 = vmul.f32 %v6598_v58, %v3050_v50  ;;  %v8547_v50 = vld [vmem:[#allocation3_spill] sm:$0xff] }
 0x28b   : > { %v4584_v4 = vadd.f32 %v4583_v2, %v4582_v0  ;;  %v6649_v42 = vadd.f32 %v4826_v12, %v4581_v49  ;;  %v4832_v58 = vadd.f32 %v8547_v50, %v6603_v53 }
 0x28c   : > { %v6651_v15 = vadd.f32 %v3086_v60, %v2926_v1 }
 0x28d   : > { %v6653_v10 = vadd.f32 %v4828_v8, %v4584_v4  ;;  %v8548_v4 = vld [vmem:[#allocation4_spill] sm:$0xff] }
 0x28e   : > { %8545 = vst [vmem:[#allocation57_spill] sm:$0xff] %v6651_v15  ;;  %v4834_v0 = vadd.f32 %v8548_v4, %v6603_v53 }
 0x28f   : > { %v4585_v9 = vpop.f32.mrb[72].mxu0 }
 0x290   : > { %v4586_v24 = vpop.f32.mrb[73].mxu0 }
 0x291   : > { %v4587_v19 = vadd.f32 %v4586_v24, %v4585_v9  ;;  %v4588_v56 = vpop.f32.mrb[74].mxu0  ;;  %v8549_v9 = vld [vmem:[#allocation5_spill] sm:$0xff] }
 0x292   : > { %v4589_v33 = vpop.f32.mrb[75].mxu0  ;;  %v4836_v24 = vadd.f32 %v8549_v9, %v6603_v53 }
 0x293   : > { %v4590_v22 = vadd.f32 %v4589_v33, %v4588_v56  ;;  %v6659_v5 = vadd.f32 %v4830_v43, %v4587_v19 }
 0x295   : > { %v6661_v12 = vadd.f32 %v4832_v58, %v4590_v22  ;;  %v4838_v22 = vadd.f32 %v6274_v47, %v6603_v53  ;;  %v4844_v47 = vadd.f32 %v6295_v41, %v6603_v53 }
 0x297   : > { %v4591_v1 = vpop.f32.mrb[76].mxu0 }
 0x298   : > { %v4592_v49 = vpop.f32.mrb[77].mxu0 }
 0x299   : > { %v4593_v2 = vadd.f32 %v4592_v49, %v4591_v1  ;;  %v4594_v60 = vpop.f32.mrb[78].mxu0  ;;  %v4840_v1 = vadd.f32 %v6279_v34, %v6603_v53 }
 0x29a   : > { %v4595_v8 = vpop.f32.mrb[79].mxu0 }
 0x29b   : > { %v4596_v54 = vadd.f32 %v4595_v8, %v4594_v60  ;;  %v6667_v15 = vadd.f32 %v4834_v0, %v4593_v2  ;;  %v4842_v60 = vadd.f32 %v6290_v37, %v6603_v53  ;;  %v4848_v37 = vadd.f32 %v6311_v46, %v6603_v53 }
 0x29d   : > { %v6669_v50 = vadd.f32 %v4836_v24, %v4596_v54 }
 0x29f   : > { %v4597_v33 = vpop.f32.mrb[80].mxu0 }
 0x2a0   : > { %v4598_v56 = vpop.f32.mrb[81].mxu0 }
 0x2a1   : > { %v4599_v58 = vadd.f32 %v4598_v56, %v4597_v33  ;;  %v4600_v43 = vpop.f32.mrb[82].mxu0 }
 0x2a2   : > { %v4601_v19 = vpop.f32.mrb[83].mxu0 }
 0x2a3   : > { %v4602_v49 = vadd.f32 %v4601_v19, %v4600_v43  ;;  %v6675_v4 = vadd.f32 %v4838_v22, %v4599_v58  ;;  %v4846_v43 = vadd.f32 %v6306_v39, %v6603_v53  ;;  %v4852_v39 = vadd.f32 %v6327_v52, %v6603_v53 }
 0x2a5   : > { %v6677_v9 = vadd.f32 %v4840_v1, %v4602_v49 }
 0x2a7   : > { %v4603_v0 = vpop.f32.mrb[84].mxu0 }
 0x2a8   : > { %v4604_v2 = vpop.f32.mrb[85].mxu0 }
 0x2a9   : > { %v4605_v8 = vadd.f32 %v4604_v2, %v4603_v0  ;;  %v4606_v24 = vpop.f32.mrb[86].mxu0 }
 0x2aa   : > { %v4607_v54 = vpop.f32.mrb[87].mxu0 }
 0x2ab   : > { %v4608_v33 = vadd.f32 %v4607_v54, %v4606_v24  ;;  %v6683_v56 = vadd.f32 %v4842_v60, %v4605_v8  ;;  %v4850_v24 = vadd.f32 %v6322_v3, %v6603_v53  ;;  %v4856_v3 = vadd.f32 %v6343_v62, %v6603_v53 }
 0x2ad   : > { %v6685_v34 = vadd.f32 %v4844_v47, %v4608_v33 }
 0x2af   : > { %v4609_v22 = vpop.f32.mrb[88].mxu0 }
 0x2b0   : > { %v4610_v58 = vpop.f32.mrb[89].mxu0 }
 0x2b1   : > { %v4611_v19 = vadd.f32 %v4610_v58, %v4609_v22  ;;  %v4612_v1 = vpop.f32.mrb[90].mxu0 }
 0x2b2   : > { %v4613_v49 = vpop.f32.mrb[91].mxu0 }
 0x2b3   : > { %v4614_v0 = vadd.f32 %v4613_v49, %v4612_v1  ;;  %v6691_v2 = vadd.f32 %v4846_v43, %v4611_v19  ;;  %v4854_v1 = vadd.f32 %v6338_v29, %v6603_v53  ;;  %v4860_v29 = vadd.f32 %v6359_v18, %v6603_v53 }
 0x2b5   : > { %v6693_v41 = vadd.f32 %v4848_v37, %v4614_v0 }
 0x2b7   : > { %v4615_v60 = vpop.f32.mrb[92].mxu0 }
 0x2b8   : > { %v4616_v8 = vpop.f32.mrb[93].mxu0 }
 0x2b9   : > { %v4617_v54 = vadd.f32 %v4616_v8, %v4615_v60  ;;  %v4618_v47 = vpop.f32.mrb[94].mxu0 }
 0x2ba   : > { %v4619_v33 = vpop.f32.mrb[95].mxu0 }
 0x2bb   : > { %v4620_v22 = vadd.f32 %v4619_v33, %v4618_v47  ;;  %v6699_v58 = vadd.f32 %v4850_v24, %v4617_v54  ;;  %v4858_v47 = vadd.f32 %v6354_v36, %v6603_v53  ;;  %v4864_v36 = vadd.f32 %v6375_v11, %v6603_v53 }
 0x2bd   : > { %v6701_v46 = vadd.f32 %v4852_v39, %v4620_v22 }
 0x2bf   : > { %v4621_v43 = vpop.f32.mrb[96].mxu0 }
 0x2c0   : > { %v4622_v19 = vpop.f32.mrb[97].mxu0 }
 0x2c1   : > { %v4623_v49 = vadd.f32 %v4622_v19, %v4621_v43  ;;  %v4624_v37 = vpop.f32.mrb[98].mxu0 }
 0x2c2   : > { %v4625_v0 = vpop.f32.mrb[99].mxu0 }
 0x2c3   : > { %v4626_v60 = vadd.f32 %v4625_v0, %v4624_v37  ;;  %v6707_v8 = vadd.f32 %v4854_v1, %v4623_v49  ;;  %v4862_v37 = vadd.f32 %v6370_v57, %v6603_v53  ;;  %v4868_v57 = vadd.f32 %v6391_v14, %v6603_v53 }
 0x2c5   : > { %v6709_v52 = vadd.f32 %v4856_v3, %v4626_v60 }
 0x2c7   : > { %v4627_v24 = vpop.f32.mrb[100].mxu0 }
 0x2c8   : > { %v4628_v54 = vpop.f32.mrb[101].mxu0 }
 0x2c9   : > { %v4629_v33 = vadd.f32 %v4628_v54, %v4627_v24  ;;  %v4630_v39 = vpop.f32.mrb[102].mxu0 }
 0x2ca   : > { %v4631_v22 = vpop.f32.mrb[103].mxu0 }
 0x2cb   : > { %v4632_v43 = vadd.f32 %v4631_v22, %v4630_v39  ;;  %v6715_v19 = vadd.f32 %v4858_v47, %v4629_v33  ;;  %v4866_v39 = vadd.f32 %v6386_v61, %v6603_v53  ;;  %v4872_v61 = vadd.f32 %v6407_v35, %v6603_v53 }
 0x2cd   : > { %v6717_v62 = vadd.f32 %v4860_v29, %v4632_v43 }
 0x2cf   : > { %v4633_v1 = vpop.f32.mrb[104].mxu0 }
 0x2d0   : > { %v4634_v49 = vpop.f32.mrb[105].mxu0 }
 0x2d1   : > { %v4635_v0 = vadd.f32 %v4634_v49, %v4633_v1  ;;  %v4636_v3 = vpop.f32.mrb[106].mxu0 }
 0x2d2   : > { %v4637_v60 = vpop.f32.mrb[107].mxu0 }
 0x2d3   : > { %v4638_v24 = vadd.f32 %v4637_v60, %v4636_v3  ;;  %v6723_v54 = vadd.f32 %v4862_v37, %v4635_v0  ;;  %v4870_v3 = vadd.f32 %v6402_v21, %v6603_v53  ;;  %v4876_v21 = vadd.f32 %v6426_v30, %v6603_v53 }
 0x2d5   : > { %v6725_v18 = vadd.f32 %v4864_v36, %v4638_v24 }
 0x2d7   : > { %v4639_v47 = vpop.f32.mrb[108].mxu0 }
 0x2d8   : > { %v4640_v33 = vpop.f32.mrb[109].mxu0 }
 0x2d9   : > { %v4641_v22 = vadd.f32 %v4640_v33, %v4639_v47  ;;  %v4642_v29 = vpop.f32.mrb[110].mxu0 }
 0x2da   : > { %v4643_v43 = vpop.f32.mrb[111].mxu0 }
 0x2db   : > { %v4644_v1 = vadd.f32 %v4643_v43, %v4642_v29  ;;  %v6731_v49 = vadd.f32 %v4866_v39, %v4641_v22  ;;  %v4874_v29 = vadd.f32 %v6418_v17, %v6603_v53  ;;  %v8550_v17 = vld [vmem:[#allocation12_spill] sm:$0xff] }
 0x2dd   : > { %v6733_v11 = vadd.f32 %v4868_v57, %v4644_v1 }
 0x2df   : > { %v4645_v37 = vpop.f32.mrb[64].mxu1 }
 0x2e0   : > { %v4646_v0 = vpop.f32.mrb[65].mxu1 }
 0x2e1   : > { %v4647_v60 = vadd.f32 %v4646_v0, %v4645_v37  ;;  %v4648_v36 = vpop.f32.mrb[66].mxu1 }
 0x2e2   : > { %v4649_v24 = vpop.f32.mrb[67].mxu1 }
 0x2e3   : > { %v4650_v47 = vadd.f32 %v4649_v24, %v4648_v36  ;;  %v6739_v33 = vadd.f32 %v4870_v3, %v4647_v60  ;;  %v4878_v36 = vadd.f32 %v6441_v7, %v6603_v53  ;;  %v8416_v7 = vmov 19  }
 0x2e4   : > { %5038 = vset.pattern.permute.xlu1 %v8416_v7  ;;  %v8584_v7 = vld [vmem:[#allocation13_spill] sm:$0xff] }
 0x2e5   : > { %v6741_v14 = vadd.f32 %v4872_v61, %v4650_v47 }
 0x2e7   : > { %v4651_v39 = vpop.f32.mrb[68].mxu1 }
 0x2e8   : > { %v4652_v22 = vpop.f32.mrb[69].mxu1 }
 0x2e9   : > { %v4653_v43 = vadd.f32 %v4652_v22, %v4651_v39  ;;  %v4654_v57 = vpop.f32.mrb[70].mxu1  ;;  %v4880_v39 = vadd.f32 %v8550_v17, %v6603_v53 }
 0x2ea   : > { %v4655_v1 = vpop.f32.mrb[71].mxu1 }
 0x2eb   : > { %v4656_v37 = vadd.f32 %v4655_v1, %v4654_v57  ;;  %v6747_v0 = vadd.f32 %v4874_v29, %v4653_v43  ;;  %v8551_v57 = vld [vmem:[#allocation15_spill] sm:$0xff] }
 0x2ec   : > { %v4882_v1 = vadd.f32 %v8551_v57, %v6603_v53 }
 0x2ed   : > { %v6749_v35 = vadd.f32 %v4876_v21, %v4656_v37 }
 0x2ef   : > { %v4657_v3 = vpop.f32.mrb[72].mxu1 }
 0x2f0   : > { %v4658_v60 = vpop.f32.mrb[73].mxu1 }
 0x2f1   : > { %v4659_v24 = vadd.f32 %v4658_v60, %v4657_v3  ;;  %v4660_v61 = vpop.f32.mrb[74].mxu1  ;;  %v8414_v3 = vmov 17   ;;  %v4884_v60 = vadd.f32 %v6471_v51, %v6603_v53 }
 0x2f2   : > { %v4661_v47 = vpop.f32.mrb[75].mxu1  ;;  %5032 = vset.pattern.permute.xlu0 %v8414_v3  ;;  %v8583_v3 = vld [vmem:[#allocation11_spill] sm:$0xff] }
 0x2f3   : > { %v4662_v22 = vadd.f32 %v4661_v47, %v4660_v61  ;;  %v6755_v27 = vadd.f32 %v4878_v36, %v4659_v24 }
 0x2f5   : > { %v6757_v30 = vadd.f32 %v4880_v39, %v4662_v22 }
 0x2f7   : > { %v4663_v29 = vpop.f32.mrb[76].mxu1 }
 0x2f8   : > { %v4664_v43 = vpop.f32.mrb[77].mxu1 }
 0x2f9   : > { %v4665_v21 = vadd.f32 %v4664_v43, %v4663_v29  ;;  %v4666_v37 = vpop.f32.mrb[78].mxu1 }
 0x2fa   : > { %v4667_v40 = vpop.f32.mrb[79].mxu1 }
 0x2fb   : > { %v4668_v36 = vadd.f32 %v4667_v40, %v4666_v37  ;;  %v6765_v24 = vadd.f32 %v4882_v1, %v4665_v21 }
 0x2fd   : > { %v6767_v61 = vadd.f32 %v4884_v60, %v4668_v36 }
 0x2ff   : > { %v4711_v47 = vpop.f32.mrb[80].mxu1 }
 0x300   : > { %v6770_v17 = vadd.f32 %v4711_v47, %v6649_v42  ;;  %v2507_v39 = vpop.f32.mrb[81].mxu1 }
 0x301   : > { %v6773_v22 = vadd.f32 %v2507_v39, %v6630_v6  ;;  %v4712_v29 = vpop.f32.mrb[82].mxu1 }
 0x302   : > { %v6776_v43 = vadd.f32 %v4712_v29, %v6653_v10  ;;  %v2510_v57 = vpop.f32.mrb[83].mxu1  ;;  %3517 = vrot.lane.b32.xlu1 %v6770_v17, %s5530_s25 }
 0x303   : > { %v6781_v51 = vadd.f32 %v2510_v57, %v6635_v59 }
 0x304   : > { %3519 = vrot.lane.b32.xlu0 %v6776_v43, %s5530_s25 }
 0x306   : > { %3513 = vrot.lane.b32.xlu1 %v6773_v22, %s5530_s25 }
 0x307   : > { %v4715_v40 = vpop.f32.mrb[84].mxu1 }
 0x308   : > { %v6788_v53 = vadd.f32 %v4715_v40, %v6667_v15  ;;  %v2523_v6 = vpop.f32.mrb[85].mxu1  ;;  %3515 = vrot.lane.b32.xlu0 %v6781_v51, %s5530_s25 }
 0x309   : > { %v6793_v42 = vadd.f32 %v2523_v6, %v6659_v5  ;;  %v4716_v10 = vpop.f32.mrb[86].mxu1 }
 0x30a   : > { %8552 = vst [vmem:[#allocation2_spill] sm:$0xff] %v6788_v53  ;;  %v6796_v59 = vadd.f32 %v4716_v10, %v6669_v50  ;;  %v2526_v1 = vpop.f32.mrb[87].mxu1  ;;  %3525 = vrot.lane.b32.xlu1 %v6788_v53, %s5530_s25 }
 0x30b   : > { %8553 = vst [vmem:[#allocation3_spill] sm:$0xff] %v6793_v42  ;;  %v6801_v21 = vadd.f32 %v2526_v1, %v6661_v12 }
 0x30c   : > { %8554 = vst [vmem:[#allocation4_spill] sm:$0xff] %v6796_v59  ;;  %3527 = vrot.lane.b32.xlu0 %v6796_v59, %s5530_s25 }
 0x30d   : > { %8555 = vst [vmem:[#allocation5_spill] sm:$0xff] %v6801_v21 }
 0x30e   : > { %3521 = vrot.lane.b32.xlu1 %v6793_v42, %s5530_s25 }
 0x30f   : > { %v4719_v15 = vpop.f32.mrb[88].mxu1 }
 0x310   : > { %v6808_v5 = vadd.f32 %v4719_v15, %v6683_v56  ;;  %v2539_v37 = vpop.f32.mrb[89].mxu1  ;;  %3523 = vrot.lane.b32.xlu0 %v6801_v21, %s5530_s25 }
 0x311   : > { %v6813_v50 = vadd.f32 %v2539_v37, %v6675_v4  ;;  %v4720_v60 = vpop.f32.mrb[90].mxu1 }
 0x312   : > { %8556 = vst [vmem:[#allocation12_spill] sm:$0xff] %v6808_v5  ;;  %v6816_v12 = vadd.f32 %v4720_v60, %v6685_v34  ;;  %v2542_v36 = vpop.f32.mrb[91].mxu1  ;;  %3533 = vrot.lane.b32.xlu1 %v6808_v5, %s5530_s25 }
 0x313   : > { %8557 = vst [vmem:[#allocation15_spill] sm:$0xff] %v6813_v50  ;;  %v6821_v47 = vadd.f32 %v2542_v36, %v6677_v9 }
 0x314   : > { %8558 = vst [vmem:[#allocation58_spill] sm:$0xff] %v6816_v12  ;;  %3535 = vrot.lane.b32.xlu0 %v6816_v12, %s5530_s25 }
 0x315   : > { %8559 = vst [vmem:[#allocation59_spill] sm:$0xff] %v6821_v47 }
 0x316   : > { %3529 = vrot.lane.b32.xlu1 %v6813_v50, %s5530_s25 }
 0x317   : > { %v4723_v56 = vpop.f32.mrb[92].mxu1 }
 0x318   : > { %v6828_v4 = vadd.f32 %v4723_v56, %v6699_v58  ;;  %v2555_v39 = vpop.f32.mrb[93].mxu1  ;;  %3531 = vrot.lane.b32.xlu0 %v6821_v47, %s5530_s25 }
 0x319   : > { %v6833_v34 = vadd.f32 %v2555_v39, %v6691_v2  ;;  %v4724_v29 = vpop.f32.mrb[94].mxu1 }
 0x31a   : > { %8560 = vst [vmem:[#allocation60_spill] sm:$0xff] %v6828_v4  ;;  %v6836_v9 = vadd.f32 %v4724_v29, %v6701_v46  ;;  %v2558_v57 = vpop.f32.mrb[95].mxu1  ;;  %3541 = vrot.lane.b32.xlu1 %v6828_v4, %s5530_s25 }
 0x31b   : > { %v6841_v40 = vadd.f32 %v2558_v57, %v6693_v41 }
 0x31c   : > { %8561 = vst [vmem:[#allocation61_spill] sm:$0xff] %v6836_v9  ;;  %3543 = vrot.lane.b32.xlu0 %v6836_v9, %s5530_s25 }
 0x31d   : > { %8562 = vst [vmem:[#allocation62_spill] sm:$0xff] %v6841_v40 }
 0x31e   : > { %3537 = vrot.lane.b32.xlu1 %v6833_v34, %s5530_s25 }
 0x31f   : > { %v4727_v58 = vpop.f32.mrb[96].mxu1 }
 0x320   : > { %v6848_v2 = vadd.f32 %v4727_v58, %v6715_v19  ;;  %v2571_v6 = vpop.f32.mrb[97].mxu1  ;;  %3539 = vrot.lane.b32.xlu0 %v6841_v40, %s5530_s25 }
 0x321   : > { %v6853_v46 = vadd.f32 %v2571_v6, %v6707_v8  ;;  %v4728_v10 = vpop.f32.mrb[98].mxu1 }
 0x322   : > { %8563 = vst [vmem:[#allocation63_spill] sm:$0xff] %v6848_v2  ;;  %v6856_v41 = vadd.f32 %v4728_v10, %v6717_v62  ;;  %v2574_v1 = vpop.f32.mrb[99].mxu1  ;;  %3549 = vrot.lane.b32.xlu1 %v6848_v2, %s5530_s25 }
 0x323   : > { %v6861_v15 = vadd.f32 %v2574_v1, %v6709_v52 }
 0x324   : > { %8564 = vst [vmem:[#allocation64_spill] sm:$0xff] %v6856_v41  ;;  %3551 = vrot.lane.b32.xlu0 %v6856_v41, %s5530_s25 }
 0x326   : > { %3545 = vrot.lane.b32.xlu1 %v6853_v46, %s5530_s25 }
 0x327   : > { %v4731_v19 = vpop.f32.mrb[100].mxu1 }
 0x328   : > { %v6868_v8 = vadd.f32 %v4731_v19, %v6731_v49  ;;  %v2587_v37 = vpop.f32.mrb[101].mxu1  ;;  %3547 = vrot.lane.b32.xlu0 %v6861_v15, %s5530_s25 }
 0x329   : > { %v6873_v62 = vadd.f32 %v2587_v37, %v6723_v54  ;;  %v4732_v60 = vpop.f32.mrb[102].mxu1  ;;  %v8578_v37 = vld [vmem:[#allocation7_spill] sm:$0xff] }
 0x32a   : > { %8565 = vst [vmem:[#allocation65_spill] sm:$0xff] %v6868_v8  ;;  %v6876_v52 = vadd.f32 %v4732_v60, %v6733_v11  ;;  %v2590_v36 = vpop.f32.mrb[103].mxu1  ;;  %3557 = vrot.lane.b32.xlu1 %v6868_v8, %s5530_s25  ;;  %v2858_v60 = vmul.f32 %v6606_v38, %v8578_v37 }
 0x32b   : > { %8566 = vst [vmem:[#allocation66_spill] sm:$0xff] %v6873_v62  ;;  %v6881_v56 = vadd.f32 %v2590_v36, %v6725_v18 }
 0x32c   : > { %3559 = vrot.lane.b32.xlu0 %v6876_v52, %s5530_s25 }
 0x32d   : > { %8567 = vst [vmem:[#allocation67_spill] sm:$0xff] %v6881_v56 }
 0x32e   : > { %3553 = vrot.lane.b32.xlu1 %v6873_v62, %s5530_s25 }
 0x32f   : > { %v4735_v49 = vpop.f32.mrb[104].mxu1 }
 0x330   : > { %v6888_v54 = vadd.f32 %v4735_v49, %v6747_v0  ;;  %v2603_v39 = vpop.f32.mrb[105].mxu1  ;;  %3555 = vrot.lane.b32.xlu0 %v6881_v56, %s5530_s25 }
 0x331   : > { %v6893_v11 = vadd.f32 %v2603_v39, %v6739_v33  ;;  %v4736_v29 = vpop.f32.mrb[106].mxu1 }
 0x332   : > { %8568 = vst [vmem:[#allocation68_spill] sm:$0xff] %v6888_v54  ;;  %v6896_v18 = vadd.f32 %v4736_v29, %v6749_v35  ;;  %v2606_v57 = vpop.f32.mrb[107].mxu1  ;;  %3565 = vrot.lane.b32.xlu1 %v6888_v54, %s5530_s25 }
 0x333   : > { %8569 = vst [vmem:[#allocation69_spill] sm:$0xff] %v6893_v11  ;;  %v6901_v58 = vadd.f32 %v2606_v57, %v6741_v14  ;;  %v6943_v57 = vadd.f32 %v6620_v20, %v2858_v60  ;;  %v2862_v60 = vmul.f32 %v6606_v38, %v8583_v3  ;;  %v2869_v3 = vmul.f32 %v6606_v38, %v6481_v63 }
 0x334   : > { %8570 = vst [vmem:[#allocation70_spill] sm:$0xff] %v6896_v18  ;;  %3567 = vrot.lane.b32.xlu0 %v6896_v18, %s5530_s25  ;;  %v2868_v63 = vmul.f32 %v6606_v38, %v6483_v31 }
 0x335   : > { %8571 = vst [vmem:[#allocation71_spill] sm:$0xff] %v6901_v58 }
 0x336   : > { %3561 = vrot.lane.b32.xlu1 %v6893_v11, %s5530_s25  ;;  %v2872_v11 = vmul.f32 %v6606_v38, %v6495_v45 }
 0x337   : > { %v4739_v0 = vpop.f32.mrb[108].mxu1 }
 0x338   : > { %v6908_v33 = vadd.f32 %v4739_v0, %v6765_v24  ;;  %v2619_v6 = vpop.f32.mrb[109].mxu1  ;;  %3563 = vrot.lane.b32.xlu0 %v6901_v58, %s5530_s25  ;;  %v8577_v24 = vld [vmem:[#allocation6_spill] sm:$0xff]  ;;  %v8580_v0 = vmov 0.0   ;;  %v2875_v58 = vmul.f32 %v6606_v38, %v6499_v13 }
 0x339   : > { %v6913_v35 = vadd.f32 %v2619_v6, %v6755_v27  ;;  %v4740_v10 = vpop.f32.mrb[110].mxu1  ;;  %v6929_v27 = vpop.permute.xlu0 %3053 }
 0x33a   : > { %8572 = vst [vmem:[#allocation72_spill] sm:$0xff] %v6908_v33  ;;  %v6916_v14 = vadd.f32 %v4740_v10, %v6767_v61  ;;  %v2622_v1 = vpop.f32.mrb[111].mxu1  ;;  %3573 = vrot.lane.b32.xlu1 %v6908_v33, %s5530_s25  ;;  %8576 = vst [vmem:[#allocation76_spill] sm:$0xff] %v6929_v27  ;;  %v2860_v61 = vmul.f32 %v6606_v38, %v8577_v24  ;;  %v8581_v24 = vld [vmem:[#allocation9_spill] sm:$0xff]  ;;  %v2865_v33 = vmul.f32 %v6606_v38, %v8584_v7 }
 0x33b   : > { %8573 = vst [vmem:[#allocation73_spill] sm:$0xff] %v6913_v35  ;;  %v6921_v19 = vadd.f32 %v2622_v1, %v6757_v30  ;;  %v8579_v30 = vld [vmem:[#allocation8_spill] sm:$0xff]  ;;  %v2859_v37 = vmul.f32 %v6606_v38, %v8581_v24  ;;  %v7045_v54 = vadd.f32 %v6620_v20, %v2875_v58 }
 0x33c   : > { %8574 = vst [vmem:[#allocation74_spill] sm:$0xff] %v6916_v14  ;;  %3575 = vrot.lane.b32.xlu0 %v6916_v14, %s5530_s25  ;;  %v2861_v49 = vmul.f32 %v6606_v38, %v8579_v30  ;;  %v6940_v29 = vadd.f32 %v6620_v20, %v2860_v61 }
 0x33d   : > { %8575 = vst [vmem:[#allocation75_spill] sm:$0xff] %v6921_v19 }
 0x33e   : > { %3569 = vrot.lane.b32.xlu1 %v6913_v35, %s5530_s25  ;;  %v6951_v30 = vadd.f32 %v6620_v20, %v2861_v49  ;;  %v8585_v35 = vld [vmem:[#allocation14_spill] sm:$0xff]  ;;  %v2866_v49 = vmul.f32 %v6606_v38, %v6476_v28  ;;  %v6981_v28 = vadd.f32 %v6620_v20, %v2865_v33  ;;  %v6998_v33 = vadd.f32 %v6620_v20, %v2869_v3 }
 0x33f   : > { %v2873_v3 = vmul.f32 %v6606_v38, %v6493_v48  ;;  %v2879_v48 = vmul.f32 %v6606_v38, %v6509_v23 }
 0x340   : > { %3571 = vrot.lane.b32.xlu0 %v6921_v19, %s5530_s25  ;;  %v2864_v19 = vmul.f32 %v6606_v38, %v8585_v35  ;;  %v6971_v35 = vadd.f32 %v6620_v20, %v2859_v37 }
 0x341   : > { %v7037_v23 = vadd.f32 %v6620_v20, %v2873_v3 }
 0x374   : > { %v3518_v36 = vpop.permute.xlu1 %3517 }
 0x375   : > { %vm3611_vm6 = vcmp.gt.f32.partialorder %v6770_v17, %v3518_v36 }
 0x376   : > { %v3520_v39 = vpop.permute.xlu0 %3519  ;;  %v4525_v6 = vsel %vm3611_vm6, 1.0, %v8580_v0 }
 0x377   : > { %vm3612_vm7 = vcmp.gt.f32.partialorder %v6776_v43, %v3520_v39  ;;  %v8582_v39 = vld [vmem:[#allocation10_spill] sm:$0xff] }
 0x378   : > { %v4526_v10 = vsel %vm3612_vm7, 1.0, %v8580_v0  ;;  %v3514_v1 = vpop.permute.xlu1 %3513  ;;  %v2863_v61 = vmul.f32 %v6606_v38, %v8582_v39  ;;  %v6986_v39 = vadd.f32 %v6620_v20, %v2864_v19 }
 0x379   : > { %v5039_v36 = vpack.i.bf16 %v4526_v10, %v4525_v6  ;;  %vm3609_vm8 = vcmp.gt.f32.partialorder %v6773_v22, %v3514_v1  ;;  %v2867_v6 = vmul.f32 %v6606_v38, %v6474_v55 }
 0x37a   : > { %v3516_v14 = vpop.permute.xlu0 %3515  ;;  %v4523_v10 = vsel %vm3609_vm8, 1.0, %v8580_v0  ;;  %v6975_v55 = vadd.f32 %v6620_v20, %v2863_v61  ;;  %v8586_v61 = vmov 19  }
 0x37b   : > { %vm3610_vm9 = vcmp.gt.f32.partialorder %v6781_v51, %v3516_v14  ;;  %5034 = vperm.xlu0 %5032, %v5039_v36   ;;  %5040 = vperm.xlu1 %5038, %v5039_v36   ;;  %v6978_v14 = vadd.f32 %v6620_v20, %v2862_v60  ;;  %v6989_v37 = vadd.f32 %v6620_v20, %v2867_v6 }
 0x37c   : > { %v4524_v7 = vsel %vm3610_vm9, 1.0, %v8580_v0  ;;  %v3526_v1 = vpop.permute.xlu1 %3525  ;;  %v6995_v60 = vadd.f32 %v6620_v20, %v2866_v49  ;;  %v2870_v49 = vmul.f32 %v6606_v38, %v6491_v25  ;;  %v2876_v25 = vmul.f32 %v6606_v38, %v6505_v26 }
 0x37d   : > { %v5051_v24 = vpack.i.bf16 %v4524_v7, %v4523_v10  ;;  %vm3615_vm10 = vcmp.gt.f32.partialorder %v6788_v53, %v3526_v1  ;;  %v8587_v10 = vmov 17   ;;  %v2871_v7 = vmul.f32 %v6606_v38, %v6489_v32 }
 0x37e   : > { %v3528_v36 = vpop.permute.xlu0 %3527  ;;  %v4529_v31 = vsel %vm3615_vm10, 1.0, %v8580_v0  ;;  %v2874_v32 = vmul.f32 %v6606_v38, %v6501_v16  ;;  %v7034_v26 = vadd.f32 %v6620_v20, %v2870_v49  ;;  %v7055_v49 = vadd.f32 %v6620_v20, %v2876_v25 }
 0x37f   : > { %vm3616_vm11 = vcmp.gt.f32.partialorder %v6796_v59, %v3528_v36  ;;  %5050 = vset.pattern.permute.xlu0 %v8586_v61  ;;  %5044 = vset.pattern.permute.xlu1 %v8587_v10  ;;  %v7006_v36 = vadd.f32 %v6620_v20, %v2868_v63  ;;  %v2877_v63 = vmul.f32 %v6606_v38, %v6503_v44  ;;  %v8594_v59 = vld [vmem:[#allocation21_spill] sm:$0xff] }
 0x380   : > { %v4530_v19 = vsel %vm3616_vm11, 1.0, %v8580_v0  ;;  %5052 = vperm.xlu0 %5050, %v5051_v24   ;;  %5046 = vperm.xlu1 %5044, %v5051_v24   ;;  %v3522_v6 = vpop.permute.xlu1 %3521  ;;  %v7028_v16 = vadd.f32 %v6620_v20, %v2871_v7  ;;  %v2885_v18 = vmul.f32 %v6606_v38, %v8594_v59 }
 0x381   : > { %v5061_v1 = vpack.i.bf16 %v4530_v19, %v4529_v31  ;;  %vm3613_vm12 = vcmp.gt.f32.partialorder %v6793_v42, %v3522_v6  ;;  %v8588_v19 = vld [vmem:[#allocation16_spill] sm:$0xff]  ;;  %v8595_v42 = vld [vmem:[#allocation22_spill] sm:$0xff] }
 0x382   : > { %v3524_v24 = vpop.permute.xlu0 %3523  ;;  %v4527_v45 = vsel %vm3613_vm12, 1.0, %v8580_v0  ;;  %v2878_v44 = vmul.f32 %v6606_v38, %v8588_v19  ;;  %v8590_v19 = vld [vmem:[#allocation18_spill] sm:$0xff]  ;;  %v2884_v53 = vmul.f32 %v6606_v38, %v8595_v42  ;;  %v7105_v8 = vadd.f32 %v6620_v20, %v2885_v18 }
 0x383   : > { %vm3614_vm13 = vcmp.gt.f32.partialorder %v6801_v21, %v3524_v24  ;;  %v7040_v24 = vadd.f32 %v6620_v20, %v2872_v11  ;;  %v7058_v11 = vadd.f32 %v6620_v20, %v2879_v48  ;;  %v8592_v48 = vld [vmem:[#allocation19_spill] sm:$0xff]  ;;  %v8600_v42 = vld [vmem:[#allocation26_spill] sm:$0xff] }
 0x384   : > { %v4528_v31 = vsel %vm3614_vm13, 1.0, %v8580_v0  ;;  %5062 = vperm.xlu0 %5050, %v5061_v1   ;;  %5057 = vperm.xlu1 %5044, %v5061_v1   ;;  %v3534_v13 = vpop.permute.xlu1 %3533  ;;  %v8589_v1 = vld [vmem:[#allocation17_spill] sm:$0xff] }
 0x385   : > { %v5066_v6 = vpack.i.bf16 %v4528_v31, %v4527_v45  ;;  %vm3619_vm14 = vcmp.gt.f32.partialorder %v6808_v5, %v3534_v13  ;;  %v2881_v21 = vmul.f32 %v6606_v38, %v8589_v1  ;;  %v7048_v45 = vadd.f32 %v6620_v20, %v2874_v32 }
 0x386   : > { %v3536_v7 = vpop.permute.xlu0 %3535  ;;  %v7051_v31 = vadd.f32 %v6620_v20, %v2877_v63  ;;  %v4533_v3 = vsel %vm3619_vm14, 1.0, %v8580_v0  ;;  %v7063_v32 = vadd.f32 %v6620_v20, %v2878_v44  ;;  %v2880_v63 = vmul.f32 %v6606_v38, %v8590_v19  ;;  %v8596_v19 = vld [vmem:[#allocation23_spill] sm:$0xff] }
 0x387   : > { %vm3620_vm15 = vcmp.gt.f32.partialorder %v6816_v12, %v3536_v7  ;;  %v7069_v25 = vadd.f32 %v6620_v20, %v2881_v21  ;;  %v2883_v7 = vmul.f32 %v6606_v38, %v8592_v48  ;;  %v8593_v12 = vld [vmem:[#allocation20_spill] sm:$0xff]  ;;  %v8599_v48 = vld [vmem:[#allocation50_spill] sm:$0xff] }
 0x388   : > { %v4534_v13 = vsel %vm3620_vm15, 1.0, %v8580_v0  ;;  %5067 = vperm.xlu1 %5044, %v5066_v6   ;;  %v3530_v58 = vpop.permute.xlu1 %3529  ;;  %v2882_v5 = vmul.f32 %v6606_v38, %v8593_v12  ;;  %v8597_v21 = vld [vmem:[#allocation24_spill] sm:$0xff]  ;;  %v3056_v56 = vmul.f32 %v8599_v48, %v8600_v42 }
 0x389   : > { %v5083_v1 = vpack.i.bf16 %v4534_v13, %v4533_v3  ;;  %vm3617_vm0 = vcmp.gt.f32.partialorder %v6813_v50, %v3530_v58  ;;  %8591 = vst [vmem:[#allocation6_spill] sm:$0xff] %v7069_v25  ;;  %v2887_v3 = vmul.f32 %v6606_v38, %v8596_v19  ;;  %v2889_v13 = vmul.f32 %v6606_v38, %v8597_v21  ;;  %v8598_v58 = vld [vmem:[#allocation25_spill] sm:$0xff]  ;;  %v8601_v19 = vld [vmem:[#allocation27_spill] sm:$0xff] }
 0x38a   : > { %v3532_v44 = vpop.permute.xlu0 %3531  ;;  %v3057_v50 = vmul.f32 %v8599_v48, %v8598_v58  ;;  %v4531_v12 = vsel %vm3617_vm0, 1.0, %v8580_v0  ;;  %v7096_v21 = vadd.f32 %v6620_v20, %v2880_v63  ;;  %v7099_v58 = vadd.f32 %v6620_v20, %v2883_v7 }
 0x38b   : > { %vm3618_vm1 = vcmp.gt.f32.partialorder %v6821_v47, %v3532_v44  ;;  %5084 = vperm.xlu0 %5050, %v5083_v1   ;;  %v3058_v44 = vmul.f32 %v8599_v48, %v8601_v19  ;;  %v8602_v47 = vld [vmem:[#allocation28_spill] sm:$0xff]  ;;  %v7102_v25 = vadd.f32 %v6620_v20, %v2882_v5  ;;  %v7108_v19 = vadd.f32 %v6620_v20, %v2884_v53 }
 0x38c   : > { %v4532_v59 = vsel %vm3618_vm1, 1.0, %v8580_v0  ;;  %5071 = vset.pattern.permute.xlu1 %v8586_v61  ;;  %v3542_v62 = vpop.permute.xlu1 %3541  ;;  %v3059_v27 = vmul.f32 %v8599_v48, %v8602_v47  ;;  %v7111_v47 = vadd.f32 %v6620_v20, %v2887_v3  ;;  %v7120_v5 = vadd.f32 %v3057_v50, %v6971_v35  ;;  %v8605_v50 = vld [vmem:[#allocation30_spill] sm:$0xff] }
 0x38d   : > { %v5089_v38 = vpack.i.bf16 %v4532_v59, %v4531_v12  ;;  %5073 = vperm.xlu1 %5071, %v5066_v6   ;;  %vm3623_vm2 = vcmp.gt.f32.partialorder %v6828_v4, %v3542_v62  ;;  %v7117_v6 = vadd.f32 %v6620_v20, %v2889_v13  ;;  %v7124_v63 = vadd.f32 %v3056_v56, %v6943_v57  ;;  %v8604_v12 = vld [vmem:[#allocation29_spill] sm:$0xff]  ;;  %v8606_v13 = vld [vmem:[#allocation31_spill] sm:$0xff] }
 0x38e   : > { %v3544_v42 = vpop.permute.xlu0 %3543  ;;  %8603 = vst [vmem:[#allocation7_spill] sm:$0xff] %v7120_v5  ;;  %v7127_v7 = vadd.f32 %v3058_v44, %v6940_v29  ;;  %v7130_v3 = vadd.f32 %v3059_v27, %v6951_v30  ;;  %v3060_v20 = vmul.f32 %v8599_v48, %v8604_v12  ;;  %v3061_v35 = vmul.f32 %v8599_v48, %v8605_v50  ;;  %v8608_v30 = vld [vmem:[#allocation45_spill] sm:$0xff]  ;;  %v8610_v50 = vld [vmem:[#allocation34_spill] sm:$0xff] }
 0x38f   : > { %vm3624_vm3 = vcmp.gt.f32.partialorder %v6836_v9, %v3544_v42  ;;  %5088 = vset.pattern.permute.xlu0 %v8587_v10  ;;  %v3062_v59 = vmul.f32 %v8599_v48, %v8606_v13  ;;  %v8607_v42 = vld [vmem:[#allocation32_spill] sm:$0xff]  ;;  %v4537_v29 = vsel %vm3623_vm2, 1.0, %v8580_v0  ;;  %vm2636_vm5 = vcmp.eq.s32.totalorder %v8608_v30, 3  ;;  %v8609_v44 = vld [vmem:[#allocation33_spill] sm:$0xff] }
 0x390   : > { %v4538_v18 = vsel %vm3624_vm3, 1.0, %v8580_v0  ;;  %5090 = vperm.xlu0 %5088, %v5089_v38   ;;  %v3538_v53 = vpop.permute.xlu1 %3537  ;;  %v3063_v56 = vmul.f32 %v8599_v48, %v8607_v42  ;;  %vm2637_vm6 = vcmp.eq.s32.totalorder %v8608_v30, 4  ;;  %v3064_v12 = vmul.f32 %v8599_v48, %v8609_v44  ;;  %v8611_v42 = vld [vmem:[#allocation35_spill] sm:$0xff] }
 0x391   : > { %5077 = vset.pattern.permute.xlu1 %v8587_v10  ;;  %v5107_v57 = vpack.i.bf16 %v4538_v18, %v4537_v29  ;;  %v3065_v13 = vmul.f32 %v8599_v48, %v8610_v50  ;;  %v3066_v9 = vmul.f32 %v8599_v48, %v8611_v42  ;;  %vm3621_vm7 = vcmp.gt.f32.partialorder %v6833_v34, %v3538_v53  ;;  %v8612_v18 = vld [vmem:[#allocation36_spill] sm:$0xff]  ;;  %v8613_v50 = vld [vmem:[#allocation37_spill] sm:$0xff]  ;;  %vm7173_vm8 = vmor %vm2636_vm5, %vm2637_vm6 }
 0x392   : > { %v3540_v27 = vpop.permute.xlu0 %3539  ;;  %5079 = vperm.xlu1 %5077, %v5083_v1   ;;  %v7156_v1 = vadd.f32 %v3060_v20, %v6978_v14  ;;  %v3067_v29 = vmul.f32 %v8599_v48, %v8612_v18  ;;  %v7162_v44 = vadd.f32 %v3061_v35, %v6975_v55  ;;  %v3068_v42 = vmul.f32 %v8599_v48, %v8613_v50  ;;  %v8627_v14 = vld [vmem:[#allocation43_spill] sm:$0xff] }
 0x393   : > { %vm3622_vm4 = vcmp.gt.f32.partialorder %v6841_v40, %v3540_v27  ;;  %v8614_v40 = vld [vmem:[#allocation38_spill] sm:$0xff]  ;;  %vm2639_vm9 = vcmp.eq.s32.totalorder %v8608_v30, 5  ;;  %v7179_v55 = vadd.f32 %v3062_v59, %v6986_v39  ;;  %v7182_v20 = vadd.f32 %v3063_v56, %v6981_v28  ;;  %v8622_v56 = vld [vmem:[#allocation40_spill] sm:$0xff] }
 0x394   : > { %5106 = vset.pattern.permute.xlu0 %v8586_v61  ;;  %v3550_v62 = vpop.permute.xlu1 %3549  ;;  %v4536_v27 = vsel %vm3622_vm4, 1.0, %v8580_v0  ;;  %v3069_v4 = vmul.f32 %v8599_v48, %v8614_v40  ;;  %v4535_v40 = vsel %vm3621_vm7, 1.0, %v8580_v0  ;;  %v7189_v35 = vadd.f32 %v3064_v12, %v6995_v60  ;;  %vm7207_vm12 = vmor %vm7173_vm8, %vm2639_vm9 }
 0x395   : > { %5108 = vperm.xlu0 %5106, %v5107_v57   ;;  %v7192_v18 = vadd.f32 %v3065_v13, %v6989_v37  ;;  %v7195_v50 = vadd.f32 %v3066_v9, %v7006_v36  ;;  %v5113_v39 = vpack.i.bf16 %v4536_v27, %v4535_v40  ;;  %v7198_v28 = vadd.f32 %v3067_v29, %v6998_v33  ;;  %v8623_v13 = vld [vmem:[#allocation41_spill] sm:$0xff] }
 0x396   : > { %v3552_v5 = vpop.permute.xlu0 %3551  ;;  %5094 = vset.pattern.permute.xlu1 %v8586_v61  ;;  %v3124_v53 = vmul.f32 1.442695, %v6770_v17  ;;  %vm3627_vm11 = vcmp.gt.f32.partialorder %v6848_v2, %v3550_v62  ;;  %vm2641_vm13 = vcmp.eq.s32.totalorder %v8608_v30, 10  ;;  %v7213_v9 = vadd.f32 %v3068_v42, %v7034_v26  ;;  %v8624_v26 = vld [vmem:[#allocation42_spill] sm:$0xff] }
 0x397   : > { %vm3628_vm10 = vcmp.gt.f32.partialorder %v6856_v41, %v3552_v5  ;;  %5096 = vperm.xlu1 %5094, %v5089_v38   ;;  %v7216_v60 = vadd.f32 %v3069_v4, %v7028_v16  ;;  %v8621_v38 = vld [vmem:[#allocation39_spill] sm:$0xff]  ;;  %v3071_v12 = vmul.f32 %v8599_v48, %v8622_v56  ;;  %v3072_v62 = vmul.f32 %v8599_v48, %v8623_v13  ;;  %vm7235_vm15 = vmor %vm7207_vm12, %vm2641_vm13 }
 0x398   : > { %v3546_v59 = vpop.permute.xlu1 %3545  ;;  %8619 = vst [vmem:[#allocation8_spill] sm:$0xff] %v7213_v9  ;;  %v4542_v33 = vsel %vm3628_vm10, 1.0, %v8580_v0  ;;  %v3070_v5 = vmul.f32 %v8599_v48, %v8621_v38  ;;  %v3126_v29 = vmul.f32 1.442695, %v6776_v43  ;;  %v3073_v4 = vmul.f32 %v8599_v48, %v8624_v26  ;;  %v8628_v38 = vld [vmem:[#allocation44_spill] sm:$0xff]  ;;  %v8630_v41 = vld [vmem:[#allocation47_spill] sm:$0xff] }
 0x399   : > { %5112 = vset.pattern.permute.xlu0 %v8587_v10  ;;  %8620 = vst [vmem:[#allocation9_spill] sm:$0xff] %v7216_v60  ;;  %v4541_v16 = vsel %vm3627_vm11, 1.0, %v8580_v0  ;;  %vm2643_vm0 = vcmp.eq.s32.totalorder %v8608_v30, 11  ;;  %v3074_v40 = vmul.f32 %v8599_v48, %v8627_v14  ;;  %v3075_v56 = vmul.f32 %v8599_v48, %v8628_v38  ;;  %v8631_v60 = vld [vmem:[#allocation48_spill] sm:$0xff] }
 0x39a   : > { %v3548_v36 = vpop.permute.xlu0 %3547  ;;  %5114 = vperm.xlu0 %5112, %v5113_v39   ;;  %5451 = vpow2.f32 %v3124_v53  ;;  %v5131_v13 = vpack.i.bf16 %v4542_v33, %v4541_v16  ;;  %v3077_v37 = vmul.f32 %v8599_v48, %v8630_v41  ;;  %v3078_v2 = vmul.f32 %v8599_v48, %v8631_v60  ;;  %vm7257_vm2 = vmor %vm7235_vm15, %vm2643_vm0 }
 0x39b   : > { %5100 = vset.pattern.permute.xlu1 %v8587_v10  ;;  %vm3626_vm14 = vcmp.gt.f32.partialorder %v6861_v15, %v3548_v36  ;;  %vm3625_vm1 = vcmp.gt.f32.partialorder %v6853_v46, %v3546_v59  ;;  %5453 = vpow2.f32 %v3126_v29  ;;  %vm2645_vm3 = vcmp.eq.s32.totalorder %v8608_v30, 12  ;;  %v8634_v36 = vld [vmem:[#allocation49_spill] sm:$0xff] }
 0x39c   : > { %5102 = vperm.xlu1 %5100, %v5107_v57   ;;  %v3558_v27 = vpop.permute.xlu1 %3557  ;;  %v8629_v57 = vld [vmem:[#allocation46_spill] sm:$0xff]  ;;  %v4540_v53 = vsel %vm3626_vm14, 1.0, %v8580_v0  ;;  %v7263_v41 = vadd.f32 %v3070_v5, %v7040_v24  ;;  %v7266_v60 = vadd.f32 %v3071_v12, %v7037_v23  ;;  %v7269_v29 = vadd.f32 %v3072_v62, %v7048_v45  ;;  %vm2646_vm5 = vmor %vm7257_vm2, %vm2645_vm3  ;;  %v8635_v59 = vld [vmem:[#allocation65_spill] sm:$0xff] }
 0x39d   : > { %v3076_v26 = vmul.f32 %v8599_v48, %v8629_v57  ;;  %v3079_v16 = vmul.f32 %v8599_v48, %v8634_v36  ;;  %v7275_v14 = vadd.f32 %v3073_v4, %v7045_v54  ;;  %v3120_v38 = vmul.f32 1.442695, %v6773_v22  ;;  %v7291_v54 = vld [vmem:[%s8402_s4] ss:$0 sm:$0xff]  ;;  %v8641_v36 = vld [vmem:[#allocation52_spill] sm:$0xff] }
 0x39e   : > { %v3560_v9 = vpop.permute.xlu0 %3559  ;;  %5130 = vset.pattern.permute.xlu0 %v8586_v61  ;;  %v4539_v24 = vsel %vm3625_vm1, 1.0, %v8580_v0  ;;  %v7283_v23 = vadd.f32 %v3074_v40, %v7055_v49  ;;  %v7286_v45 = vadd.f32 %v3075_v56, %v7051_v31  ;;  %v3122_v5 = vmul.f32 1.442695, %v6781_v51  ;;  %v8636_v4 = vld [vmem:[#allocation6_spill] sm:$0xff]  ;;  %v8637_v56 = vld [vmem:[#allocation76_spill] sm:$0xff] }
 0x39f   : > { %5132 = vperm.xlu0 %5130, %v5131_v13   ;;  %vm3632_vm4 = vcmp.gt.f32.partialorder %v6876_v52, %v3560_v9  ;;  %v5137_v12 = vpack.i.bf16 %v4540_v53, %v4539_v24  ;;  %v7299_v49 = vadd.f32 %v3076_v26, %v7063_v32  ;;  %v7302_v31 = vadd.f32 %v3077_v37, %v7058_v11  ;;  %v8640_v53 = vld [vmem:[#allocation67_spill] sm:$0xff]  ;;  %v8644_v24 = vld [vmem:[#allocation54_spill] sm:$0xff] }
 0x3a0   : > { %5118 = vset.pattern.permute.xlu1 %v8586_v61  ;;  %v3554_v42 = vpop.permute.xlu1 %3553  ;;  %vm3631_vm6 = vcmp.gt.f32.partialorder %v8635_v59, %v3558_v27  ;;  %v7310_v40 = vadd.f32 %v3079_v16, %v8636_v4  ;;  %v3087_v57 = vmul.f32 %v8599_v48, %v8637_v56  ;;  %v4546_v32 = vsel %vm3632_vm4, 1.0, %v8580_v0  ;;  %v8643_v16 = vld [vmem:[#allocation53_spill] sm:$0xff] }
 0x3a1   : > { %5120 = vperm.xlu1 %5118, %v5113_v39   ;;  %v7305_v39 = vadd.f32 %v3078_v2, %v7096_v21  ;;  %v8638_v2 = vld [vmem:[#allocation51_spill] sm:$0xff]  ;;  %v3224_v27 = vmul.f32 %v7291_v54, %v6770_v17  ;;  %5455 = vpow2.f32 %v3120_v38  ;;  %v8639_v26 = vmov 0  }
 0x3a2   : > { %v3556_v62 = vpop.permute.xlu0 %3555  ;;  %v7321_v21 = vadd.f32 %v8638_v2, %v7102_v25  ;;  %v7327_v37 = vsel %vm2646_vm5, 1, %v8639_v26  ;;  %v3222_v48 = vmul.f32 %v7291_v54, %v6773_v22  ;;  %5457 = vpow2.f32 %v3122_v5  ;;  %v8645_v5 = vld [vmem:[#allocation55_spill] sm:$0xff]  ;;  %v8648_v2 = vld [vmem:[#allocation66_spill] sm:$0xff] }
 0x3a3   : > { %5136 = vset.pattern.permute.xlu0 %v8587_v10  ;;  %v4545_v9 = vsel %vm3631_vm6, 1.0, %v8580_v0  ;;  %vm3630_vm7 = vcmp.gt.f32.partialorder %v8640_v53, %v3556_v62  ;;  %v7335_v17 = vadd.f32 %v8641_v36, %v7099_v58  ;;  %v7339_v38 = vadd.f32 %v8643_v16, %v7108_v19  ;;  %v8650_v16 = vld [vmem:[#allocation3_spill] sm:$0xff] }
 0x3a4   : > { %5138 = vperm.xlu0 %5136, %v5137_v12   ;;  %v7317_v11 = vpop.permute.xlu1 %3565  ;;  %v5452_v25 = vpop.eup %5451  ;;  %v7343_v4 = vadd.f32 %v8644_v24, %v7105_v8  ;;  %v5155_v22 = vpack.i.bf16 %v4546_v32, %v4545_v9  ;;  %v7347_v56 = vadd.f32 %v8645_v5, %v7111_v47  ;;  %v3225_v58 = vmul.f32 %v7291_v54, %v6776_v43  ;;  %v8649_v8 = vld [vmem:[#allocation2_spill] sm:$0xff] }
 0x3a5   : > { %5124 = vset.pattern.permute.xlu1 %v8587_v10  ;;  %8642 = vst [vmem:[#allocation10_spill] sm:$0xff] %v7335_v17  ;;  %vm3629_vm8 = vcmp.gt.f32.partialorder %v8648_v2, %v3554_v42  ;;  %v5454_v26 = vpop.eup %5453  ;;  %v3132_v36 = vmul.f32 1.442695, %v8649_v8  ;;  %v4544_v47 = vsel %vm3630_vm7, 1.0, %v8580_v0  ;;  %vm3287_vm9 = vcmp.eq.s32.totalorder %v7327_v37, 1  ;;  %v8653_v42 = vld [vmem:[#allocation68_spill] sm:$0xff] }
 0x3a6   : > { %v3568_v33 = vpop.permute.xlu0 %3567  ;;  %5126 = vperm.xlu1 %5124, %v5131_v13   ;;  %8646 = vst [vmem:[#allocation11_spill] sm:$0xff] %v7347_v56  ;;  %v7350_v13 = vadd.f32 %v3087_v57, %v7117_v6  ;;  %v3256_v6 = vadd.f32 %v3224_v27, %v7127_v7  ;;  %v7365_v43 = vadd.f32 %v3222_v48, %v7124_v63  ;;  %v3128_v24 = vmul.f32 1.442695, %v8650_v16  ;;  %v8651_v27 = vld [vmem:[#allocation70_spill] sm:$0xff] }
 0x3a7   : > { %v3223_v57 = vmul.f32 %v7291_v54, %v6781_v51  ;;  %v3192_v9 = vmul.f32 %v5452_v25, %v7291_v54  ;;  %v3228_v62 = vmul.f32 %v7291_v54, %v8649_v8  ;;  %v4543_v7 = vsel %vm3629_vm8, 1.0, %v8580_v0  ;;  %v8652_v51 = vld [vmem:[#allocation4_spill] sm:$0xff] }
 0x3a8   : > { %8647 = vst [vmem:[#allocation13_spill] sm:$0xff] %v7350_v13  ;;  %5154 = vset.pattern.permute.xlu0 %v8586_v61  ;;  %v7356_v19 = vpop.permute.xlu1 %3561  ;;  %vm3636_vm10 = vcmp.gt.f32.partialorder %v8651_v27, %v3568_v33  ;;  %v3257_v63 = vadd.f32 %v3225_v58, %v7130_v3  ;;  %v3134_v48 = vmul.f32 1.442695, %v8652_v51  ;;  %v5161_v5 = vpack.i.bf16 %v4544_v47, %v4543_v7  ;;  %v8654_v3 = vld [vmem:[#allocation5_spill] sm:$0xff]  ;;  %v8656_v47 = vld [vmem:[#allocation7_spill] sm:$0xff] }
 0x3a9   : > { %5156 = vperm.xlu0 %5154, %v5155_v22   ;;  %v3193_v30 = vmul.f32 %v5454_v26, %v7291_v54  ;;  %5459 = vpow2.f32 %v3132_v36  ;;  %v3226_v25 = vmul.f32 %v7291_v54, %v8650_v16  ;;  %v3229_v8 = vmul.f32 %v7291_v54, %v8652_v51 }
 0x3aa   : > { %v3564_v32 = vpop.permute.xlu0 %3563  ;;  %5142 = vset.pattern.permute.xlu1 %v8586_v61  ;;  %vm3635_vm11 = vcmp.gt.f32.partialorder %v8653_v42, %v7317_v11  ;;  %v4550_v33 = vsel %vm3636_vm10, 1.0, %v8580_v0  ;;  %v7396_v26 = vsel %vm3287_vm9, %v3192_v9, %v3256_v6  ;;  %v3255_v16 = vadd.f32 %v3223_v57, %v8656_v47  ;;  %v8657_v9 = vld [vmem:[#allocation71_spill] sm:$0xff]  ;;  %v8660_v11 = vld [vmem:[#allocation69_spill] sm:$0xff] }
 0x3ab   : > { %5144 = vperm.xlu1 %5142, %v5137_v12   ;;  %v3130_v12 = vmul.f32 1.442695, %v8654_v3  ;;  %8655 = vst [vmem:[#allocation14_spill] sm:$0xff] %v7396_v26  ;;  %v5456_v36 = vpop.eup %5455  ;;  %v7400_v7 = vadd.f32 %v3228_v62, %v7179_v55  ;;  %5461 = vpow2.f32 %v3128_v24  ;;  %v3227_v51 = vmul.f32 %v7291_v54, %v8654_v3  ;;  %v8659_v62 = vld [vmem:[#allocation12_spill] sm:$0xff] }
 0x3ac   : > { %v7387_v56 = vpop.permute.xlu1 %3573  ;;  %v5458_v13 = vpop.eup %5457  ;;  %5463 = vpow2.f32 %v3134_v48  ;;  %v4549_v6 = vsel %vm3635_vm11, 1.0, %v8580_v0  ;;  %vm3634_vm12 = vcmp.gt.f32.partialorder %v8657_v9, %v3564_v32  ;;  %v7412_v55 = vsel %vm3287_vm9, %v3193_v30, %v3257_v63 }
 0x3ad   : > { %5160 = vset.pattern.permute.xlu0 %v8587_v10  ;;  %8658 = vst [vmem:[#allocation16_spill] sm:$0xff] %v7412_v55  ;;  %v7415_v57 = vadd.f32 %v3226_v25, %v7156_v1  ;;  %v3140_v24 = vmul.f32 1.442695, %v8659_v62  ;;  %v5179_v3 = vpack.i.bf16 %v4550_v33, %v4549_v6  ;;  %v7419_v48 = vadd.f32 -0.78539, %v7396_v26  ;;  %v8662_v6 = vld [vmem:[#allocation75_spill] sm:$0xff] }
 0x3ae   : > { %v7392_v58 = vpop.permute.xlu0 %3575  ;;  %5162 = vperm.xlu0 %5160, %v5161_v5   ;;  %v7422_v47 = vadd.f32 %v3229_v8, %v7182_v20  ;;  %5465 = vpow2.f32 %v3130_v12  ;;  %vm3633_vm13 = vcmp.gt.f32.partialorder %v8660_v11, %v7356_v19  ;;  %v3190_v30 = vmul.f32 %v5456_v36, %v7291_v54  ;;  %v8661_v12 = vld [vmem:[#allocation15_spill] sm:$0xff] }
 0x3af   : > { %5148 = vset.pattern.permute.xlu1 %v8587_v10  ;;  %v4548_v1 = vsel %vm3634_vm12, 1.0, %v8580_v0  ;;  %v7430_v63 = vadd.f32 -0.78539, %v7412_v55  ;;  %v3191_v25 = vmul.f32 %v5458_v13, %v7291_v54  ;;  %v7434_v20 = vadd.f32 %v3227_v51, %v7162_v44  ;;  %v8663_v51 = vld [vmem:[#allocation58_spill] sm:$0xff]  ;;  %v8664_v55 = vld [vmem:[#allocation73_spill] sm:$0xff] }
 0x3b0   : > { %5150 = vperm.xlu1 %5148, %v5155_v22   ;;  %v3570_v32 = vpop.permute.xlu1 %3569  ;;  %v3232_v8 = vmul.f32 %v7291_v54, %v8659_v62  ;;  %v3136_v33 = vmul.f32 1.442695, %v8661_v12  ;;  %5467 = vpow2.f32 %v3140_v24  ;;  %v3230_v36 = vmul.f32 %v7291_v54, %v8661_v12 }
 0x3b1   : > { %v4547_v13 = vsel %vm3633_vm13, 1.0, %v8580_v0  ;;  %v3355_v44 = vmul.f32 0.31830987, %v7419_v48  ;;  %v3142_v62 = vmul.f32 1.442695, %v8663_v51  ;;  %v3233_v26 = vmul.f32 %v7291_v54, %v8663_v51 }
 0x3b2   : > { %v3572_v22 = vpop.permute.xlu0 %3571  ;;  %5178 = vset.pattern.permute.xlu0 %v8586_v61  ;;  %vm3637_vm15 = vcmp.gt.f32.partialorder %v8664_v55, %v3570_v32  ;;  %v3356_v12 = vmul.f32 0.31830987, %v7430_v63  ;;  %v7457_v19 = vsel %vm3287_vm9, %v3191_v25, %v3255_v16  ;;  %5469 = vpow2.f32 %v3136_v33  ;;  %v8667_v32 = vld [vmem:[#allocation59_spill] sm:$0xff]  ;;  %v8669_v16 = vld [vmem:[#allocation74_spill] sm:$0xff] }
 0x3b3   : > { %5180 = vperm.xlu0 %5178, %v5179_v3   ;;  %vm3638_vm14 = vcmp.gt.f32.partialorder %v8662_v6, %v3572_v22  ;;  %v5185_v22 = vpack.i.bf16 %v4548_v1, %v4547_v13  ;;  %v5460_v24 = vpop.eup %5459  ;;  %8665 = vst [vmem:[#allocation17_spill] sm:$0xff] %v7457_v19  ;;  %v7465_v1 = vadd.f32 %v3232_v8, %v7195_v50  ;;  %v3138_v13 = vmul.f32 1.442695, %v8667_v32 }
 0x3b4   : > { %5166 = vset.pattern.permute.xlu1 %v8586_v61  ;;  %v4552_v6 = vsel %vm3638_vm14, 1.0, %v8580_v0  ;;  %v7471_v17 = vadd.f32 %v3230_v36, %v7189_v35  ;;  %vm3640_vm0 = vcmp.gt.f32.partialorder %v8669_v16, %v7392_v58  ;;  %v4551_v25 = vsel %vm3637_vm15, 1.0, %v8580_v0 }
 0x3b5   : > { %5168 = vperm.xlu1 %5166, %v5161_v5   ;;  %v7462_v5 = vsel %vm3287_vm9, %v3190_v30, %v7365_v43  ;;  %v7468_v51 = vpop.eup %5461  ;;  %v3387_v43 = vfloor.f32 %v3355_v44  ;;  %v3231_v50 = vmul.f32 %v7291_v54, %v8667_v32  ;;  %v7479_v8 = vpack.i.bf16 %v4552_v6, %v4551_v25  ;;  %v8672_v6 = vld [vmem:[#allocation60_spill] sm:$0xff] }
 0x3b6   : > { %8666 = vst [vmem:[#allocation18_spill] sm:$0xff] %v7462_v5  ;;  %8668 = vst [vmem:[#allocation19_spill] sm:$0xff] %v7471_v17  ;;  %v5464_v30 = vpop.eup %5463  ;;  %v7482_v33 = vadd.f32 -0.78539, %v7457_v19  ;;  %v7485_v35 = vadd.f32 -0.78539, %v7462_v5  ;;  %5471 = vpow2.f32 %v3142_v62  ;;  %v7488_v36 = vadd.f32 %v3233_v26, %v7198_v28 }
 0x3b7   : > { %5184 = vset.pattern.permute.xlu0 %v8587_v10  ;;  %v8671_v17 = vld [vmem:[#allocation72_spill] sm:$0xff]  ;;  %v3388_v44 = vfloor.f32 %v3356_v12  ;;  %5473 = vpow2.f32 %v3138_v13  ;;  %v3148_v32 = vmul.f32 1.442695, %v8672_v6  ;;  %v4554_v62 = vsel %vm3640_vm0, 1.0, %v8580_v0 }
 0x3b8   : > { %5186 = vperm.xlu0 %5184, %v5185_v22   ;;  %8670 = vst [vmem:[#allocation20_spill] sm:$0xff] %v7488_v36  ;;  %vm3639_vm1 = vcmp.gt.f32.partialorder %v8671_v17, %v7387_v56  ;;  %v7492_v55 = vpop.eup %5465  ;;  %v3419_v28 = vmul.f32 3.1415927, %v3387_v43  ;;  %v3196_v26 = vmul.f32 %v5460_v24, %v7291_v54  ;;  %v3197_v56 = vmul.f32 %v5464_v30, %v7291_v54 }
 0x3b9   : > { %5172 = vset.pattern.permute.xlu1 %v8587_v10  ;;  %v7505_v12 = vadd.f32 %v3231_v50, %v7192_v18  ;;  %v4553_v13 = vsel %vm3639_vm1, 1.0, %v8580_v0  ;;  %v3354_v25 = vmul.f32 0.31830987, %v7482_v33  ;;  %v3144_v5 = vmul.f32 1.442695, %v6833_v34  ;;  %v8674_v50 = vld [vmem:[#allocation61_spill] sm:$0xff] }
 0x3ba   : > { %5174 = vperm.xlu1 %5172, %v5179_v3   ;;  %v3236_v3 = vmul.f32 %v7291_v54, %v8672_v6  ;;  %v3353_v6 = vmul.f32 0.31830987, %v7485_v35  ;;  %v7511_v58 = vpop.eup %5467  ;;  %v3234_v24 = vmul.f32 %v7291_v54, %v6833_v34  ;;  %v5214_v43 = vpack.i.bf16 %v4554_v62, %v4553_v13  ;;  %v8676_v62 = vld [vmem:[#allocation8_spill] sm:$0xff]  ;;  %v8677_v13 = vld [vmem:[#allocation63_spill] sm:$0xff] }
 0x3bb   : > { %8673 = vst [vmem:[#allocation21_spill] sm:$0xff] %v7505_v12  ;;  %v3420_v30 = vmul.f32 3.1415927, %v3388_v44  ;;  %5475 = vpow2.f32 %v3148_v32  ;;  %v3150_v19 = vmul.f32 1.442695, %v8674_v50  ;;  %v3237_v0 = vmul.f32 %v7291_v54, %v8674_v50  ;;  %v8675_v12 = vld [vmem:[#allocation62_spill] sm:$0xff] }
 0x3bc   : > { %5203 = vperm.xlu0 %5184, %v7479_v8   ;;  %v7517_v18 = vadd.f32 %v3236_v3, %v7263_v41  ;;  %v3146_v16 = vmul.f32 1.442695, %v8675_v12  ;;  %v3235_v36 = vmul.f32 %v7291_v54, %v8675_v12  ;;  %v7529_v34 = vsel %vm3287_vm9, %v3196_v26, %v7400_v7 }
 0x3bd   : > { %v7534_v41 = vsel %vm3287_vm9, %v3197_v56, %v7422_v47  ;;  %v3451_v44 = vsub.f32 %v7419_v48, %v3419_v28  ;;  %v3386_v32 = vfloor.f32 %v3354_v25  ;;  %v3385_v3 = vfloor.f32 %v3353_v6 }
 0x3be   : > { %5190 = vset.pattern.permute.xlu1 %v8586_v61  ;;  %5477 = vpow2.f32 %v3144_v5  ;;  %v7540_v12 = vadd.f32 %v3234_v24, %v8676_v62  ;;  %v3156_v50 = vmul.f32 1.442695, %v8677_v13  ;;  %v3452_v7 = vsub.f32 %v7430_v63, %v3420_v30  ;;  %v8679_v30 = vld [vmem:[#allocation64_spill] sm:$0xff] }
 0x3bf   : > { %5192 = vperm.xlu1 %5190, %v5185_v22   ;;  %v7536_v22 = vpop.eup %5469  ;;  %5479 = vpow2.f32 %v3150_v19  ;;  %v3240_v47 = vmul.f32 %v7291_v54, %v8677_v13  ;;  %v7548_v26 = vadd.f32 -0.78539, %v7529_v34  ;;  %v7551_v48 = vadd.f32 -0.78539, %v7534_v41 }
 0x3c0   : > { %5213 = vset.pattern.permute.xlu0 %v8586_v61  ;;  %v7553_v5 = vpop.eup %5471  ;;  %v7556_v28 = vadd.f32 %v3237_v0, %v7266_v60  ;;  %5481 = vpow2.f32 %v3146_v16  ;;  %v3152_v63 = vmul.f32 1.442695, %v6853_v46  ;;  %v3238_v25 = vmul.f32 %v7291_v54, %v6853_v46 }
 0x3c1   : > { %5215 = vperm.xlu0 %5213, %v5214_v43   ;;  %v7562_v19 = vpop.eup %5473  ;;  %v7566_v6 = vadd.f32 0.78539, %v3451_v44  ;;  %v3418_v24 = vmul.f32 3.1415927, %v3386_v32  ;;  %5483 = vpow2.f32 %v3156_v50  ;;  %v3158_v62 = vmul.f32 1.442695, %v8679_v30 }
 0x3c2   : > { %v7569_v0 = vadd.f32 0.78539, %v3452_v7  ;;  %v7572_v60 = vadd.f32 %v3240_v47, %v7283_v23  ;;  %v3359_v16 = vmul.f32 0.31830987, %v7548_v26  ;;  %v3194_v46 = vmul.f32 %v7468_v51, %v7291_v54 }
 0x3c3   : > { %5196 = vset.pattern.permute.xlu1 %v8587_v10  ;;  %v8678_v10 = vld [vmem:[#allocation9_spill] sm:$0xff]  ;;  %5485 = vpow2.f32 %v3152_v63  ;;  %v3241_v44 = vmul.f32 %v7291_v54, %v8679_v30  ;;  %v3154_v32 = vmul.f32 1.442695, %v6861_v15  ;;  %v3164_v13 = vmul.f32 1.442695, %v8635_v59 }
 0x3c4   : > { %5198 = vperm.xlu1 %5196, %v5214_v43   ;;  %v7559_v56 = vadd.f32 %v3235_v36, %v8678_v10  ;;  %v3417_v43 = vmul.f32 3.1415927, %v3385_v3  ;;  %v3360_v36 = vmul.f32 0.31830987, %v7551_v48  ;;  %v3239_v3 = vmul.f32 %v7291_v54, %v6861_v15 }
 0x3c5   : > { %v7585_v23 = vpop.eup %5475  ;;  %v3450_v51 = vsub.f32 %v7482_v33, %v3418_v24  ;;  %5487 = vpow2.f32 %v3158_v62  ;;  %v3244_v7 = vmul.f32 %v7291_v54, %v8635_v59  ;;  %v3160_v47 = vmul.f32 1.442695, %v8648_v2 }
 0x3c6   : > { %v3449_v50 = vsub.f32 %v7485_v35, %v3417_v43  ;;  %v3195_v15 = vmul.f32 %v7492_v55, %v7291_v54  ;;  %v3392_v10 = vfloor.f32 %v3360_v36  ;;  %v7603_v33 = vsel %vm3287_vm9, %v3194_v46, %v7415_v57 }
 0x3c7   : > { %8680 = vst [vmem:[#allocation22_spill] sm:$0xff] %v7603_v33  ;;  %v7608_v63 = vadd.f32 %v3241_v44, %v7286_v45  ;;  %5489 = vpow2.f32 %v3154_v32  ;;  %v7611_v59 = vadd.f32 %v3239_v3, %v7275_v14  ;;  %v3166_v55 = vmul.f32 1.442695, %v6876_v52 }
 0x3c8   : > { %5207 = vset.pattern.permute.xlu1 %v8586_v61  ;;  %v7588_v61 = vadd.f32 %v3238_v25, %v7269_v29  ;;  %v3391_v29 = vfloor.f32 %v3359_v16  ;;  %v7605_v35 = vpop.eup %5477  ;;  %5491 = vpow2.f32 %v3164_v13  ;;  %v7618_v24 = vadd.f32 0.78539, %v3450_v51 }
 0x3c9   : > { %5209 = vperm.xlu1 %5207, %v7479_v8   ;;  %v3242_v8 = vmul.f32 %v7291_v54, %v8648_v2  ;;  %v7614_v25 = vpop.eup %5479  ;;  %v3245_v2 = vmul.f32 %v7291_v54, %v6876_v52  ;;  %v7620_v57 = vadd.f32 0.78539, %v3449_v50  ;;  %v7625_v45 = vadd.f32 %v3244_v7, %v7305_v39 }
 0x3ca   : > { %v7622_v43 = vpop.eup %5481  ;;  %5493 = vpow2.f32 %v3160_v47  ;;  %v7630_v14 = vsel %vm3287_vm9, %v3195_v15, %v7434_v20  ;;  %v7633_v30 = vadd.f32 -0.78539, %v7603_v33  ;;  %v3162_v62 = vmul.f32 1.442695, %v8640_v53 }
 0x3cb   : > { %8681 = vst [vmem:[#allocation23_spill] sm:$0xff] %v7630_v14  ;;  %v7636_v52 = vadd.f32 %v3242_v8, %v7299_v49  ;;  %v3423_v16 = vmul.f32 3.1415927, %v3391_v29  ;;  %v3424_v36 = vmul.f32 3.1415927, %v3392_v10  ;;  %v7639_v46 = vpop.eup %5483  ;;  %5495 = vpow2.f32 %v3166_v55 }
 0x3cc   : > { %v3243_v39 = vmul.f32 %v7291_v54, %v8640_v53  ;;  %v3172_v44 = vmul.f32 1.442695, %v8653_v42  ;;  %v3248_v20 = vmul.f32 %v7291_v54, %v8653_v42  ;;  %v7647_v32 = vadd.f32 %v3245_v2, %v7310_v40 }
 0x3cd   : > { %v3168_v49 = vmul.f32 1.442695, %v8660_v11  ;;  %v3246_v3 = vmul.f32 %v7291_v54, %v8660_v11  ;;  %v7653_v13 = vadd.f32 -0.78539, %v7630_v14  ;;  %v7655_v51 = vpop.eup %5485  ;;  %v3174_v53 = vmul.f32 1.442695, %v8651_v27 }
 0x3ce   : > { %v3249_v50 = vmul.f32 %v7291_v54, %v8651_v27  ;;  %v3357_v42 = vmul.f32 0.31830987, %v7633_v30  ;;  %v3200_v40 = vmul.f32 %v7511_v58, %v7291_v54  ;;  %5497 = vpow2.f32 %v3162_v62  ;;  %v8683_v62 = vld [vmem:[#allocation20_spill] sm:$0xff] }
 0x3cf   : > { %v3455_v7 = vsub.f32 %v7548_v26, %v3423_v16  ;;  %v3456_v11 = vsub.f32 %v7551_v48, %v3424_v36  ;;  %v3201_v47 = vmul.f32 %v7553_v5, %v7291_v54  ;;  %v5488_v15 = vpop.eup %5487  ;;  %v7668_v8 = vadd.f32 %v3243_v39, %v7302_v31  ;;  %v8685_v36 = vld [vmem:[#allocation73_spill] sm:$0xff] }
 0x3d0   : > { %5499 = vpow2.f32 %v3172_v44  ;;  %v7671_v27 = vadd.f32 %v3248_v20, %v7339_v38  ;;  %v3170_v29 = vmul.f32 1.442695, %v8657_v9  ;;  %v7675_v58 = vadd.f32 %v3246_v3, %v7321_v21  ;;  %v8686_v20 = vld [vmem:[#allocation10_spill] sm:$0xff] }
 0x3d1   : > { %5501 = vpow2.f32 %v3168_v49  ;;  %v3247_v26 = vmul.f32 %v7291_v54, %v8657_v9  ;;  %v3358_v48 = vmul.f32 0.31830987, %v7653_v13  ;;  %v5490_v5 = vpop.eup %5489  ;;  %v7681_v31 = vadd.f32 %v3249_v50, %v7343_v4 }
 0x3d2   : > { %5503 = vpow2.f32 %v3174_v53  ;;  %v3389_v10 = vfloor.f32 %v3357_v42  ;;  %v7686_v38 = vsel %vm3287_vm9, %v3200_v40, %v7465_v1  ;;  %v7688_v55 = vpop.eup %5491  ;;  %v3180_v21 = vmul.f32 1.442695, %v8671_v17  ;;  %v8687_v40 = vld [vmem:[#allocation74_spill] sm:$0xff] }
 0x3d3   : > { %8682 = vst [vmem:[#allocation24_spill] sm:$0xff] %v7686_v38  ;;  %v7691_v2 = vadd.f32 0.78539, %v3455_v7  ;;  %v7693_v9 = vadd.f32 0.78539, %v3456_v11  ;;  %v7698_v16 = vsel %vm3287_vm9, %v3201_v47, %v8683_v62  ;;  %5505 = vpow2.f32 %v3170_v29 }
 0x3d4   : > { %8684 = vst [vmem:[#allocation25_spill] sm:$0xff] %v7698_v16  ;;  %v7700_v4 = vpop.eup %5493  ;;  %v3252_v1 = vmul.f32 %v7291_v54, %v8671_v17  ;;  %v3176_v39 = vmul.f32 1.442695, %v8685_v36  ;;  %v3198_v44 = vmul.f32 %v7536_v22, %v7291_v54  ;;  %v7708_v49 = vadd.f32 %v3247_v26, %v8686_v20 }
 0x3d5   : > { %v3250_v3 = vmul.f32 %v7291_v54, %v8685_v36  ;;  %v3390_v53 = vfloor.f32 %v3358_v48  ;;  %v7713_v50 = vadd.f32 -0.78539, %v7686_v38  ;;  %v5496_v42 = vpop.eup %5495  ;;  %v3182_v7 = vmul.f32 1.442695, %v8687_v40  ;;  %v8688_v48 = vld [vmem:[#allocation57_spill] sm:$0xff]  ;;  %v8689_v36 = vld [vmem:[#allocation19_spill] sm:$0xff] }
 0x3d6   : > { %v7716_v11 = vmul.f32 3.1415927, %v3389_v10  ;;  %v7719_v17 = vadd.f32 -0.78539, %v7698_v16  ;;  %v3199_v22 = vmul.f32 %v7562_v19, %v7291_v54  ;;  %5507 = vpow2.f32 %v3180_v21 }
 0x3d7   : > { %v3204_v47 = vmul.f32 %v7585_v23, %v7291_v54  ;;  %v3205_v29 = vmul.f32 %v7614_v25, %v7291_v54  ;;  %v3202_v26 = vmul.f32 %v7605_v35, %v7291_v54  ;;  %v7730_v62 = vadd.f32 %v3252_v1, %v8688_v48  ;;  %v8691_v23 = vld [vmem:[#allocation56_spill] sm:$0xff]  ;;  %v8693_v25 = vld [vmem:[#allocation75_spill] sm:$0xff]  ;;  %v8694_v48 = vld [vmem:[#allocation21_spill] sm:$0xff] }
 0x3d8   : > { %5509 = vpow2.f32 %v3176_v39  ;;  %v3253_v10 = vmul.f32 %v7291_v54, %v8687_v40  ;;  %v7737_v19 = vsel %vm3287_vm9, %v3198_v44, %v8689_v36  ;;  %v7739_v21 = vpop.eup %5497  ;;  %v7742_v20 = vadd.f32 %v3250_v3, %v8691_v23 }
 0x3d9   : > { %8690 = vst [vmem:[#allocation50_spill] sm:$0xff] %v7737_v19  ;;  %v3178_v38 = vmul.f32 1.442695, %v8693_v25  ;;  %v3363_v35 = vmul.f32 0.31830987, %v7713_v50  ;;  %v3203_v1 = vmul.f32 %v7622_v43, %v7291_v54  ;;  %5511 = vpow2.f32 %v3182_v7 }
 0x3da   : > { %8692 = vst [vmem:[#allocation26_spill] sm:$0xff] %v7742_v20  ;;  %v7748_v39 = vpop.eup %5499  ;;  %v3251_v40 = vmul.f32 %v7291_v54, %v8693_v25  ;;  %v3364_v44 = vmul.f32 0.31830987, %v7719_v17  ;;  %v7756_v3 = vsel %vm3287_vm9, %v3199_v22, %v8694_v48  ;;  %v7761_v23 = vadd.f32 -0.78539, %v7737_v19 }
 0x3db   : > { %8695 = vst [vmem:[#allocation27_spill] sm:$0xff] %v7756_v3  ;;  %v7758_v36 = vpop.eup %5501  ;;  %v7766_v43 = vsel %vm3287_vm9, %v3204_v47, %v7517_v18  ;;  %v7771_v7 = vsel %vm3287_vm9, %v3205_v29, %v7556_v28  ;;  %v7776_v22 = vsel %vm3287_vm9, %v3202_v26, %v7540_v12  ;;  %v3422_v48 = vmul.f32 3.1415927, %v3390_v53  ;;  %v8700_v26 = vld [vmem:[#allocation13_spill] sm:$0xff] }
 0x3dc   : > { %8696 = vst [vmem:[#allocation28_spill] sm:$0xff] %v7766_v43  ;;  %8697 = vst [vmem:[#allocation29_spill] sm:$0xff] %v7771_v7  ;;  %v7778_v25 = vpop.eup %5503  ;;  %v3208_v20 = vmul.f32 %v7639_v46, %v7291_v54  ;;  %v3209_v19 = vmul.f32 %v5488_v15, %v7291_v54  ;;  %v3206_v18 = vmul.f32 %v7655_v51, %v7291_v54  ;;  %v3395_v47 = vfloor.f32 %v3363_v35 }
 0x3dd   : > { %8698 = vst [vmem:[#allocation30_spill] sm:$0xff] %v7776_v22  ;;  %v7786_v28 = vadd.f32 -0.78539, %v7756_v3  ;;  %v7791_v12 = vsel %vm3287_vm9, %v3203_v1, %v7559_v56  ;;  %v3207_v29 = vmul.f32 %v5490_v5, %v7291_v54  ;;  %v7794_v53 = vpop.eup %5505  ;;  %v7797_v46 = vadd.f32 %v3253_v10, %v8700_v26 }
 0x3de   : > { %8699 = vst [vmem:[#allocation31_spill] sm:$0xff] %v7791_v12  ;;  %v7800_v15 = vadd.f32 -0.78539, %v7766_v43  ;;  %v7803_v51 = vadd.f32 -0.78539, %v7771_v7  ;;  %5513 = vpow2.f32 %v3178_v38  ;;  %v3453_v56 = vsub.f32 %v7633_v30, %v7716_v11 }
 0x3df   : > { %8701 = vst [vmem:[#allocation32_spill] sm:$0xff] %v7797_v46  ;;  %v7806_v35 = vadd.f32 -0.78539, %v7776_v22  ;;  %v3396_v1 = vfloor.f32 %v3364_v44  ;;  %v3361_v5 = vmul.f32 0.31830987, %v7761_v23  ;;  %v7817_v10 = vsel %vm3287_vm9, %v3208_v20, %v7572_v60  ;;  %v8707_v22 = vld [vmem:[#allocation11_spill] sm:$0xff] }
 0x3e0   : > { %v7812_v3 = vadd.f32 -0.78539, %v7791_v12  ;;  %8702 = vst [vmem:[#allocation33_spill] sm:$0xff] %v7817_v10  ;;  %v7822_v26 = vsel %vm3287_vm9, %v3209_v19, %v7608_v63  ;;  %v7827_v30 = vsel %vm3287_vm9, %v3206_v18, %v7588_v61  ;;  %v7829_v38 = vpop.eup %5507  ;;  %v3427_v11 = vmul.f32 3.1415927, %v3395_v47 }
 0x3e1   : > { %8703 = vst [vmem:[#allocation34_spill] sm:$0xff] %v7822_v26  ;;  %8704 = vst [vmem:[#allocation35_spill] sm:$0xff] %v7827_v30  ;;  %v3362_v44 = vmul.f32 0.31830987, %v7786_v28  ;;  %v7835_v60 = vsel %vm3287_vm9, %v3207_v29, %v7611_v59  ;;  %v3212_v20 = vmul.f32 %v7688_v55, %v7291_v54  ;;  %v3367_v19 = vmul.f32 0.31830987, %v7800_v15 }
 0x3e2   : > { %8705 = vst [vmem:[#allocation36_spill] sm:$0xff] %v7835_v60  ;;  %v7839_v63 = vpop.eup %5509  ;;  %v3368_v61 = vmul.f32 0.31830987, %v7803_v51  ;;  %v3365_v18 = vmul.f32 0.31830987, %v7806_v35  ;;  %v3213_v47 = vmul.f32 %v5496_v42, %v7291_v54  ;;  %v7846_v12 = vadd.f32 %v3251_v40, %v8707_v22 }
 0x3e3   : > { %8706 = vst [vmem:[#allocation37_spill] sm:$0xff] %v7839_v63  ;;  %v7849_v43 = vadd.f32 -0.78539, %v7817_v10  ;;  %v7852_v59 = vadd.f32 -0.78539, %v7822_v26  ;;  %v7857_v29 = vpop.eup %5511  ;;  %v3454_v7 = vsub.f32 %v7653_v13, %v3422_v48  ;;  %v3393_v63 = vfloor.f32 %v3361_v5 }
 0x3e4   : > { %8708 = vst [vmem:[#allocation38_spill] sm:$0xff] %v7846_v12  ;;  %v7855_v55 = vadd.f32 -0.78539, %v7827_v30  ;;  %v3366_v16 = vmul.f32 0.31830987, %v7812_v3  ;;  %v3394_v10 = vfloor.f32 %v3362_v44  ;;  %v7869_v26 = vsel %vm3287_vm9, %v3212_v20, %v7625_v45 }
 0x3e5   : > { %v7862_v42 = vadd.f32 -0.78539, %v7835_v60  ;;  %v7864_v40 = vadd.f32 0.78539, %v3453_v56  ;;  %v3428_v22 = vmul.f32 3.1415927, %v3396_v1  ;;  %v3459_v30 = vsub.f32 %v7713_v50, %v3427_v11 }
 0x3e6   : > { %8710 = vst [vmem:[#allocation40_spill] sm:$0xff] %v7869_v26  ;;  %v3399_v12 = vfloor.f32 %v3367_v19  ;;  %v3400_v14 = vfloor.f32 %v3368_v61  ;;  %v7875_v13 = vsel %vm3287_vm9, %v3213_v47, %v7647_v32  ;;  %v3397_v48 = vfloor.f32 %v3365_v18 }
 0x3e7   : > { %8709 = vst [vmem:[#allocation39_spill] sm:$0xff] %v7864_v40  ;;  %v3371_v56 = vmul.f32 0.31830987, %v7849_v43  ;;  %v3372_v1 = vmul.f32 0.31830987, %v7852_v59  ;;  %v3398_v60 = vfloor.f32 %v3366_v16  ;;  %v3460_v32 = vsub.f32 %v7719_v17, %v3428_v22 }
 0x3e8   : > { %v3369_v5 = vmul.f32 0.31830987, %v7855_v55  ;;  %v3425_v44 = vmul.f32 3.1415927, %v3393_v63  ;;  %v3370_v45 = vmul.f32 0.31830987, %v7862_v42  ;;  %v7884_v11 = vpop.eup %5513  ;;  %v3210_v16 = vmul.f32 %v7700_v4, %v7291_v54 }
 0x3e9   : > { %v7882_v50 = vadd.f32 -0.78539, %v7869_v26  ;;  %8711 = vst [vmem:[#allocation41_spill] sm:$0xff] %v7884_v11  ;;  %v7886_v20 = vadd.f32 0.78539, %v3454_v7  ;;  %v3403_v26 = vfloor.f32 %v3371_v56  ;;  %v3404_v46 = vfloor.f32 %v3372_v1  ;;  %v8713_v4 = vld [vmem:[#allocation45_spill] sm:$0xff] }
 0x3ea   : > { %v3426_v19 = vmul.f32 3.1415927, %v3394_v10  ;;  %v7890_v61 = vadd.f32 -0.78539, %v7875_v13  ;;  %v7892_v18 = vadd.f32 0.78539, %v3459_v30  ;;  %v3401_v40 = vfloor.f32 %v3369_v5 }
 0x3eb   : > { %8712 = vst [vmem:[#allocation42_spill] sm:$0xff] %v7886_v20  ;;  %v3431_v47 = vmul.f32 3.1415927, %v3399_v12  ;;  %v3432_v63 = vmul.f32 3.1415927, %v3400_v14  ;;  %v3457_v7 = vsub.f32 %v7761_v23, %v3425_v44  ;;  %v3402_v20 = vfloor.f32 %v3370_v45 }
 0x3ec   : > { %v3429_v33 = vmul.f32 3.1415927, %v3397_v48  ;;  %v3430_v11 = vmul.f32 3.1415927, %v3398_v60  ;;  %v3375_v17 = vmul.f32 0.31830987, %v7882_v50  ;;  %v3458_v30 = vsub.f32 %v7786_v28, %v3426_v19 }
 0x3ed   : > { %v7898_v10 = vadd.f32 0.78539, %v3460_v32  ;;  %v3376_v12 = vmul.f32 0.31830987, %v7890_v61  ;;  %v3211_v14 = vmul.f32 %v7739_v21, %v7291_v54  ;;  %vm2647_vm2 = vcmp.eq.s32.totalorder %v8713_v4, 6 }
 0x3ee   : > { %v3463_v22 = vsub.f32 %v7800_v15, %v3431_v47  ;;  %v3464_v48 = vsub.f32 %v7803_v51, %v3432_v63  ;;  %v7910_v23 = vsel %vm3287_vm9, %v3210_v16, %v7636_v52  ;;  %v3461_v60 = vsub.f32 %v7806_v35, %v3429_v33 }
 0x3ef   : > { %v3435_v56 = vmul.f32 3.1415927, %v3403_v26  ;;  %v3436_v28 = vmul.f32 3.1415927, %v3404_v46  ;;  %v3433_v1 = vmul.f32 3.1415927, %v3401_v40  ;;  %v3462_v21 = vsub.f32 %v7812_v3, %v3430_v11 }
 0x3f0   : > { %v7913_v5 = vadd.f32 0.78539, %v3457_v7  ;;  %v3434_v44 = vmul.f32 3.1415927, %v3402_v20  ;;  %v3407_v45 = vfloor.f32 %v3375_v17  ;;  %v7916_v32 = vadd.f32 0.78539, %v3458_v30 }
 0x3f1   : > { %v3408_v15 = vfloor.f32 %v3376_v12  ;;  %v7921_v51 = vsel %vm3287_vm9, %v3211_v14, %v7668_v8  ;;  %v7924_v52 = vadd.f32 -0.78539, %v7910_v23  ;;  %v8714_v33 = vmov 0.0  }
 0x3f2   : > { %v7929_v46 = vsel %vm2647_vm2, 1.0, %v8714_v33  ;;  %vm2648_vm3 = vcmp.eq.s32.totalorder %v8713_v4, 13  ;;  %v7932_v3 = vadd.f32 0.78539, %v3463_v22  ;;  %v7934_v35 = vadd.f32 0.78539, %v3464_v48 }
 0x3f3   : > { %v7936_v26 = vadd.f32 0.78539, %v3461_v60  ;;  %v3467_v40 = vsub.f32 %v7849_v43, %v3435_v56  ;;  %v3468_v8 = vsub.f32 %v7852_v59, %v3436_v28  ;;  %v3465_v11 = vsub.f32 %v7855_v55, %v3433_v1  ;;  %vm7999_vm4 = vmor %vm2647_vm2, %vm2648_vm3 }
 0x3f4   : > { %v7941_v20 = vadd.f32 0.78539, %v3462_v21  ;;  %v3466_v19 = vsub.f32 %v7862_v42, %v3434_v44  ;;  %v7944_v47 = vmul.f32 3.1415927, %v3407_v45  ;;  %v7947_v63 = vadd.f32 -0.78539, %v7921_v51 }
 0x3f5   : > { %v7952_v7 = vsel %vm2648_vm3, 1.0, %v8714_v33  ;;  %v7954_v17 = vmul.f32 3.1415927, %v3408_v15  ;;  %v7957_v59 = vmul.f32 0.31830987, %v7924_v52  ;;  %v3216_v55 = vmul.f32 %v7748_v39, %v7291_v54 }
 0x3f6   : > { %v7961_v22 = vadd.f32 0.78539, %v3467_v40  ;;  %v7963_v48 = vadd.f32 0.78539, %v3468_v8  ;;  %v7965_v60 = vadd.f32 0.78539, %v3465_v11  ;;  %v3217_v56 = vmul.f32 %v7778_v25, %v7291_v54 }
 0x3f7   : > { %v7973_v44 = vadd.f32 0.78539, %v3466_v19  ;;  %v3471_v45 = vsub.f32 %v7882_v50, %v7944_v47  ;;  %v3374_v15 = vmul.f32 0.31830987, %v7947_v63  ;;  %v7981_v33 = vsel %vm3287_vm9, %v3216_v55, %v7671_v27 }
 0x3f8   : > { %8715 = vst [vmem:[#allocation43_spill] sm:$0xff] %v7981_v33  ;;  %v3405_v19 = vfloor.f32 %v7957_v59  ;;  %v7990_v27 = vsel %vm3287_vm9, %v3217_v56, %v7681_v31  ;;  %v7993_v55 = vadd.f32 -0.78539, %v7981_v33  ;;  %vm4219_vm5 = vcmask 130048  }
 0x3fa   : > { %v5035_v16 = vpop.permute.xlu0 %5034  ;;  %v5041_v43 = vpop.permute.xlu1 %5040 }
 0x3fb   : > { %v5037_v42 = vunpack.i.h.bf16 %v5035_v16  ;;  %v5036_v30 = vunpack.i.l.bf16 %v5035_v16  ;;  %v5043_v12 = vunpack.i.h.bf16 %v5041_v43  ;;  %v5042_v14 = vunpack.i.l.bf16 %v5041_v43 }
 0x3fc   : > { %v3472_v16 = vsub.f32 %v7890_v61, %v7954_v17 }
 0x3fd   : > { %v3900_v28 = vmul.f32 %v5037_v42, %v7929_v46  ;;  %v3899_v1 = vmul.f32 %v5036_v30, %v7929_v46  ;;  %v4060_v39 = vmul.f32 %v5043_v12, %v7952_v7  ;;  %v4059_v21 = vmul.f32 %v5042_v14, %v7952_v7 }
 0x3ff   : > { %v4092_v25 = vadd.f32 %v4060_v39, %v3900_v28  ;;  %v4091_v40 = vadd.f32 %v4059_v21, %v3899_v1  ;;  %v5053_v8 = vpop.permute.xlu0 %5052  ;;  %v5047_v11 = vpop.permute.xlu1 %5046  ;;  %v3406_v39 = vfloor.f32 %v3374_v15 }
 0x400   : > { %v5055_v43 = vunpack.i.h.bf16 %v5053_v8  ;;  %v5054_v42 = vunpack.i.l.bf16 %v5053_v8  ;;  %v5049_v50 = vunpack.i.h.bf16 %v5047_v11  ;;  %v5048_v47 = vunpack.i.l.bf16 %v5047_v11  ;;  %v8718_v11 = vld [vmem:[#allocation16_spill] sm:$0xff] }
 0x401   : > { %v4124_v30 = vmul.f32 3.1415927, %v4092_v25  ;;  %v4123_v12 = vmul.f32 3.1415927, %v4091_v40 }
 0x402   : > { %v4058_v17 = vmul.f32 %v5055_v43, %v7952_v7  ;;  %v4057_v59 = vmul.f32 %v5054_v42, %v7952_v7  ;;  %v3898_v14 = vmul.f32 %v5049_v50, %v7929_v46  ;;  %v3897_v31 = vmul.f32 %v5048_v47, %v7929_v46  ;;  %v8719_v42 = vld [vmem:[#allocation14_spill] sm:$0xff] }
 0x403   : > { %v4156_v4 = vadd.f32 %v4124_v30, %v7569_v0  ;;  %v4155_v56 = vadd.f32 %v4123_v12, %v7566_v6  ;;  %v5063_v28 = vpop.permute.xlu0 %5062  ;;  %v5058_v1 = vpop.permute.xlu1 %5057 }
 0x404   : > { %v4090_v21 = vadd.f32 %v4058_v17, %v3898_v14  ;;  %v4089_v25 = vadd.f32 %v4057_v59, %v3897_v31  ;;  %v5065_v40 = vunpack.i.h.bf16 %v5063_v28  ;;  %v5064_v8 = vunpack.i.l.bf16 %v5063_v28 }
 0x405   : > { %v4190_v43 = vsel %vm7999_vm4, %v4156_v4, %v8718_v11  ;;  %v4189_v50 = vsel %vm7999_vm4, %v4155_v56, %v8719_v42  ;;  %v5060_v47 = vunpack.i.h.bf16 %v5058_v1  ;;  %v5059_v33 = vunpack.i.l.bf16 %v5058_v1 }
 0x406   : > { %4223 = vst.msk [vmem:[%s8010_s13 + $0x18] sm:$0xff] %vm4219_vm5, %v4190_v43  ;;  %4222 = vst.msk [vmem:[%s8010_s13 + $0x10] sm:$0xff] %vm4219_vm5, %v4189_v50  ;;  %v4122_v6 = vmul.f32 3.1415927, %v4090_v21  ;;  %v4121_v0 = vmul.f32 3.1415927, %v4089_v25  ;;  %v4064_v15 = vmul.f32 %v5065_v40, %v7952_v7  ;;  %v4063_v30 = vmul.f32 %v5064_v8, %v7952_v7 }
 0x407   : > { %v3904_v12 = vmul.f32 %v5060_v47, %v7929_v46  ;;  %v3903_v17 = vmul.f32 %v5059_v33, %v7929_v46  ;;  %v5068_v59 = vpop.permute.xlu1 %5067  ;;  %v8029_v14 = vadd.f32 -0.78539, %v7990_v27  ;;  %v3214_v31 = vmul.f32 %v7758_v36, %v7291_v54  ;;  %v8720_v8 = vld [vmem:[#allocation17_spill] sm:$0xff]  ;;  %v8721_v43 = vld [vmem:[#allocation18_spill] sm:$0xff] }
 0x408   : > { %v4154_v4 = vadd.f32 %v4122_v6, %v7618_v24  ;;  %v4153_v56 = vadd.f32 %v4121_v0, %v7620_v57  ;;  %v8035_v28 = vadd.f32 0.78539, %v3471_v45  ;;  %v3215_v1 = vmul.f32 %v7794_v53, %v7291_v54 }
 0x409   : > { %v4096_v21 = vadd.f32 %v4064_v15, %v3904_v12  ;;  %v4095_v33 = vadd.f32 %v4063_v30, %v3903_v17  ;;  %v3437_v25 = vmul.f32 3.1415927, %v3405_v19  ;;  %v3379_v40 = vmul.f32 0.31830987, %v7993_v55 }
 0x40a   : > { %v4188_v11 = vsel %vm7999_vm4, %v4154_v4, %v8720_v8  ;;  %v4187_v24 = vsel %vm7999_vm4, %v4153_v56, %v8721_v43  ;;  %v5085_v36 = vpop.permute.xlu0 %5084  ;;  %v8046_v57 = vadd.f32 0.78539, %v3472_v16  ;;  %v3438_v45 = vmul.f32 3.1415927, %v3406_v39  ;;  %v8066_v39 = vld [vmem:[%s8402_s4] ss:$0 sm:$0xff] }
 0x40b   : > { %4221 = vst.msk [vmem:[%s8010_s13 + $0x8] sm:$0xff] %vm4219_vm5, %v4188_v11  ;;  %4220 = vst.msk [vmem:[%s8010_s13] sm:$0xff] %vm4219_vm5, %v4187_v24  ;;  %v4128_v54 = vmul.f32 3.1415927, %v4096_v21  ;;  %v4127_v53 = vmul.f32 3.1415927, %v4095_v33  ;;  %v8056_v42 = vsel %vm3287_vm9, %v3214_v31, %v7675_v58  ;;  %v5070_v50 = vunpack.i.h.bf16 %v5068_v59 }
 0x40c   : > { %v3380_v19 = vmul.f32 0.31830987, %v8029_v14  ;;  %v5069_v47 = vunpack.i.l.bf16 %v5068_v59  ;;  %v5074_v6 = vpop.permute.xlu1 %5073  ;;  %v8061_v16 = vsel %vm3287_vm9, %v3215_v1, %v7708_v49  ;;  %v3220_v0 = vmul.f32 %v8066_v39, %v7829_v38 }
 0x40d   : > { %v4160_v58 = vadd.f32 %v4128_v54, %v7693_v9  ;;  %v4159_v15 = vadd.f32 %v4127_v53, %v7691_v2  ;;  %v3469_v30 = vsub.f32 %v7924_v52, %v3437_v25  ;;  %v3411_v12 = vfloor.f32 %v3379_v40 }
 0x40e   : > { %v5076_v17 = vunpack.i.h.bf16 %v5074_v6  ;;  %v5075_v49 = vunpack.i.l.bf16 %v5074_v6  ;;  %v3470_v59 = vsub.f32 %v7947_v63, %v3438_v45  ;;  %v8075_v31 = vadd.f32 -0.78539, %v8056_v42 }
 0x40f   : > { %v4194_v4 = vsel %vm7999_vm4, %v4160_v58, %v7534_v41  ;;  %v4193_v9 = vsel %vm7999_vm4, %v4159_v15, %v7529_v34  ;;  %v5091_v38 = vpop.permute.xlu0 %5090  ;;  %v3412_v2 = vfloor.f32 %v3380_v19  ;;  %v8084_v52 = vadd.f32 -0.78539, %v8061_v16 }
 0x410   : > { %4227 = vst.msk [vmem:[%s8010_s13 + $0x38] sm:$0xff] %vm4219_vm5, %v4194_v4  ;;  %4226 = vst.msk [vmem:[%s8010_s13 + $0x30] sm:$0xff] %vm4219_vm5, %v4193_v9  ;;  %v3902_v63 = vmul.f32 %v5070_v50, %v7929_v46  ;;  %v3901_v56 = vmul.f32 %v5069_v47, %v7929_v46  ;;  %v4062_v1 = vmul.f32 %v5076_v17, %v7952_v7  ;;  %v5087_v21 = vunpack.i.h.bf16 %v5085_v36  ;;  %v8722_v17 = vld [vmem:[#allocation39_spill] sm:$0xff] }
 0x411   : > { %v4061_v41 = vmul.f32 %v5075_v49, %v7952_v7  ;;  %v5086_v33 = vunpack.i.l.bf16 %v5085_v36  ;;  %v5080_v34 = vpop.permute.xlu1 %5079  ;;  %v8094_v25 = vadd.f32 0.78539, %v3469_v30  ;;  %v3221_v40 = vmul.f32 %v8066_v39, %v7857_v29 }
 0x412   : > { %v4094_v11 = vadd.f32 %v4062_v1, %v3902_v63  ;;  %v8098_v43 = vmul.f32 3.1415927, %v3411_v12  ;;  %v8101_v24 = vmul.f32 0.31830987, %v8075_v31  ;;  %v5082_v45 = vunpack.i.h.bf16 %v5080_v34  ;;  %v8724_v1 = vld [vmem:[#allocation32_spill] sm:$0xff] }
 0x413   : > { %v4093_v8 = vadd.f32 %v4061_v41, %v3901_v56  ;;  %v5081_v54 = vunpack.i.l.bf16 %v5080_v34  ;;  %v8103_v53 = vadd.f32 0.78539, %v3470_v59  ;;  %v8105_v19 = vmul.f32 3.1415927, %v3412_v2  ;;  %v8723_v59 = vld [vmem:[#allocation42_spill] sm:$0xff]  ;;  %v8726_v34 = vld [vmem:[#allocation23_spill] sm:$0xff] }
 0x414   : > { %v4126_v50 = vmul.f32 3.1415927, %v4094_v11  ;;  %v5109_v47 = vpop.permute.xlu0 %5108  ;;  %v8108_v6 = vmul.f32 0.31830987, %v8084_v52  ;;  %v8113_v29 = vsel %vm3287_vm9, %v3220_v0, %v7730_v62  ;;  %v4068_v58 = vmul.f32 %v5087_v21, %v7952_v7  ;;  %v8725_v21 = vld [vmem:[#allocation22_spill] sm:$0xff] }
 0x415   : > { %v4125_v36 = vmul.f32 3.1415927, %v4093_v8  ;;  %v4067_v15 = vmul.f32 %v5086_v33, %v7952_v7  ;;  %v3908_v30 = vmul.f32 %v5082_v45, %v7929_v46  ;;  %v3907_v12 = vmul.f32 %v5081_v54, %v7929_v46 }
 0x416   : > { %v4158_v4 = vadd.f32 %v4126_v50, %v8723_v59  ;;  %v5093_v9 = vunpack.i.h.bf16 %v5091_v38  ;;  %v5092_v2 = vunpack.i.l.bf16 %v5091_v38  ;;  %v5097_v63 = vpop.permute.xlu1 %5096  ;;  %v3475_v0 = vsub.f32 %v7993_v55, %v8098_v43 }
 0x417   : > { %v4157_v49 = vadd.f32 %v4125_v36, %v8722_v17  ;;  %v4100_v56 = vadd.f32 %v4068_v58, %v3908_v30  ;;  %v4099_v62 = vadd.f32 %v4067_v15, %v3907_v12  ;;  %v8126_v41 = vsel %vm3287_vm9, %v3221_v40, %v8724_v1 }
 0x418   : > { %v4192_v8 = vsel %vm7999_vm4, %v4158_v4, %v8726_v34  ;;  %v5099_v38 = vunpack.i.h.bf16 %v5097_v63  ;;  %v5098_v11 = vunpack.i.l.bf16 %v5097_v63  ;;  %v3409_v40 = vfloor.f32 %v8101_v24  ;;  %v8727_v63 = vld [vmem:[#allocation25_spill] sm:$0xff] }
 0x419   : > { %v4191_v33 = vsel %vm7999_vm4, %v4157_v49, %v8725_v21  ;;  %4225 = vst.msk [vmem:[%s8010_s13 + $0x28] sm:$0xff] %vm4219_vm5, %v4192_v8  ;;  %v4132_v55 = vmul.f32 3.1415927, %v4100_v56  ;;  %v4131_v43 = vmul.f32 3.1415927, %v4099_v62  ;;  %v5115_v45 = vpop.permute.xlu0 %5114  ;;  %v3906_v36 = vmul.f32 %v5093_v9, %v7929_v46  ;;  %v8728_v62 = vld [vmem:[#allocation24_spill] sm:$0xff] }
 0x41a   : > { %4224 = vst.msk [vmem:[%s8010_s13 + $0x20] sm:$0xff] %vm4219_vm5, %v4191_v33  ;;  %v8140_v54 = vadd.f32 -0.78539, %v8113_v29  ;;  %v3905_v50 = vmul.f32 %v5092_v2, %v7929_v46  ;;  %v4066_v58 = vmul.f32 %v5099_v38, %v7952_v7  ;;  %v4065_v15 = vmul.f32 %v5098_v11, %v7952_v7  ;;  %v8729_v33 = vld [vmem:[#allocation37_spill] sm:$0xff] }
 0x41b   : > { %v4164_v30 = vadd.f32 %v4132_v55, %v7898_v10  ;;  %v4163_v12 = vadd.f32 %v4131_v43, %v7892_v18  ;;  %v5111_v17 = vunpack.i.h.bf16 %v5109_v47  ;;  %v5110_v49 = vunpack.i.l.bf16 %v5109_v47  ;;  %v5103_v24 = vpop.permute.xlu1 %5102 }
 0x41c   : > { %v4098_v59 = vadd.f32 %v4066_v58, %v3906_v36  ;;  %v4097_v4 = vadd.f32 %v4065_v15, %v3905_v50  ;;  %v3476_v9 = vsub.f32 %v8029_v14, %v8105_v19  ;;  %v8151_v2 = vadd.f32 -0.78539, %v8126_v41 }
 0x41d   : > { %v4198_v56 = vsel %vm7999_vm4, %v4164_v30, %v8727_v63  ;;  %v4197_v10 = vsel %vm7999_vm4, %v4163_v12, %v8728_v62  ;;  %v5105_v18 = vunpack.i.h.bf16 %v5103_v24  ;;  %v5104_v1 = vunpack.i.l.bf16 %v5103_v24 }
 0x41e   : > { %4231 = vst.msk [vmem:[%s8010_s13 + $0x58] sm:$0xff] %vm4219_vm5, %v4198_v56  ;;  %4230 = vst.msk [vmem:[%s8010_s13 + $0x50] sm:$0xff] %vm4219_vm5, %v4197_v10  ;;  %v4130_v47 = vmul.f32 3.1415927, %v4098_v59  ;;  %v4129_v21 = vmul.f32 3.1415927, %v4097_v4  ;;  %v5133_v14 = vpop.permute.xlu0 %5132  ;;  %v3410_v19 = vfloor.f32 %v8108_v6  ;;  %v3218_v34 = vmul.f32 %v8066_v39, %v8729_v33 }
 0x41f   : > { %v4072_v8 = vmul.f32 %v5111_v17, %v7952_v7  ;;  %v4071_v38 = vmul.f32 %v5110_v49, %v7952_v7  ;;  %v3912_v11 = vmul.f32 %v5105_v18, %v7929_v46  ;;  %v3911_v55 = vmul.f32 %v5104_v1, %v7929_v46  ;;  %v8730_v49 = vld [vmem:[#allocation27_spill] sm:$0xff]  ;;  %v8731_v59 = vld [vmem:[#allocation50_spill] sm:$0xff]  ;;  %v8732_v56 = vld [vmem:[#allocation41_spill] sm:$0xff] }
 0x420   : > { %v4162_v43 = vadd.f32 %v4130_v47, %v7916_v32  ;;  %v4161_v36 = vadd.f32 %v4129_v21, %v7913_v5  ;;  %v5117_v50 = vunpack.i.h.bf16 %v5115_v45  ;;  %v5116_v58 = vunpack.i.l.bf16 %v5115_v45  ;;  %v5121_v6 = vpop.permute.xlu1 %5120 }
 0x421   : > { %v4104_v15 = vadd.f32 %v4072_v8, %v3912_v11  ;;  %v4103_v30 = vadd.f32 %v4071_v38, %v3911_v55  ;;  %v8172_v12 = vadd.f32 0.78539, %v3475_v0  ;;  %v8174_v17 = vmul.f32 3.1415927, %v3409_v40 }
 0x422   : > { %v4196_v24 = vsel %vm7999_vm4, %v4162_v43, %v8730_v49  ;;  %v4195_v4 = vsel %vm7999_vm4, %v4161_v36, %v8731_v59  ;;  %v5123_v32 = vunpack.i.h.bf16 %v5121_v6  ;;  %v5122_v63 = vunpack.i.l.bf16 %v5121_v6  ;;  %v8734_v6 = vld [vmem:[#allocation28_spill] sm:$0xff]  ;;  %v8735_v49 = vld [vmem:[#allocation26_spill] sm:$0xff] }
 0x423   : > { %4229 = vst.msk [vmem:[%s8010_s13 + $0x48] sm:$0xff] %vm4219_vm5, %v4196_v24  ;;  %4228 = vst.msk [vmem:[%s8010_s13 + $0x40] sm:$0xff] %vm4219_vm5, %v4195_v4  ;;  %v4136_v5 = vmul.f32 3.1415927, %v4104_v15  ;;  %v4135_v45 = vmul.f32 3.1415927, %v4103_v30  ;;  %v5139_v0 = vpop.permute.xlu0 %5138  ;;  %v3219_v62 = vmul.f32 %v8066_v39, %v8732_v56  ;;  %v3910_v10 = vmul.f32 %v5117_v50, %v7929_v46 }
 0x424   : > { %v8187_v40 = vmul.f32 0.31830987, %v8140_v54  ;;  %v3909_v18 = vmul.f32 %v5116_v58, %v7929_v46  ;;  %v4070_v1 = vmul.f32 %v5123_v32, %v7952_v7  ;;  %v4069_v47 = vmul.f32 %v5122_v63, %v7952_v7  ;;  %v8733_v50 = vld [vmem:[#allocation29_spill] sm:$0xff] }
 0x425   : > { %v4168_v21 = vadd.f32 %v4136_v5, %v7934_v35  ;;  %v4167_v33 = vadd.f32 %v4135_v45, %v7932_v3  ;;  %v5135_v8 = vunpack.i.h.bf16 %v5133_v14  ;;  %v5134_v38 = vunpack.i.l.bf16 %v5133_v14  ;;  %v5127_v11 = vpop.permute.xlu1 %5126 }
 0x426   : > { %v4102_v55 = vadd.f32 %v4070_v1, %v3910_v10  ;;  %v4101_v43 = vadd.f32 %v4069_v47, %v3909_v18  ;;  %v8197_v39 = vadd.f32 0.78539, %v3476_v9  ;;  %v8199_v36 = vmul.f32 3.1415927, %v3410_v19 }
 0x427   : > { %v4202_v58 = vsel %vm7999_vm4, %v4168_v21, %v8733_v50  ;;  %v4201_v15 = vsel %vm7999_vm4, %v4167_v33, %v8734_v6  ;;  %v5129_v35 = vunpack.i.h.bf16 %v5127_v11  ;;  %v5128_v30 = vunpack.i.l.bf16 %v5127_v11  ;;  %v8736_v33 = vld [vmem:[#allocation31_spill] sm:$0xff] }
 0x428   : > { %4235 = vst.msk [vmem:[%s8010_s13 + $0x78] sm:$0xff] %vm4219_vm5, %v4202_v58  ;;  %4234 = vst.msk [vmem:[%s8010_s13 + $0x70] sm:$0xff] %vm4219_vm5, %v4201_v15  ;;  %v4134_v3 = vmul.f32 3.1415927, %v4102_v55  ;;  %v4133_v14 = vmul.f32 3.1415927, %v4101_v43  ;;  %v5157_v9 = vpop.permute.xlu0 %5156  ;;  %v8217_v24 = vsel %vm3287_vm9, %v3218_v34, %v8735_v49  ;;  %v4076_v59 = vmul.f32 %v5135_v8, %v7952_v7 }
 0x429   : > { %v8212_v19 = vmul.f32 0.31830987, %v8151_v2  ;;  %v4075_v4 = vmul.f32 %v5134_v38, %v7952_v7  ;;  %v3916_v32 = vmul.f32 %v5129_v35, %v7929_v46  ;;  %v3915_v63 = vmul.f32 %v5128_v30, %v7929_v46  ;;  %v8737_v38 = vld [vmem:[#allocation30_spill] sm:$0xff] }
 0x42a   : > { %v4166_v5 = vadd.f32 %v4134_v3, %v7941_v20  ;;  %v4165_v45 = vadd.f32 %v4133_v14, %v7936_v26  ;;  %v5141_v56 = vunpack.i.h.bf16 %v5139_v0  ;;  %v5140_v10 = vunpack.i.l.bf16 %v5139_v0  ;;  %v5145_v18 = vpop.permute.xlu1 %5144 }
 0x42b   : > { %v4108_v1 = vadd.f32 %v4076_v59, %v3916_v32  ;;  %v4107_v34 = vadd.f32 %v4075_v4, %v3915_v63  ;;  %v3473_v47 = vsub.f32 %v8075_v31, %v8174_v17  ;;  %v3415_v21 = vfloor.f32 %v8187_v40  ;;  %v8738_v31 = vld [vmem:[#allocation38_spill] sm:$0xff] }
 0x42c   : > { %v4200_v8 = vsel %vm7999_vm4, %v4166_v5, %v8736_v33  ;;  %v4199_v20 = vsel %vm7999_vm4, %v4165_v45, %v8737_v38  ;;  %v5147_v11 = vunpack.i.h.bf16 %v5145_v18  ;;  %v5146_v26 = vunpack.i.l.bf16 %v5145_v18  ;;  %v8739_v32 = vld [vmem:[#allocation34_spill] sm:$0xff]  ;;  %v8740_v5 = vld [vmem:[#allocation33_spill] sm:$0xff] }
 0x42d   : > { %4233 = vst.msk [vmem:[%s8010_s13 + $0x68] sm:$0xff] %vm4219_vm5, %v4200_v8  ;;  %4232 = vst.msk [vmem:[%s8010_s13 + $0x60] sm:$0xff] %vm4219_vm5, %v4199_v20  ;;  %v4140_v0 = vmul.f32 3.1415927, %v4108_v1  ;;  %v4139_v55 = vmul.f32 3.1415927, %v4107_v34  ;;  %v5163_v43 = vpop.permute.xlu0 %5162  ;;  %v8241_v17 = vsel %vm3287_vm9, %v3219_v62, %v8738_v31  ;;  %v3914_v50 = vmul.f32 %v5141_v56, %v7929_v46 }
 0x42e   : > { %v8244_v40 = vadd.f32 -0.78539, %v8217_v24  ;;  %v3913_v58 = vmul.f32 %v5140_v10, %v7929_v46  ;;  %v4074_v6 = vmul.f32 %v5147_v11, %v7952_v7  ;;  %v4073_v15 = vmul.f32 %v5146_v26, %v7952_v7  ;;  %v8741_v31 = vld [vmem:[#allocation36_spill] sm:$0xff] }
 0x42f   : > { %v4172_v35 = vadd.f32 %v4140_v0, %v7963_v48  ;;  %v4171_v30 = vadd.f32 %v4139_v55, %v7961_v22  ;;  %v5159_v37 = vunpack.i.h.bf16 %v5157_v9  ;;  %v5158_v62 = vunpack.i.l.bf16 %v5157_v9  ;;  %v5151_v3 = vpop.permute.xlu1 %5150 }
 0x430   : > { %v4106_v14 = vadd.f32 %v4074_v6, %v3914_v50  ;;  %v4105_v49 = vadd.f32 %v4073_v15, %v3913_v58  ;;  %v3474_v59 = vsub.f32 %v8084_v52, %v8199_v36  ;;  %v8255_v4 = vadd.f32 -0.78539, %v8241_v17  ;;  %v8742_v58 = vld [vmem:[#allocation35_spill] sm:$0xff] }
 0x431   : > { %v4206_v63 = vsel %vm7999_vm4, %v4172_v35, %v8739_v32  ;;  %v4205_v48 = vsel %vm7999_vm4, %v4171_v30, %v8740_v5  ;;  %v5153_v22 = vunpack.i.h.bf16 %v5151_v3  ;;  %v5152_v45 = vunpack.i.l.bf16 %v5151_v3 }
 0x432   : > { %4239 = vst.msk [vmem:[%s8010_s13 + $0x98] sm:$0xff] %vm4219_vm5, %v4206_v63  ;;  %4238 = vst.msk [vmem:[%s8010_s13 + $0x90] sm:$0xff] %vm4219_vm5, %v4205_v48  ;;  %v4138_v9 = vmul.f32 3.1415927, %v4106_v14  ;;  %v4137_v56 = vmul.f32 3.1415927, %v4105_v49  ;;  %v5181_v52 = vpop.permute.xlu0 %5180  ;;  %v3416_v10 = vfloor.f32 %v8212_v19  ;;  %v4080_v18 = vmul.f32 %v5159_v37, %v7952_v7 }
 0x433   : > { %v8267_v36 = vadd.f32 0.78539, %v3473_v47  ;;  %v4079_v1 = vmul.f32 %v5158_v62, %v7952_v7  ;;  %v3920_v34 = vmul.f32 %v5153_v22, %v7929_v46  ;;  %v3919_v33 = vmul.f32 %v5152_v45, %v7929_v46 }
 0x434   : > { %v4170_v8 = vadd.f32 %v4138_v9, %v7973_v44  ;;  %v4169_v38 = vadd.f32 %v4137_v56, %v7965_v60  ;;  %v5165_v20 = vunpack.i.h.bf16 %v5163_v43  ;;  %v5164_v11 = vunpack.i.l.bf16 %v5163_v43  ;;  %v5169_v47 = vpop.permute.xlu1 %5168  ;;  %v8743_v56 = vld [vmem:[#allocation40_spill] sm:$0xff] }
 0x435   : > { %v4112_v26 = vadd.f32 %v4080_v18, %v3920_v34  ;;  %v4111_v0 = vadd.f32 %v4079_v1, %v3919_v33  ;;  %v8276_v19 = vmul.f32 3.1415927, %v3415_v21  ;;  %v8279_v55 = vmul.f32 0.31830987, %v8244_v40 }
 0x436   : > { %v4204_v50 = vsel %vm7999_vm4, %v4170_v8, %v8741_v31  ;;  %v4203_v44 = vsel %vm7999_vm4, %v4169_v38, %v8742_v58  ;;  %v5171_v6 = vunpack.i.h.bf16 %v5169_v47  ;;  %v5170_v60 = vunpack.i.l.bf16 %v5169_v47 }
 0x437   : > { %4237 = vst.msk [vmem:[%s8010_s13 + $0x88] sm:$0xff] %vm4219_vm5, %v4204_v50  ;;  %4236 = vst.msk [vmem:[%s8010_s13 + $0x80] sm:$0xff] %vm4219_vm5, %v4203_v44  ;;  %v4144_v43 = vmul.f32 3.1415927, %v4112_v26  ;;  %v4143_v21 = vmul.f32 3.1415927, %v4111_v0  ;;  %v5187_v15 = vpop.permute.xlu0 %5186  ;;  %v3918_v30 = vmul.f32 %v5165_v20, %v7929_v46  ;;  %v3917_v37 = vmul.f32 %v5164_v11, %v7929_v46 }
 0x438   : > { %v8291_v35 = vadd.f32 0.78539, %v3474_v59  ;;  %v4078_v62 = vmul.f32 %v5171_v6, %v7952_v7  ;;  %v4077_v3 = vmul.f32 %v5170_v60, %v7952_v7  ;;  %v5183_v32 = vunpack.i.h.bf16 %v5181_v52 }
 0x439   : > { %v4176_v14 = vadd.f32 %v4144_v43, %v8046_v57  ;;  %v4175_v49 = vadd.f32 %v4143_v21, %v8035_v28  ;;  %v5182_v63 = vunpack.i.l.bf16 %v5181_v52  ;;  %v5175_v5 = vpop.permute.xlu1 %5174  ;;  %v8299_v22 = vmul.f32 3.1415927, %v3416_v10 }
 0x43a   : > { %v4110_v48 = vadd.f32 %v4078_v62, %v3918_v30  ;;  %v4109_v59 = vadd.f32 %v4077_v3, %v3917_v37  ;;  %v3382_v45 = vmul.f32 0.31830987, %v8255_v4  ;;  %v5177_v57 = vunpack.i.h.bf16 %v5175_v5 }
 0x43b   : > { %v4210_v9 = vsel %vm7999_vm4, %v4176_v14, %v7875_v13  ;;  %v4209_v18 = vsel %vm7999_vm4, %v4175_v49, %v8743_v56  ;;  %v5176_v1 = vunpack.i.l.bf16 %v5175_v5  ;;  %v8308_v28 = vpop.permute.xlu0 %5203  ;;  %v5189_v34 = vunpack.i.h.bf16 %v5187_v15 }
 0x43c   : > { %4243 = vst.msk [vmem:[%s8010_s13 + $0xb8] sm:$0xff] %vm4219_vm5, %v4210_v9  ;;  %4242 = vst.msk [vmem:[%s8010_s13 + $0xb0] sm:$0xff] %vm4219_vm5, %v4209_v18  ;;  %v4142_v52 = vmul.f32 3.1415927, %v4110_v48  ;;  %v4141_v10 = vmul.f32 3.1415927, %v4109_v59  ;;  %v5188_v33 = vunpack.i.l.bf16 %v5187_v15  ;;  %v4084_v8 = vmul.f32 %v5183_v32, %v7952_v7 }
 0x43d   : > { %v4083_v13 = vmul.f32 %v5182_v63, %v7952_v7  ;;  %v3924_v38 = vmul.f32 %v5177_v57, %v7929_v46  ;;  %v3923_v20 = vmul.f32 %v5176_v1, %v7929_v46  ;;  %v3413_v0 = vfloor.f32 %v8279_v55 }
 0x43e   : > { %v4174_v11 = vadd.f32 %v4142_v52, %v8103_v53  ;;  %v4173_v47 = vadd.f32 %v4141_v10, %v8094_v25  ;;  %v5193_v26 = vpop.permute.xlu1 %5192  ;;  %v3414_v31 = vfloor.f32 %v3382_v45  ;;  %v3922_v53 = vmul.f32 %v5189_v34, %v7929_v46 }
 0x43f   : > { %v4116_v50 = vadd.f32 %v4084_v8, %v3924_v38  ;;  %v4115_v58 = vadd.f32 %v4083_v13, %v3923_v20  ;;  %v5195_v44 = vunpack.i.h.bf16 %v5193_v26  ;;  %v5194_v6 = vunpack.i.l.bf16 %v5193_v26 }
 0x440   : > { %v4208_v60 = vsel %vm7999_vm4, %v4174_v11, %v7921_v51  ;;  %v4207_v43 = vsel %vm7999_vm4, %v4173_v47, %v7910_v23  ;;  %v3921_v25 = vmul.f32 %v5188_v33, %v7929_v46  ;;  %v5216_v21 = vpop.permute.xlu0 %5215  ;;  %v3479_v23 = vsub.f32 %v8140_v54, %v8276_v19  ;;  %v8744_v54 = vld [vmem:[#allocation43_spill] sm:$0xff] }
 0x441   : > { %4241 = vst.msk [vmem:[%s8010_s13 + $0xa8] sm:$0xff] %vm4219_vm5, %v4208_v60  ;;  %4240 = vst.msk [vmem:[%s8010_s13 + $0xa0] sm:$0xff] %vm4219_vm5, %v4207_v43  ;;  %v4148_v55 = vmul.f32 3.1415927, %v4116_v50  ;;  %v4147_v15 = vmul.f32 3.1415927, %v4115_v58  ;;  %v4082_v30 = vmul.f32 %v5195_v44, %v7952_v7  ;;  %v4081_v37 = vmul.f32 %v5194_v6, %v7952_v7 }
 0x442   : > { %v5218_v51 = vunpack.i.h.bf16 %v5216_v21  ;;  %v5217_v62 = vunpack.i.l.bf16 %v5216_v21  ;;  %v3480_v3 = vsub.f32 %v8151_v2, %v8299_v22  ;;  %v3445_v45 = vmul.f32 3.1415927, %v3413_v0 }
 0x443   : > { %v4180_v14 = vadd.f32 %v4148_v55, %v8197_v39  ;;  %v4179_v49 = vadd.f32 %v4147_v15, %v8172_v12  ;;  %v4114_v32 = vadd.f32 %v4082_v30, %v3922_v53  ;;  %v4113_v63 = vadd.f32 %v4081_v37, %v3921_v25  ;;  %v5199_v5 = vpop.permute.xlu1 %5198 }
 0x444   : > { %v5201_v48 = vunpack.i.h.bf16 %v5199_v5  ;;  %v5200_v59 = vunpack.i.l.bf16 %v5199_v5  ;;  %v3446_v9 = vmul.f32 3.1415927, %v3414_v31  ;;  %v4088_v12 = vmul.f32 %v5218_v51, %v7952_v7 }
 0x445   : > { %v4214_v56 = vsel %vm7999_vm4, %v4180_v14, %v7990_v27  ;;  %v4213_v19 = vsel %vm7999_vm4, %v4179_v49, %v8744_v54  ;;  %v4146_v2 = vmul.f32 3.1415927, %v4114_v32  ;;  %v4145_v22 = vmul.f32 3.1415927, %v4113_v63 }
 0x446   : > { %4247 = vst.msk [vmem:[%s8010_s13 + $0xd8] sm:$0xff] %vm4219_vm5, %v4214_v56  ;;  %4246 = vst.msk [vmem:[%s8010_s13 + $0xd0] sm:$0xff] %vm4219_vm5, %v4213_v19  ;;  %v4087_v39 = vmul.f32 %v5217_v62, %v7952_v7  ;;  %v3928_v18 = vmul.f32 %v5201_v48, %v7929_v46  ;;  %v3927_v27 = vmul.f32 %v5200_v59, %v7929_v46  ;;  %v5206_v57 = vunpack.i.h.bf16 %v8308_v28 }
 0x447   : > { %v5205_v1 = vunpack.i.l.bf16 %v8308_v28  ;;  %v4178_v52 = vadd.f32 %v4146_v2, %v8291_v35  ;;  %v4177_v10 = vadd.f32 %v4145_v22, %v8267_v36  ;;  %v3735_v34 = vadd.f32 0.78539, %v3479_v23 }
 0x448   : > { %v3736_v33 = vadd.f32 0.78539, %v3480_v3  ;;  %v4120_v8 = vadd.f32 %v4088_v12, %v3928_v18  ;;  %v4119_v13 = vadd.f32 %v4087_v39, %v3927_v27  ;;  %v5210_v38 = vpop.permute.xlu1 %5209  ;;  %v3477_v28 = vsub.f32 %v8244_v40, %v3445_v45 }
 0x449   : > { %v4212_v20 = vsel %vm7999_vm4, %v4178_v52, %v8061_v16  ;;  %v4211_v11 = vsel %vm7999_vm4, %v4177_v10, %v8056_v42  ;;  %v5212_v47 = vunpack.i.h.bf16 %v5210_v38  ;;  %v5211_v26 = vunpack.i.l.bf16 %v5210_v38 }
 0x44a   : > { %4245 = vst.msk [vmem:[%s8010_s13 + $0xc8] sm:$0xff] %vm4219_vm5, %v4212_v20  ;;  %4244 = vst.msk [vmem:[%s8010_s13 + $0xc0] sm:$0xff] %vm4219_vm5, %v4211_v11  ;;  %v4152_v36 = vmul.f32 3.1415927, %v4120_v8  ;;  %v4151_v35 = vmul.f32 3.1415927, %v4119_v13  ;;  %v3478_v0 = vsub.f32 %v8255_v4, %v3446_v9  ;;  %v3926_v16 = vmul.f32 %v5206_v57, %v7929_v46 }
 0x44b   : > { %v3925_v31 = vmul.f32 %v5205_v1, %v7929_v46  ;;  %v4086_v42 = vmul.f32 %v5212_v47, %v7952_v7  ;;  %v4085_v50 = vmul.f32 %v5211_v26, %v7952_v7  ;;  %v3733_v43 = vadd.f32 0.78539, %v3477_v28 }
 0x44c   : > { %v4184_v58 = vadd.f32 %v4152_v36, %v3736_v33  ;;  %v4183_v44 = vadd.f32 %v4151_v35, %v3735_v34  ;;  %v3734_v46 = vadd.f32 0.78539, %v3478_v0 }
 0x44d   : > { %v4118_v6 = vadd.f32 %v4086_v42, %v3926_v16  ;;  %v4117_v60 = vadd.f32 %v4085_v50, %v3925_v31 }
 0x44e   : > { %v4218_v40 = vsel %vm7999_vm4, %v4184_v58, %v8126_v41  ;;  %v4217_v4 = vsel %vm7999_vm4, %v4183_v44, %v8113_v29 }
 0x44f   : > { %4251 = vst.msk [vmem:[%s8010_s13 + $0xf8] sm:$0xff] %vm4219_vm5, %v4218_v40  ;;  %4250 = vst.msk [vmem:[%s8010_s13 + $0xf0] sm:$0xff] %vm4219_vm5, %v4217_v4  ;;  %v4150_v7 = vmul.f32 3.1415927, %v4118_v6  ;;  %v4149_v53 = vmul.f32 3.1415927, %v4117_v60 }
 0x451   : > { %v4182_v25 = vadd.f32 %v4150_v7, %v3734_v46  ;;  %v4181_v21 = vadd.f32 %v4149_v53, %v3733_v43 }
 0x453   : > { %v4216_v55 = vsel %vm7999_vm4, %v4182_v25, %v8241_v17  ;;  %v4215_v41 = vsel %vm7999_vm4, %v4181_v21, %v8217_v24 }
 0x454   : > { %4249 = vst.msk [vmem:[%s8010_s13 + $0xe8] sm:$0xff] %vm4219_vm5, %v4216_v55  ;;  %4248 = vst.msk [vmem:[%s8010_s13 + $0xe0] sm:$0xff] %vm4219_vm5, %v4215_v41 }
 0x455 PF: > { %s17_s24 = sadd.s32 1, %s5523_s24  }
 0x456   : > { %p14_p4 = scmp.ge.s32.totalorder %s17_s24, 4  }
 0x458   :  { %16 = sbr.rel (!%p14_p4) target bundleno = 1 (0x1), region = 78 }

</bundles_post_ra>
